<compile_context>
chip_gen: v6e
topology: v6e:2x2x1
jax: 0.10.0
libtpu: 0.0.40
codegen_flags: <defaults>
</compile_context>

<pallas_src>
import jax
import jax.numpy as jnp
from jax.experimental import pallas as pl
from jax.experimental.pallas import tpu as pltpu

HIDDEN = 768          # BERT hidden size (fixed by the module: Linear(768, ...))
SCORER_MID = 768      # scorer first Linear out_features
SCORER_OUT = 1        # scorer second Linear out_features
PROMPT_OUT = 8        # prompt_classifier out_features
LANES = 128           # lane-dense packed output width
DROP_P = 0.0          # module default; the scorer fold below requires exactly 0.0


def _round_up(x, m):
    return ((x + m - 1) // m) * m


def _choose_tb(B):
    """Batch tile: multiple of 8 (or == B when B <= 8), capped at 512 rows,
    with >= 2 grid steps whenever possible so both v7x TensorCores are used."""
    if B <= 8:
        return B                                   # single full block
    return min(512, _round_up(pl.cdiv(B, 2), 8))


# --------------------------------------------------------------------------
# Kernel: one batch tile of the (folded, packed) head compute.
#   x_ref   : (TB, 2*HIDDEN)   first 1536 lanes of a (B, S*H) row = [tok0|tok1]
#   w_ref   : (2*HIDDEN, 128)  packed weights, whole array resident in VMEM
#   b_ref   : (1, 128)         packed bias, resident in VMEM
#   o_ref   : (TB, 128)        lane 0 = score, lanes 1..8 = prompt logits
#   cls_ref : (TB, HIDDEN)     token-0 hidden state (cls_feature), pass-through
# --------------------------------------------------------------------------
def efl_heads_kernel(x_ref, w_ref, b_ref, o_ref, cls_ref):
    x = x_ref[...]
    cls_ref[...] = x[:, :HIDDEN]
    o_ref[...] = (
        jnp.dot(
            x,
            w_ref[...],
            preferred_element_type=jnp.float32,
            precision=jax.lax.Precision.HIGHEST,
        )
        + b_ref[...]
    )


def pack_head_params(params, drop=DROP_P):
    """Fold scorer Linears and pack all head weights into one lane-dense slab.

    Runs ONCE at parameter-load time (hoisted out of the forward)."""
    # Fold is only valid with p==0.0 dropout and no activation between Linears.
    assert drop == 0.0, "scorer fold (w1 @ w2) requires Dropout(p=0.0)"
    hp = jax.lax.Precision.HIGHEST
    w_eff = jnp.dot(params["w1"], params["w2"], precision=hp)                 # (768, 1)
    b_eff = jnp.dot(params["b1"], params["w2"], precision=hp) + params["b2"]  # (1, 1)

    w_pack = jnp.zeros((2 * HIDDEN, LANES), jnp.float32)
    w_pack = w_pack.at[:HIDDEN, 0:SCORER_OUT].set(w_eff)                 # score  <- token 0
    w_pack = w_pack.at[HIDDEN:, 1:1 + PROMPT_OUT].set(params["w3"])      # prompt <- token 1

    b_pack = jnp.zeros((1, LANES), jnp.float32)
    b_pack = b_pack.at[:, 0:SCORER_OUT].set(b_eff)
    b_pack = b_pack.at[:, 1:1 + PROMPT_OUT].set(params["b3"])
    return w_pack, b_pack


def efl_scorer_forward(last_hidden_state, w_pack, b_pack):
    """Runs the EFL_scorer heads on a precomputed last_hidden_state.

    Returns (score, cls_feature, prompt_feature) exactly like the PyTorch
    module's forward (given the same backbone output). `w_pack`/`b_pack`
    come from `pack_head_params` (computed once at load time)."""
    B, S, H = last_hidden_state.shape
    assert H == HIDDEN, "hidden size fixed at 768 by the module"
    assert S >= 2, "forward reads tokens 0 and 1"

    # Free metadata reshape: (B, S, H) -> (B, S*H).  The x BlockSpec below
    # reads only lanes [0, 2*HIDDEN) of each row == tokens 0 and 1.
    xs = last_hidden_state.reshape(B, S * HIDDEN)

    TB = _choose_tb(B)
    grid = (pl.cdiv(B, TB),)   # ragged last block handled by Pallas (masked writes)

    packed, cls_feature = pl.pallas_call(
        efl_heads_kernel,
        out_shape=(
            jax.ShapeDtypeStruct((B, LANES), jnp.float32),   # score|prompt packed
            jax.ShapeDtypeStruct((B, HIDDEN), jnp.float32),  # cls_feature
        ),
        grid=grid,
        in_specs=[
            # batch tile of the first 1536 lanes (tokens 0 and 1) of each row
            pl.BlockSpec((TB, 2 * HIDDEN), lambda i: (i, 0)),
            # small constant operands: whole array in VMEM, copied in once,
            # no per-step double buffering
            pl.BlockSpec(memory_space=pltpu.MemorySpace.VMEM),
            pl.BlockSpec(memory_space=pltpu.MemorySpace.VMEM),
        ],
        out_specs=(
            pl.BlockSpec((TB, LANES), lambda i: (i, 0)),
            pl.BlockSpec((TB, HIDDEN), lambda i: (i, 0)),
        ),
        compiler_params=pltpu.CompilerParams(
            dimension_semantics=("parallel",),      # megacore sharding on v7x
            vmem_limit_bytes=32 * 1024 * 1024,      # ~10 MiB working set @ TB=512
        ),
    )(xs, w_pack, b_pack)

    score = packed[:, 0:SCORER_OUT]                 # (B, 1)
    prompt_feature = packed[:, 1:1 + PROMPT_OUT]    # (B, 8)
    return score, cls_feature, prompt_feature


def init_params(key):
    """Deterministic synthetic parameters matching the module's __init__ shapes.

    Weights stored as (in_features, out_features) so the math is x @ W + b
    (equivalent to PyTorch's x @ W.T + b with W of shape (out, in))."""
    k1, k2, k3 = jax.random.split(key, 3)
    scale = 0.02
    return {
        "w1": scale * jax.random.normal(k1, (HIDDEN, SCORER_MID), jnp.float32),
        "b1": jnp.zeros((1, SCORER_MID), jnp.float32),
        "w2": scale * jax.random.normal(k2, (SCORER_MID, SCORER_OUT), jnp.float32),
        "b2": jnp.zeros((1, SCORER_OUT), jnp.float32),
        "w3": scale * jax.random.normal(k3, (HIDDEN, PROMPT_OUT), jnp.float32),
        "b3": jnp.zeros((1, PROMPT_OUT), jnp.float32),
    }


def reference_heads(last_hidden_state, params):
    """Pure-JAX reference with the module's exact (un-folded) structure."""
    hp = jax.lax.Precision.HIGHEST
    cls_feature = last_hidden_state[:, 0, :]
    prompt_tok = last_hidden_state[:, 1, :]
    mid = jnp.dot(cls_feature, params["w1"], precision=hp) + params["b1"]
    # Dropout(p=0.0) is the identity.
    score = jnp.dot(mid, params["w2"], precision=hp) + params["b2"]
    prompt = jnp.dot(prompt_tok, params["w3"], precision=hp) + params["b3"]
    return score, cls_feature, prompt


if __name__ == "__main__":
    key = jax.random.PRNGKey(0)
    k_hidden, k_params = jax.random.split(key)

    B, S = 2, 8   # small batch / sequence; hidden fixed at 768 by the module
    last_hidden_state = jax.random.normal(k_hidden, (B, S, HIDDEN), jnp.float32)
    params = init_params(k_params)

    # One-time parameter fold/pack (load-time work, not per-forward work).
    w_pack, b_pack = pack_head_params(params)

    score, cls_feature, prompt_feature = efl_scorer_forward(
        last_hidden_state, w_pack, b_pack
    )
    jax.block_until_ready((score, cls_feature, prompt_feature))

    ref_score, ref_cls, ref_prompt = reference_heads(last_hidden_state, params)
    assert score.shape == (B, SCORER_OUT)
    assert cls_feature.shape == (B, HIDDEN)
    assert prompt_feature.shape == (B, PROMPT_OUT)
    # Tolerance covers the (cls@w1)@w2 vs cls@(w1@w2) reassociation; signal
    # magnitude is O(0.3) so 1e-3 still catches real bugs.
    assert jnp.allclose(score, ref_score, atol=1e-3), "score mismatch"
    assert jnp.allclose(cls_feature, ref_cls, atol=1e-6), "cls_feature mismatch"
    assert jnp.allclose(prompt_feature, ref_prompt, atol=1e-3), "prompt mismatch"

    print("KERNEL_OK")
</pallas_src>

<mosaic_0001>
module attributes {stable_mosaic.version = 11 : i64} {
  func.func @efl_heads_kernel(%arg0: i32, %arg1: memref<2x1536xf32, #tpu.memory_space<vmem>>, %arg2: memref<1536x128xf32, #tpu.memory_space<vmem>>, %arg3: memref<1x128xf32, #tpu.memory_space<vmem>>, %arg4: memref<2x128xf32, #tpu.memory_space<vmem>>, %arg5: memref<2x768xf32, #tpu.memory_space<vmem>>) attributes {dimension_semantics = [#tpu.dimension_semantics<parallel>], iteration_bounds = array<i64: 1>, scalar_prefetch = 0 : i64, scratch_operands = 0 : i64, tpu.core_type = #tpu.core_type<tc>, window_params = [{transform_indices = @transform_0, window_bounds = array<i64: 2, 1536>}, {pipeline_mode = #tpu.pipeline_mode<synchronous>, transform_indices = @transform_1, window_bounds = array<i64: 1536, 128>}, {pipeline_mode = #tpu.pipeline_mode<synchronous>, transform_indices = @transform_2, window_bounds = array<i64: 1, 128>}, {transform_indices = @transform_3, window_bounds = array<i64: 2, 128>}, {transform_indices = @transform_4, window_bounds = array<i64: 2, 768>}]} {
    %c0 = arith.constant 0 : index
    %c0_0 = arith.constant 0 : index
    %0 = vector.load %arg1[%c0, %c0_0] : memref<2x1536xf32, #tpu.memory_space<vmem>>, vector<2x1536xf32>
    %1 = vector.extract_strided_slice %0 {offsets = [0, 0], sizes = [2, 768], strides = [1, 1]} : vector<2x1536xf32> to vector<2x768xf32>
    %c0_1 = arith.constant 0 : index
    %c0_2 = arith.constant 0 : index
    %2 = vector.load %arg5[%c0_1, %c0_2] : memref<2x768xf32, #tpu.memory_space<vmem>>, vector<2x768xf32>
    tpu.vector_store %arg5[%c0_1, %c0_2], %1 {strides = array<i32>} : memref<2x768xf32, #tpu.memory_space<vmem>>, vector<2x768xf32>,
    %c0_3 = arith.constant 0 : index
    %c0_4 = arith.constant 0 : index
    %3 = vector.load %arg2[%c0_3, %c0_4] : memref<1536x128xf32, #tpu.memory_space<vmem>>, vector<1536x128xf32>
    %cst = arith.constant dense<0.000000e+00> : vector<2x128xf32>
    %4 = tpu.matmul %0, %3, %cst {dimension_numbers = #tpu.dot_dimension_numbers<[1], [0], [0], [1], [0, 0, 1, 1], [], []>, precision = #tpu.contract_precision<fp32>} : vector<2x1536xf32>, vector<1536x128xf32>, vector<2x128xf32> -> vector<2x128xf32>
    %c0_5 = arith.constant 0 : index
    %c0_6 = arith.constant 0 : index
    %5 = vector.load %arg3[%c0_5, %c0_6] : memref<1x128xf32, #tpu.memory_space<vmem>>, vector<1x128xf32>
    %6 = vector.broadcast %5 : vector<1x128xf32> to vector<2x128xf32>
    %7 = arith.addf %4, %6 : vector<2x128xf32>
    %c0_7 = arith.constant 0 : index
    %c0_8 = arith.constant 0 : index
    %8 = vector.load %arg4[%c0_7, %c0_8] : memref<2x128xf32, #tpu.memory_space<vmem>>, vector<2x128xf32>
    tpu.vector_store %arg4[%c0_7, %c0_8], %7 {strides = array<i32>} : memref<2x128xf32, #tpu.memory_space<vmem>>, vector<2x128xf32>,
    return
  }
  func.func @transform_0(%arg0: i32) -> (i32, i32) {
    %c0_i32 = arith.constant 0 : i32
    %c0_i32_0 = arith.constant 0 : i32
    return %arg0, %c0_i32 : i32, i32
  }
  func.func @transform_1(%arg0: i32) -> (i32, i32) {
    %c0_i32 = arith.constant 0 : i32
    %c0_i32_0 = arith.constant 0 : i32
    %c0_i32_1 = arith.constant 0 : i32
    return %c0_i32, %c0_i32_0 : i32, i32
  }
  func.func @transform_2(%arg0: i32) -> (i32, i32) {
    %c0_i32 = arith.constant 0 : i32
    %c0_i32_0 = arith.constant 0 : i32
    %c0_i32_1 = arith.constant 0 : i32
    return %c0_i32, %c0_i32_0 : i32, i32
  }
  func.func @transform_3(%arg0: i32) -> (i32, i32) {
    %c0_i32 = arith.constant 0 : i32
    %c0_i32_0 = arith.constant 0 : i32
    return %arg0, %c0_i32 : i32, i32
  }
  func.func @transform_4(%arg0: i32) -> (i32, i32) {
    %c0_i32 = arith.constant 0 : i32
    %c0_i32_0 = arith.constant 0 : i32
    return %arg0, %c0_i32 : i32, i32
  }
}

</mosaic_0001>

<bundles_post_ra>
// kernel: tpu_custom_call.1
= control target key start
LH: loop header
LB: loop body
LE: loop exit
PB: predicated region body
PF: predicated region fallthrough
CT: control target
= control target key end

     0   :  { %10 = vsyncpa [#allocation3], 0  ;;  %s10498_s0 = inlined_call_operand.hbm [shape: f32[2,6144], index: 0, kind: input, shape index: {}]   ;;  %s10499_s1 = inlined_call_operand.hbm [shape: f32[1536,128], index: 1, kind: input, shape index: {}]   ;;  %s10500_s2 = inlined_call_operand.vmem [shape: f32[1,128], index: 2, kind: input, shape index: {}]   ;;  %s10501_s3 = inlined_call_operand.hbm [shape: f32[2,128], index: 3, kind: output, shape index: {0}]   ;;  %s10502_s4 = inlined_call_operand.hbm [shape: f32[2,768], index: 4, kind: output, shape index: {1}]  }
   0x1   :  { %11 = vsyncpa [#allocation6], 0 }
   0x2   :  { %12 = vsyncpa [#allocation4], 0 }
   0x3   :  { %13 = vsyncpa [#allocation9], 0  ;;  %s6876_s15 = smov [#allocation2]   ;;  %s6877_s17 = smov [#allocation5]  }
   0x4   :  { %s20_s16 = sshll.u32 %s6876_s15, 4  ;;  %s29_s18 = sshll.u32 %s6877_s17, 4  ;;  %s21_s16 = int_to_ptr.vmem [resolvable:$true] %s20_s16  ;;  %s30_s18 = int_to_ptr.vmem [resolvable:$true] %s29_s18 }
   0x5   :  { %s6796_s19 = scalar_lea.vmem %s21_s16, 384  ;;  %p6801_p1 = scmp.lt.s32.totalorder %s21_s16, %s21_s16 }
   0x6   :  { %p6797_p0 = scmp.ne.s32.totalorder %s21_s16, %s6796_s19  ;;  %p6802_p2 = scmp.lt.s32.totalorder %s6796_s19, %s6796_s19 }
   0x8   :  { %p6803_p3 = por %p6802_p2, %p6801_p1 }
   0xa   :  { %p6804_p4 = pnand %p6803_p3, %p6797_p0 }
   0xc   :  { %6807 = shalt.err (!%p6804_p4)
}
   0xd   :  { %23 = dma.hbm_to_vmem [thread:$0]  %s10498_s0, 384, %s21_s16, [#allocation3]  }
   0xe   :  { %s6816_s22 = scalar_lea.vmem %s30_s18, 24576  ;;  %p6821_p6 = scmp.lt.s32.totalorder %s30_s18, %s30_s18 }
   0xf   :  { %p6817_p5 = scmp.ne.s32.totalorder %s30_s18, %s6816_s22  ;;  %p6822_p7 = scmp.lt.s32.totalorder %s6816_s22, %s6816_s22 }
  0x11   :  { %p6823_p8 = por %p6822_p7, %p6821_p6 }
  0x13   :  { %p6824_p9 = pnand %p6823_p8, %p6817_p5 }
  0x15   :  { %6827 = shalt.err (!%p6824_p9)
}
  0x16   :  { %s6878_s23 = smov 128   ;;  %s6879_s24 = smov 8  }
  0x17   :  { %35 = dma.hbm_to_vmem [thread:$0]  %s10499_s1, 24576, %s30_s18, [#allocation6], %s6878_s23, %s6878_s23, %s6879_s24  }
  0x18   :  { %6868 = dma.done.wait [#allocation3], 384  }
  0x19   :  { %6869 = vsyncadd [#allocation3], 4294966912 }
  0x1a   :  { %6870 = dma.done.wait [#allocation6], 24576  }
  0x1b   :  { %6871 = vsyncadd [#allocation6], 4294942720  ;;  %v6880_v0 = vmov 1983009808   ;;  %v255_v2 = vlaneseq  ;;  %v80_v5 = vld [vmem:[#allocation5 + $0xf8] sm:$0xff]  ;;  %v79_v7 = vld [vmem:[#allocation5 + $0xf0] sm:$0xff] }
  0x1c   :  { %v253_v1 = vunpack.c.l.s4 %v6880_v0  ;;  %v64_v6 = vld [vmem:[#allocation5 + $0x78] sm:$0xff]  ;;  %v6914_v8 = vand.u32 4294901760, %v80_v5  ;;  %v6918_v10 = vand.u32 4294901760, %v79_v7  ;;  %v63_v11 = vld [vmem:[#allocation5 + $0x70] sm:$0xff]  ;;  %v78_v12 = vld [vmem:[#allocation5 + $0xe8] sm:$0xff]  ;;  %s6881_s0 = smov [#allocation8]  }
  0x1d   :  { %v256_v4 = vshrl.u32 %v255_v2, 7  ;;  %v6916_v9 = vand.u32 4294901760, %v64_v6  ;;  %v62_v13 = vld [vmem:[#allocation5 + $0x68] sm:$0xff]  ;;  %v6920_v14 = vand.u32 4294901760, %v63_v11  ;;  %v6922_v15 = vand.u32 4294901760, %v78_v12  ;;  %v77_v17 = vld [vmem:[#allocation5 + $0xe0] sm:$0xff] }
  0x1e   :  { %v254_v3 = vunpack.c.0.s8 %v253_v1  ;;  %v6924_v16 = vand.u32 4294901760, %v62_v13  ;;  %v61_v18 = vld [vmem:[#allocation5 + $0x60] sm:$0xff]  ;;  %v6926_v19 = vld [vmem:[#allocation5 + $0xd8] sm:$0xff]  ;;  %5518 = vmatprep.subr.mxu0 %v6914_v8  ;;  %v6931_v21 = vand.u32 4294901760, %v77_v17  ;;  %v6939_v24 = vsub.f32 %v80_v5, %v6914_v8  ;;  %v6943_v26 = vld [vmem:[#allocation5 + $0xd0] sm:$0xff]  ;;  %s5503_s1 = sshll.u32 %s6881_s0, 4  ;;  %s5504_s1 = int_to_ptr.vmem [resolvable:$true] %s5503_s1 }
  0x1f   :  { %v6933_v22 = vand.u32 4294901760, %v61_v18  ;;  %v6936_v23 = vand.u32 4294901760, %v6926_v19  ;;  %v6941_v25 = vld [vmem:[#allocation5 + $0x58] sm:$0xff]  ;;  %v6945_v27 = vld [vmem:[#allocation5 + $0x50] sm:$0xff]  ;;  %5519 = vmatpush3.msra.mxu0 %v6916_v9  ;;  %v6952_v29 = vsub.f32 %v64_v6, %v6916_v9  ;;  %v6955_v30 = vand.u32 4294901760, %v6943_v26  ;;  %v6960_v32 = vld [vmem:[#allocation5 + $0xc8] sm:$0xff]  ;;  %p6833_p11 = scmp.lt.s32.totalorder %s5504_s1, %s5504_s1 }
  0x20   :  { %v6928_v20 = vsub.s32 %v254_v3, %v256_v4  ;;  %10909 = vst [vmem:[#allocation15_spill] sm:$0xff] %v6939_v24  ;;  %v6949_v28 = vand.u32 4294901760, %v6941_v25  ;;  %v6958_v31 = vsub.f32 %v79_v7, %v6918_v10  ;;  %v6962_v33 = vld [vmem:[#allocation5 + $0x48] sm:$0xff]  ;;  %v6964_v34 = vld [vmem:[#allocation5 + $0xc0] sm:$0xff]  ;;  %5520 = vmatprep.subr.mxu0 %v6918_v10  ;;  %v10515_v35 = vand.u32 4294901760, %v6939_v24  ;;  %v7010_v52 = vld [vmem:[#allocation5 + $0xb8] sm:$0xff] }
  0x21   :  { %v6969_v36 = vand.u32 4294901760, %v6945_v27  ;;  %v6972_v37 = vsub.f32 %v63_v11, %v6920_v14  ;;  %v6975_v38 = vand.u32 4294901760, %v6960_v32  ;;  %5521 = vmatpush3.msra.mxu0 %v6920_v14  ;;  %v10513_v39 = vand.u32 4294901760, %v6952_v29  ;;  %v6986_v43 = vld [vmem:[#allocation5 + $0x40] sm:$0xff]  ;;  %v7020_v57 = vld [vmem:[#allocation5 + $0x38] sm:$0xff]  ;;  %v7027_v62 = vld [vmem:[#allocation5 + $0xb0] sm:$0xff] }
  0x22   :  { %10908 = vst [vmem:[#allocation14_spill] sm:$0xff] %v6928_v20  ;;  %v10511_v40 = vand.u32 4294901760, %v6958_v31  ;;  %v6981_v41 = vsub.f32 %v78_v12, %v6922_v15  ;;  %v6984_v42 = vand.u32 4294901760, %v6962_v33  ;;  %5522 = vmatprep.subr.mxu0 %v6922_v15  ;;  %v542_v44 = vsub.f32 %v6939_v24, %v10515_v35  ;;  %v7029_v63 = vld [vmem:[#allocation2] sm:$0xff]  ;;  %v7041_v4 = vld [vmem:[#allocation5 + $0x30] sm:$0xff]  ;;  %s6828_s27 = scalar_lea.vmem %s5504_s1, 192 }
  0x23   :  { %10910 = vst [vmem:[#allocation16_spill] sm:$0xff] %v6975_v38  ;;  %v10510_v45 = vand.u32 4294901760, %v6972_v37  ;;  %v6994_v46 = vsub.f32 %v62_v13, %v6924_v16  ;;  %v6997_v47 = vand.u32 4294901760, %v6964_v34  ;;  %5523 = vmatpush3.msra.mxu0 %v6924_v16  ;;  %v430_v48 = vsub.f32 %v6952_v29, %v10513_v39  ;;  %10914 = vst [vmem:[#allocation20_spill] sm:$0xff] %v7029_v63  ;;  %v7055_v12 = vld [vmem:[#allocation5 + $0xa8] sm:$0xff]  ;;  %v7146_v39 = vld [vmem:[#allocation5 + $0x90] sm:$0xff]  ;;  %p6829_p10 = scmp.ne.s32.totalorder %s5504_s1, %s6828_s27  ;;  %p6834_p12 = scmp.lt.s32.totalorder %s6828_s27, %s6828_s27 }
  0x24   :  { %10911 = vst [vmem:[#allocation17_spill] sm:$0xff] %v6984_v42  ;;  %v549_v49 = vsub.f32 %v6958_v31, %v10511_v40  ;;  %v10508_v50 = vand.u32 4294901760, %v6981_v41  ;;  %v7008_v51 = vsub.f32 %v77_v17, %v6931_v21  ;;  %5524 = vmatprep.subr.mxu0 %v6931_v21  ;;  %v543_v53 = vand.u32 4294901760, %v542_v44  ;;  %47 = vst [vmem:[#allocation8] sm:$0xff] %v7029_v63  ;;  %v7156_v35 = vld [vmem:[#allocation5 + $0x10] sm:$0xff] }
  0x25   :  { %10912 = vst [vmem:[#allocation18_spill] sm:$0xff] %v6997_v47  ;;  %v437_v54 = vsub.f32 %v6972_v37, %v10510_v45  ;;  %v10506_v55 = vand.u32 4294901760, %v6994_v46  ;;  %v7018_v56 = vand.u32 4294901760, %v6986_v43  ;;  %5525 = vmatpush3.msra.mxu0 %v6933_v22  ;;  %v431_v58 = vand.u32 4294901760, %v430_v48  ;;  %v7133_v45 = vld [vmem:[#allocation5 + $0x18] sm:$0xff]  ;;  %p6835_p13 = por %p6834_p12, %p6833_p11 }
  0x26   :  { %v550_v59 = vand.u32 4294901760, %v549_v49  ;;  %v556_v60 = vsub.f32 %v6981_v41, %v10508_v50  ;;  %v10505_v61 = vand.u32 4294901760, %v7008_v51  ;;  %5526 = vmatprep.subr.mxu0 %v6936_v23  ;;  %5553 = vmatprep.subr.mxu1 %v543_v53  ;;  %v7036_v2 = vsub.f32 %v61_v18, %v6933_v22 }
  0x27   :  { %10913 = vst [vmem:[#allocation19_spill] sm:$0xff] %v7018_v56  ;;  %v438_v0 = vand.u32 4294901760, %v437_v54  ;;  %v444_v1 = vsub.f32 %v6994_v46, %v10506_v55  ;;  %v7039_v3 = vand.u32 4294901760, %v7010_v52  ;;  %5527 = vmatpush3.msra.mxu0 %v6949_v28  ;;  %5554 = vmatpush3.msra.mxu1 %v431_v58  ;;  %v7050_v7 = vsub.f32 %v6926_v19, %v6936_v23  ;;  %v7066_v19 = vld [vmem:[#allocation5 + $0x28] sm:$0xff]  ;;  %p6836_p0 = pnand %p6835_p13, %p6829_p10 }
  0x28   :  { %v557_v5 = vand.u32 4294901760, %v556_v60  ;;  %v563_v6 = vsub.f32 %v7008_v51, %v10505_v61  ;;  %v7053_v11 = vand.u32 4294901760, %v7020_v57  ;;  %5528 = vmatprep.subr.mxu0 %v6955_v30  ;;  %5555 = vmatprep.subr.mxu1 %v550_v59  ;;  %v10503_v17 = vand.u32 4294901760, %v7036_v2  ;;  %v7112_v61 = vld [vmem:[#allocation5 + $0x20] sm:$0xff] }
  0x29   :  { %10915 = vst [vmem:[#allocation21_spill] sm:$0xff] %v7039_v3  ;;  %v445_v13 = vand.u32 4294901760, %v444_v1  ;;  %v7061_v18 = vsub.f32 %v6941_v25, %v6949_v28  ;;  %v7064_v44 = vand.u32 4294901760, %v7027_v62  ;;  %5529 = vmatpush3.msra.mxu0 %v6969_v36  ;;  %5556 = vmatpush3.msra.mxu1 %v438_v0  ;;  %v10504_v49 = vand.u32 4294901760, %v7050_v7 }
  0x2a   :  { %10916 = vst [vmem:[#allocation22_spill] sm:$0xff] %v7053_v11  ;;  %v564_v48 = vand.u32 4294901760, %v563_v6  ;;  %v7072_v53 = vsub.f32 %v6943_v26, %v6955_v30  ;;  %v7075_v54 = vand.u32 4294901760, %v7041_v4  ;;  %5530 = vmatprep.subr.mxu0 %v6975_v38  ;;  %5557 = vmatprep.subr.mxu1 %v557_v5  ;;  %v451_v25 = vsub.f32 %v7036_v2, %v10503_v17  ;;  %v7089_v26 = vld [vmem:[#allocation5 + $0xa0] sm:$0xff] }
  0x2b   :  { %10917 = vst [vmem:[#allocation23_spill] sm:$0xff] %v7064_v44  ;;  %v10507_v58 = vand.u32 4294901760, %v7061_v18  ;;  %v7084_v59 = vsub.f32 %v6945_v27, %v6969_v36  ;;  %v7087_v60 = vand.u32 4294901760, %v7055_v12  ;;  %5531 = vmatpush3.msra.mxu0 %v6984_v42  ;;  %5558 = vmatpush3.msra.mxu1 %v445_v13  ;;  %v570_v0 = vsub.f32 %v7050_v7, %v10504_v49 }
  0x2c   :  { %10918 = vst [vmem:[#allocation24_spill] sm:$0xff] %v7075_v54  ;;  %v10509_v1 = vand.u32 4294901760, %v7072_v53  ;;  %v7098_v5 = vsub.f32 %v6960_v32, %v6975_v38  ;;  %v7101_v27 = vand.u32 4294901760, %v7066_v19  ;;  %5532 = vmatprep.subr.mxu0 %v6997_v47  ;;  %5559 = vmatprep.subr.mxu1 %v564_v48  ;;  %v452_v6 = vand.u32 4294901760, %v451_v25 }
  0x2d   :  { %10919 = vst [vmem:[#allocation25_spill] sm:$0xff] %v7087_v60  ;;  %v458_v13 = vsub.f32 %v7061_v18, %v10507_v58  ;;  %v10512_v17 = vand.u32 4294901760, %v7084_v59  ;;  %v7110_v49 = vsub.f32 %v6962_v33, %v6984_v42  ;;  %5533 = vmatpush3.msra.mxu0 %v7018_v56  ;;  %v571_v32 = vand.u32 4294901760, %v570_v0  ;;  %v7122_v58 = vld [vmem:[#allocation5 + $0x98] sm:$0xff] }
  0x2e   :  { %10920 = vst [vmem:[#allocation26_spill] sm:$0xff] %v7101_v27  ;;  %v577_v48 = vsub.f32 %v7072_v53, %v10509_v1  ;;  %v10514_v25 = vand.u32 4294901760, %v7098_v5  ;;  %v7120_v55 = vand.u32 4294901760, %v7089_v26  ;;  %5560 = vmatpush3.msra.mxu1 %v452_v6  ;;  %5534 = vmatprep.subr.mxu0 %v7039_v3  ;;  %v7131_v1 = vsub.f32 %v6964_v34, %v6997_v47 }
  0x2f   :  { %v459_v33 = vand.u32 4294901760, %v458_v13  ;;  %v465_v50 = vsub.f32 %v7084_v59, %v10512_v17  ;;  %v10518_v0 = vand.u32 4294901760, %v7110_v49  ;;  %5561 = vmatprep.subr.mxu1 %v571_v32  ;;  %5535 = vmatpush3.msra.mxu0 %v7053_v11  ;;  %v7140_v13 = vand.u32 4294901760, %v7112_v61 }
  0x30   :  { %10921 = vst [vmem:[#allocation27_spill] sm:$0xff] %v7120_v55  ;;  %v578_v40 = vand.u32 4294901760, %v577_v48  ;;  %v584_v6 = vsub.f32 %v7098_v5, %v10514_v25  ;;  %v7144_v17 = vsub.f32 %v6986_v43, %v7018_v56  ;;  %5536 = vmatprep.subr.mxu0 %v7064_v44  ;;  %v7154_v25 = vand.u32 4294901760, %v7122_v58 }
  0x31   :  { %10922 = vst [vmem:[#allocation28_spill] sm:$0xff] %v7140_v13  ;;  %5562 = vmatpush3.msra.mxu1 %v459_v33  ;;  %v466_v34 = vand.u32 4294901760, %v465_v50  ;;  %v472_v32 = vsub.f32 %v7110_v49, %v10518_v0  ;;  %5537 = vmatpush3.msra.mxu0 %v7075_v54  ;;  %v7162_v50 = vsub.f32 %v7010_v52, %v7039_v3  ;;  %v7165_v56 = vand.u32 4294901760, %v7133_v45  ;;  %v7167_v0 = vld [vmem:[#allocation5 + $0x88] sm:$0xff] }
  0x32   :  { %10923 = vst [vmem:[#allocation29_spill] sm:$0xff] %v7154_v25  ;;  %5563 = vmatprep.subr.mxu1 %v578_v40  ;;  %v585_v43 = vand.u32 4294901760, %v584_v6  ;;  %v10525_v33 = vand.u32 4294901760, %v7144_v17  ;;  %5538 = vmatprep.subr.mxu0 %v7087_v60  ;;  %v10925_v40 = vand.u32 4294901760, %v7131_v1  ;;  %v7175_v6 = vsub.f32 %v7020_v57, %v7053_v11  ;;  %v7192_v57 = vld [vmem:[#allocation5 + $0x8] sm:$0xff] }
  0x33   :  { %10924 = vst [vmem:[#allocation30_spill] sm:$0xff] %v7165_v56  ;;  %5564 = vmatpush3.msra.mxu1 %v466_v34  ;;  %v473_v48 = vand.u32 4294901760, %v472_v32  ;;  %v7178_v52 = vand.u32 4294901760, %v7146_v39  ;;  %5539 = vmatpush3.msra.mxu0 %v7101_v27  ;;  %v7187_v3 = vsub.f32 %v7027_v62, %v7064_v44  ;;  %v7201_v32 = vand.u32 4294901760, %v7167_v0  ;;  %v7203_v62 = vld [vmem:[#allocation5 + $0x80] sm:$0xff] }
  0x34   :  { %v591_v47 = vsub.f32 %v7131_v1, %v10925_v40  ;;  %10926 = vst [vmem:[#allocation31_spill] sm:$0xff] %v7175_v6  ;;  %5565 = vmatprep.subr.mxu1 %v585_v43  ;;  %v479_v34 = vsub.f32 %v7144_v17, %v10525_v33  ;;  %v7190_v40 = vand.u32 4294901760, %v7156_v35  ;;  %5540 = vmatprep.subr.mxu0 %v7120_v55  ;;  %v10930_v42 = vand.u32 4294901760, %v7162_v50 }
  0x35   :  { %10927 = vst [vmem:[#allocation32_spill] sm:$0xff] %v7178_v52  ;;  %10928 = vst [vmem:[#allocation33_spill] sm:$0xff] %v7187_v3  ;;  %5566 = vmatpush3.msra.mxu1 %v473_v48  ;;  %v7198_v33 = vsub.f32 %v7041_v4, %v7075_v54  ;;  %5541 = vmatpush3.msra.mxu0 %v7140_v13  ;;  %v7212_v11 = vsub.f32 %v7055_v12, %v7087_v60  ;;  %v10931_v4 = vand.u32 4294901760, %v7175_v6 }
  0x36   :  { %10929 = vst [vmem:[#allocation34_spill] sm:$0xff] %v7190_v40  ;;  %v592_v43 = vand.u32 4294901760, %v591_v47  ;;  %v480_v44 = vand.u32 4294901760, %v479_v34  ;;  %v598_v48 = vsub.f32 %v7162_v50, %v10930_v42  ;;  %5542 = vmatprep.subr.mxu0 %v7154_v25  ;;  %v7220_v34 = vand.u32 4294901760, %v7192_v57  ;;  %v7226_v47 = vld [vmem:[#allocation5] sm:$0xff] }
  0x37   :  { %v486_v54 = vsub.f32 %v7175_v6, %v10931_v4  ;;  %v7224_v42 = vsub.f32 %v7066_v19, %v7101_v27  ;;  %5543 = vmatpush3.msra.mxu0 %v7165_v56  ;;  %v10544_v4 = vand.u32 4294901760, %v7212_v11  ;;  %v7234_v38 = vand.u32 4294901760, %v7203_v62 }
  0x38   :  { %5567 = vmatprep.subr.mxu1 %v592_v43  ;;  %10932 = vst [vmem:[#allocation35_spill] sm:$0xff] %v7220_v34  ;;  %v599_v12 = vand.u32 4294901760, %v598_v48  ;;  %v10933_v43 = vand.u32 4294901760, %v7187_v3  ;;  %5544 = vmatprep.subr.mxu0 %v7178_v52  ;;  %v10935_v19 = vand.u32 4294901760, %v7198_v33  ;;  %v7243_v48 = vsub.f32 %v7089_v26, %v7120_v55 }
  0x39   :  { %5568 = vmatpush3.msra.mxu1 %v480_v44  ;;  %10934 = vst [vmem:[#allocation36_spill] sm:$0xff] %v7234_v38  ;;  %v487_v6 = vand.u32 4294901760, %v486_v54  ;;  %5545 = vmatpush3.msra.mxu0 %v7190_v40  ;;  %v612_v54 = vsub.f32 %v7212_v11, %v10544_v4  ;;  %v10936_v26 = vand.u32 4294901760, %v7224_v42 }
  0x3a   :  { %v605_v60 = vsub.f32 %v7187_v3, %v10933_v43  ;;  %v493_v27 = vsub.f32 %v7198_v33, %v10935_v19  ;;  %5569 = vmatprep.subr.mxu1 %v599_v12  ;;  %v7250_v3 = vand.u32 4294901760, %v7226_v47  ;;  %v7254_v19 = vsub.f32 %v7112_v61, %v7140_v13  ;;  %5546 = vmatprep.subr.mxu0 %v7201_v32 }
  0x3b   :  { %5570 = vmatpush3.msra.mxu1 %v487_v6  ;;  %v10545_v12 = vand.u32 4294901760, %v7243_v48  ;;  %v613_v55 = vand.u32 4294901760, %v612_v54  ;;  %5547 = vmatpush3.msra.mxu0 %v7220_v34  ;;  %v258_v61 = vrot.slane %v7029_v63, %v6928_v20  ;;  %v7275_v54 = vsub.f32 %v7133_v45, %v7165_v56 }
  0x3c   :  { %v606_v43 = vand.u32 4294901760, %v605_v60  ;;  %v494_v44 = vand.u32 4294901760, %v493_v27  ;;  %v500_v60 = vsub.f32 %v7224_v42, %v10936_v26  ;;  %v10551_v4 = vand.u32 4294901760, %v7254_v19  ;;  %5548 = vmatprep.subr.mxu0 %v7234_v38 }
  0x3d   :  { %v7267_v27 = vsub.f32 %v7122_v58, %v7154_v25  ;;  %v7279_v26 = vsub.f32 %v7146_v39, %v7178_v52  ;;  %5549 = vmatpush3.msra.mxu0 %v7250_v3  ;;  %v10555_v45 = vand.u32 4294901760, %v7275_v54 }
  0x3e   :  { %5571 = vmatprep.subr.mxu1 %v606_v43  ;;  %v501_v6 = vand.u32 4294901760, %v500_v60  ;;  %v619_v43 = vsub.f32 %v7243_v48, %v10545_v12  ;;  %v507_v58 = vsub.f32 %v7254_v19, %v10551_v4  ;;  %v7285_v60 = vand.u32 4294901760, %v258_v61  ;;  %5588 = vmatprep.subr.mxu0 %v6939_v24 }
  0x3f   :  { %5572 = vmatpush3.msra.mxu1 %v494_v44  ;;  %v266_v44 = vcombine.high %v258_v61, %v258_v61  ;;  %v10554_v12 = vand.u32 4294901760, %v7267_v27  ;;  %v10556_v39 = vand.u32 4294901760, %v7279_v26 }
  0x40   :  { %5573 = vmatprep.subr.mxu1 %v613_v55  ;;  %10937 = vst [vmem:[#allocation37_spill] sm:$0xff] %v7285_v60  ;;  %v620_v20 = vand.u32 4294901760, %v619_v43  ;;  %v7293_v55 = vsub.f32 %v7156_v35, %v7190_v40  ;;  %v508_v63 = vand.u32 4294901760, %v507_v58  ;;  %v514_v43 = vsub.f32 %v7275_v54, %v10555_v45 }
  0x41   :  { %5574 = vmatpush3.msra.mxu1 %v501_v6  ;;  %v7295_v52 = vand.u32 4294901760, %v266_v44  ;;  %v626_v4 = vsub.f32 %v7267_v27, %v10554_v12  ;;  %v7301_v6 = vsub.f32 %v258_v61, %v7285_v60  ;;  %v633_v35 = vsub.f32 %v7279_v26, %v10556_v39 }
  0x42   :  { %5575 = vmatprep.subr.mxu1 %v620_v20  ;;  %v10560_v58 = vand.u32 4294901760, %v7293_v55  ;;  %v7312_v40 = vsub.f32 %v7167_v0, %v7201_v32  ;;  %v7320_v45 = vsub.f32 %v7192_v57, %v7220_v34  ;;  %v515_v39 = vand.u32 4294901760, %v514_v43 }
  0x43   :  { %10938 = vst [vmem:[#allocation38_spill] sm:$0xff] %v7295_v52  ;;  %5576 = vmatpush3.msra.mxu1 %v508_v63  ;;  %v7315_v12 = vsub.f32 %v266_v44, %v7295_v52  ;;  %v627_v61 = vand.u32 4294901760, %v626_v4  ;;  %v10561_v20 = vand.u32 4294901760, %v7301_v6  ;;  %651 = vmatprep.mubr.f32.mxu1 %v7295_v52  ;;  %v634_v24 = vand.u32 4294901760, %v633_v35 }
  0x44   :  { %v521_v0 = vsub.f32 %v7293_v55, %v10560_v58  ;;  %v10562_v63 = vand.u32 4294901760, %v7312_v40  ;;  %v10567_v57 = vand.u32 4294901760, %v7320_v45  ;;  %v7334_v52 = vsub.f32 %v7203_v62, %v7234_v38 }
  0x45   :  { %v10570_v44 = vand.u32 4294901760, %v7315_v12  ;;  %5577 = vmatprep.subr.mxu1 %v627_v61  ;;  %v419_v4 = vsub.f32 %v7301_v6, %v10561_v20  ;;  %v7341_v58 = vsub.f32 %v7226_v47, %v7250_v3 }
  0x46   :  { %5578 = vmatpush3.msra.mxu1 %v515_v39  ;;  %v522_v43 = vand.u32 4294901760, %v521_v0  ;;  %v640_v35 = vsub.f32 %v7312_v40, %v10562_v63  ;;  %v528_v62 = vsub.f32 %v7320_v45, %v10567_v57  ;;  %v10569_v39 = vand.u32 4294901760, %v7334_v52 }
  0x47   :  { %10939 = vst [vmem:[#allocation39_spill] sm:$0xff] %v7341_v58  ;;  %v413_v61 = vsub.f32 %v7315_v12, %v10570_v44  ;;  %5579 = vmatprep.subr.mxu1 %v634_v24  ;;  %v420_v0 = vand.u32 4294901760, %v419_v4  ;;  %v10568_v63 = vand.u32 4294901760, %v7341_v58  ;;  %v10954_v44 = vld [vmem:[#allocation15_spill] sm:$0xff] }
  0x48   :  { %5580 = vmatpush3.msra.mxu1 %v522_v43  ;;  %v641_v20 = vand.u32 4294901760, %v640_v35  ;;  %v529_v34 = vand.u32 4294901760, %v528_v62  ;;  %v647_v47 = vsub.f32 %v7334_v52, %v10569_v39  ;;  %v10944_v43 = vld [vmem:[#allocation18_spill] sm:$0xff]  ;;  %v10945_v35 = vld [vmem:[#allocation19_spill] sm:$0xff]  ;;  %v10953_v39 = vld [vmem:[#allocation32_spill] sm:$0xff] }
  0x49   :  { %v414_v38 = vand.u32 4294901760, %v413_v61  ;;  %v535_v24 = vsub.f32 %v7341_v58, %v10568_v63  ;;  %v10946_v61 = vld [vmem:[#allocation21_spill] sm:$0xff]  ;;  %v10947_v62 = vld [vmem:[#allocation22_spill] sm:$0xff]  ;;  %v10952_v63 = vld [vmem:[#allocation27_spill] sm:$0xff] }
  0x4a   :  { %5581 = vmatprep.subr.mxu1 %v641_v20  ;;  %v648_v57 = vand.u32 4294901760, %v647_v47  ;;  %v10942_v20 = vld [vmem:[#allocation17_spill] sm:$0xff]  ;;  %v10949_v47 = vld [vmem:[#allocation24_spill] sm:$0xff] }
  0x4b   :  { %415 = vmatprep.mubr.f32.mxu0 %v414_v38  ;;  %5582 = vmatpush3.msra.mxu1 %v529_v34  ;;  %v536_v4 = vand.u32 4294901760, %v535_v24  ;;  %v10940_v38 = vld [vmem:[#allocation16_spill] sm:$0xff]  ;;  %v10941_v34 = vld [vmem:[#allocation31_spill] sm:$0xff]  ;;  %v10950_v24 = vld [vmem:[#allocation25_spill] sm:$0xff] }
  0x4c   :  { %421 = vmatmul.mubr.f32.vlgmr.msra.gmra.mxu0 %v420_v0  ;;  %5583 = vmatprep.subr.mxu1 %v648_v57  ;;  %v10943_v57 = vld [vmem:[#allocation33_spill] sm:$0xff]  ;;  %v10948_v0 = vld [vmem:[#allocation23_spill] sm:$0xff] }
  0x4d   :  { %5589 = vmatpush3.msra.mxu0 %v6952_v29  ;;  %5584 = vmatpush3.msra.mxu1 %v536_v4  ;;  %v10951_v4 = vld [vmem:[#allocation26_spill] sm:$0xff] }
  0x4e   :  { %5590 = vmatprep.subr.mxu0 %v6958_v31  ;;  %653 = vmatmul.mubr.f32.vlgmr.msra.gmra.mxu1 %v7285_v60  ;;  %v10955_v60 = vand.u32 4294901760, %v10954_v44  ;;  %v10962_v44 = vld [vmem:[#allocation36_spill] sm:$0xff] }
  0x4f   :  { %5591 = vmatpush3.msra.mxu0 %v6972_v37  ;;  %5623 = vmatprep.subr.mxu1 %v6914_v8 }
  0x50   :  { %5592 = vmatprep.subr.mxu0 %v6981_v41  ;;  %5624 = vmatpush3.msra.mxu1 %v6916_v9 }
  0x51   :  { %5593 = vmatpush3.msra.mxu0 %v6994_v46  ;;  %5625 = vmatprep.subr.mxu1 %v6918_v10 }
  0x52   :  { %5594 = vmatprep.subr.mxu0 %v7008_v51  ;;  %5626 = vmatpush3.msra.mxu1 %v6920_v14 }
  0x53   :  { %5595 = vmatpush3.msra.mxu0 %v7036_v2  ;;  %5627 = vmatprep.subr.mxu1 %v6922_v15 }
  0x54   :  { %5596 = vmatprep.subr.mxu0 %v7050_v7  ;;  %5628 = vmatpush3.msra.mxu1 %v6924_v16 }
  0x55   :  { %5597 = vmatpush3.msra.mxu0 %v7061_v18  ;;  %5629 = vmatprep.subr.mxu1 %v6931_v21 }
  0x56   :  { %5598 = vmatprep.subr.mxu0 %v7072_v53  ;;  %5630 = vmatpush3.msra.mxu1 %v6933_v22 }
  0x57   :  { %5599 = vmatpush3.msra.mxu0 %v7084_v59  ;;  %5631 = vmatprep.subr.mxu1 %v6936_v23 }
  0x58   :  { %5600 = vmatprep.subr.mxu0 %v7098_v5  ;;  %5632 = vmatpush3.msra.mxu1 %v6949_v28 }
  0x59   :  { %5601 = vmatpush3.msra.mxu0 %v7110_v49  ;;  %5633 = vmatprep.subr.mxu1 %v6955_v30 }
  0x5a   :  { %5602 = vmatprep.subr.mxu0 %v7131_v1  ;;  %5634 = vmatpush3.msra.mxu1 %v6969_v36 }
  0x5b   :  { %5603 = vmatpush3.msra.mxu0 %v7144_v17  ;;  %5635 = vmatprep.subr.mxu1 %v10940_v38 }
  0x5c   :  { %5604 = vmatprep.subr.mxu0 %v7162_v50  ;;  %5636 = vmatpush3.msra.mxu1 %v10942_v20 }
  0x5d   :  { %5605 = vmatpush3.msra.mxu0 %v10941_v34  ;;  %5637 = vmatprep.subr.mxu1 %v10944_v43 }
  0x5e   :  { %5606 = vmatprep.subr.mxu0 %v10943_v57  ;;  %5638 = vmatpush3.msra.mxu1 %v10945_v35 }
  0x5f   :  { %5607 = vmatpush3.msra.mxu0 %v7198_v33  ;;  %5639 = vmatprep.subr.mxu1 %v10946_v61 }
  0x60   :  { %5608 = vmatprep.subr.mxu0 %v7212_v11  ;;  %5640 = vmatpush3.msra.mxu1 %v10947_v62 }
  0x61   :  { %5609 = vmatpush3.msra.mxu0 %v7224_v42  ;;  %5641 = vmatprep.subr.mxu1 %v10948_v0 }
  0x62   :  { %5610 = vmatprep.subr.mxu0 %v7243_v48  ;;  %5642 = vmatpush3.msra.mxu1 %v10949_v47 }
  0x63   :  { %5611 = vmatpush3.msra.mxu0 %v7254_v19  ;;  %5643 = vmatprep.subr.mxu1 %v10950_v24 }
  0x64   :  { %5612 = vmatprep.subr.mxu0 %v7267_v27  ;;  %5644 = vmatpush3.msra.mxu1 %v10951_v4 }
  0x65   :  { %5613 = vmatpush3.msra.mxu0 %v7275_v54  ;;  %5645 = vmatprep.subr.mxu1 %v10952_v63  ;;  %v10956_v63 = vand.u32 4294901760, %v6952_v29  ;;  %v10963_v29 = vand.u32 4294901760, %v6994_v46  ;;  %v10969_v46 = vand.u32 4294901760, %v7061_v18  ;;  %v96_v18 = vld [vmem:[#allocation5 + $0x178] sm:$0xff] }
  0x66   :  { %5614 = vmatprep.subr.mxu0 %v7279_v26  ;;  %788 = vmatprep.mubr.f32.mxu0 %v7315_v12 }
  0x67   :  { %5615 = vmatpush3.msra.mxu0 %v7293_v55  ;;  %5646 = vmatpush3.msra.mxu1 %v7140_v13  ;;  %v10957_v13 = vld [vmem:[#allocation34_spill] sm:$0xff] }
  0x68   :  { %5616 = vmatprep.subr.mxu0 %v7312_v40  ;;  %5647 = vmatprep.subr.mxu1 %v7154_v25  ;;  %v10958_v25 = vand.u32 4294901760, %v6958_v31  ;;  %v10964_v31 = vand.u32 4294901760, %v7008_v51  ;;  %v10970_v51 = vand.u32 4294901760, %v7072_v53  ;;  %v111_v53 = vld [vmem:[#allocation5 + $0x1f0] sm:$0xff] }
  0x69   :  { %5617 = vmatpush3.msra.mxu0 %v7320_v45  ;;  %5648 = vmatpush3.msra.mxu1 %v7165_v56  ;;  %v10959_v56 = vand.u32 4294901760, %v6972_v37  ;;  %v10966_v37 = vand.u32 4294901760, %v7036_v2  ;;  %v10971_v2 = vand.u32 4294901760, %v7084_v59  ;;  %v7469_v59 = vand.u32 4294901760, %v96_v18 }
  0x6a   :  { %5618 = vmatprep.subr.mxu0 %v7334_v52  ;;  %5649 = vmatprep.subr.mxu1 %v10953_v39  ;;  %v10961_v39 = vand.u32 4294901760, %v6981_v41  ;;  %v10968_v41 = vand.u32 4294901760, %v7050_v7  ;;  %v10972_v7 = vand.u32 4294901760, %v7098_v5  ;;  %v10979_v5 = vand.u32 4294901760, %v10943_v57 }
  0x6b   :  { %5619 = vmatpush3.msra.mxu0 %v7341_v58  ;;  %5650 = vmatpush3.msra.mxu1 %v10957_v13  ;;  %v10960_v58 = vld [vmem:[#allocation35_spill] sm:$0xff]  ;;  %v10987_v57 = vand.u32 4294901760, %v7254_v19 }
  0x6c   :  { %791 = vmatmul.mubr.f32.vlgmr.msra.gmra.mxu0 %v7301_v6  ;;  %5658 = vmatprep.subr.mxu0 %v10955_v60  ;;  %v93_v60 = vld [vmem:[#allocation5 + $0x160] sm:$0xff]  ;;  %v107_v19 = vld [vmem:[#allocation5 + $0x1d0] sm:$0xff] }
  0x6d   :  { %5659 = vmatpush3.msra.mxu0 %v10956_v63  ;;  %5651 = vmatprep.subr.mxu1 %v7201_v32 }
  0x6e   :  { %5660 = vmatprep.subr.mxu0 %v10958_v25  ;;  %5652 = vmatpush3.msra.mxu1 %v10960_v58  ;;  %v10965_v25 = vand.u32 4294901760, %v7315_v12  ;;  %v10973_v12 = vand.u32 4294901760, %v7110_v49  ;;  %v10976_v49 = vand.u32 4294901760, %v7162_v50  ;;  %v10980_v50 = vand.u32 4294901760, %v7198_v33 }
  0x6f   :  { %5661 = vmatpush3.msra.mxu0 %v10959_v56  ;;  %5653 = vmatprep.subr.mxu1 %v10962_v44  ;;  %v10967_v56 = vand.u32 4294901760, %v7301_v6  ;;  %v10981_v6 = vand.u32 4294901760, %v7212_v11  ;;  %v10985_v11 = vand.u32 4294901760, %v7243_v48 }
  0x70   :  { %5662 = vmatprep.subr.mxu0 %v10961_v39  ;;  %5654 = vmatpush3.msra.mxu1 %v7250_v3  ;;  %v109_v39 = vld [vmem:[#allocation5 + $0x1e0] sm:$0xff] }
  0x71   :  { %5663 = vmatpush3.msra.mxu0 %v10963_v29  ;;  %895 = vmatprep.mubr.f32.mxu1 %v10965_v25  ;;  %v10988_v25 = vand.u32 4294901760, %v7267_v27 }
  0x72   :  { %5664 = vmatprep.subr.mxu0 %v10964_v31  ;;  %899 = vmatmul.mubr.f32.vlgmr.msra.gmra.mxu1 %v10967_v56 }
  0x73   :  { %5665 = vmatpush3.msra.mxu0 %v10966_v37  ;;  %5693 = vmatprep.subr.mxu1 %v6914_v8  ;;  %v112_v8 = vld [vmem:[#allocation5 + $0x1f8] sm:$0xff]  ;;  %v91_v37 = vld [vmem:[#allocation5 + $0x150] sm:$0xff] }
  0x74   :  { %5666 = vmatprep.subr.mxu0 %v10968_v41  ;;  %5694 = vmatpush3.msra.mxu1 %v6916_v9  ;;  %v95_v9 = vld [vmem:[#allocation5 + $0x170] sm:$0xff] }
  0x75   :  { %5667 = vmatpush3.msra.mxu0 %v10969_v46  ;;  %5695 = vmatprep.subr.mxu1 %v6918_v10  ;;  %v10974_v10 = vand.u32 4294901760, %v7131_v1  ;;  %v10978_v1 = vand.u32 4294901760, %v10941_v34  ;;  %v7531_v41 = vld [vmem:[#allocation2 + $0x8] sm:$0xff]  ;;  %v10991_v46 = vand.u32 4294901760, %v7275_v54  ;;  %v90_v54 = vld [vmem:[#allocation5 + $0x148] sm:$0xff] }
  0x76   :  { %5668 = vmatprep.subr.mxu0 %v10970_v51  ;;  %5696 = vmatpush3.msra.mxu1 %v6920_v14  ;;  %v10975_v14 = vand.u32 4294901760, %v7144_v17  ;;  %v110_v17 = vld [vmem:[#allocation5 + $0x1e8] sm:$0xff]  ;;  %10990 = vst [vmem:[#allocation19_spill] sm:$0xff] %v7531_v41  ;;  %48 = vst [vmem:[#allocation8 + $0x8] sm:$0xf] %v7531_v41  ;;  %v84_v41 = vld [vmem:[#allocation5 + $0x118] sm:$0xff] }
  0x77   :  { %5669 = vmatpush3.msra.mxu0 %v10971_v2  ;;  %5697 = vmatprep.subr.mxu1 %v6922_v15  ;;  %v7467_v15 = vand.u32 4294901760, %v112_v8 }
  0x78   :  { %5670 = vmatprep.subr.mxu0 %v10972_v7  ;;  %5698 = vmatpush3.msra.mxu1 %v6924_v16  ;;  %v7474_v16 = vand.u32 4294901760, %v95_v9 }
  0x79   :  { %5671 = vmatpush3.msra.mxu0 %v10973_v12  ;;  %5699 = vmatprep.subr.mxu1 %v6931_v21  ;;  %v7479_v21 = vand.u32 4294901760, %v111_v53  ;;  %v106_v12 = vld [vmem:[#allocation5 + $0x1c8] sm:$0xff] }
  0x7a   :  { %5672 = vmatprep.subr.mxu0 %v10974_v10  ;;  %5700 = vmatpush3.msra.mxu1 %v6933_v22  ;;  %10977 = vst [vmem:[#allocation16_spill] sm:$0xff] %v7474_v16  ;;  %v94_v22 = vld [vmem:[#allocation5 + $0x168] sm:$0xff]  ;;  %v7497_v63 = vsub.f32 %v95_v9, %v7474_v16 }
  0x7b   :  { %5673 = vmatpush3.msra.mxu0 %v10975_v14  ;;  %5701 = vmatprep.subr.mxu1 %v6936_v23  ;;  %v7488_v23 = vsub.f32 %v96_v18, %v7469_v59  ;;  %v7501_v33 = vand.u32 4294901760, %v94_v22  ;;  %v7507_v34 = vsub.f32 %v111_v53, %v7479_v21  ;;  %v7563_v18 = vand.u32 4294901760, %v91_v37  ;;  %v10999_v14 = vld [vmem:[#allocation20_spill] sm:$0xff] }
  0x7c   :  { %5674 = vmatprep.subr.mxu0 %v10976_v49  ;;  %5702 = vmatpush3.msra.mxu1 %v6949_v28  ;;  %v7491_v28 = vsub.f32 %v112_v8, %v7467_v15  ;;  %v10995_v8 = vand.u32 4294901760, %v7293_v55  ;;  %v10998_v55 = vand.u32 4294901760, %v7312_v40  ;;  %v251_v49 = vcombine.high %v10999_v14, %v10999_v14 }
  0x7d   :  { %5675 = vmatpush3.msra.mxu0 %v10978_v1  ;;  %5703 = vmatprep.subr.mxu1 %v6955_v30  ;;  %v7499_v30 = vand.u32 4294901760, %v110_v17  ;;  %10983 = vst [vmem:[#allocation17_spill] sm:$0xff] %v7501_v33  ;;  %v10581_v31 = vand.u32 4294901760, %v7488_v23  ;;  %v7523_v48 = vsub.f32 %v94_v22, %v7501_v33  ;;  %v10580_v27 = vand.u32 4294901760, %v7507_v34  ;;  %10997 = vst [vmem:[#allocation24_spill] sm:$0xff] %v7563_v18  ;;  %v11003_v22 = vld [vmem:[#allocation27_spill] sm:$0xff] }
  0x7e   :  { %5676 = vmatprep.subr.mxu0 %v10979_v5  ;;  %5704 = vmatpush3.msra.mxu1 %v6969_v36  ;;  %v10984_v36 = vand.u32 4294901760, %v7224_v42  ;;  %v108_v42 = vld [vmem:[#allocation5 + $0x1d8] sm:$0xff]  ;;  %v10582_v29 = vand.u32 4294901760, %v7491_v28  ;;  %v11000_v40 = vand.u32 4294901760, %v7320_v45  ;;  %v7588_v1 = vand.u32 4294901760, %v90_v54  ;;  %v105_v45 = vld [vmem:[#allocation5 + $0x1c0] sm:$0xff] }
  0x7f   :  { %5677 = vmatpush3.msra.mxu0 %v10980_v50  ;;  %5705 = vmatprep.subr.mxu1 %v10940_v38  ;;  %10982 = vst [vmem:[#allocation31_spill] sm:$0xff] %v7499_v30  ;;  %v7512_v38 = vand.u32 4294901760, %v93_v60  ;;  %v7529_v56 = vsub.f32 %v110_v17, %v7499_v30  ;;  %v7544_v2 = vand.u32 4294901760, %v108_v42  ;;  %v10578_v10 = vand.u32 4294901760, %v7523_v48 }
  0x80   :  { %5678 = vmatprep.subr.mxu0 %v10981_v6  ;;  %5706 = vmatpush3.msra.mxu1 %v10942_v20  ;;  %v92_v20 = vld [vmem:[#allocation5 + $0x158] sm:$0xff]  ;;  %11001 = vst [vmem:[#allocation25_spill] sm:$0xff] %v7588_v1  ;;  %v11002_v17 = vand.u32 4294901760, %v7334_v52  ;;  %v7596_v50 = vand.u32 4294901760, %v106_v12 }
  0x81   :  { %5679 = vmatpush3.msra.mxu0 %v10984_v36  ;;  %5707 = vmatprep.subr.mxu1 %v10944_v43  ;;  %10986 = vst [vmem:[#allocation33_spill] sm:$0xff] %v7512_v38  ;;  %v7525_v43 = vand.u32 4294901760, %v109_v39  ;;  %v7542_v51 = vsub.f32 %v93_v60, %v7512_v38  ;;  %10993 = vst [vmem:[#allocation21_spill] sm:$0xff] %v7544_v2  ;;  %v7546_v7 = vand.u32 4294901760, %v92_v20  ;;  %v10577_v9 = vand.u32 4294901760, %v7529_v56  ;;  %v89_v60 = vld [vmem:[#allocation5 + $0x140] sm:$0xff] }
  0x82   :  { %5680 = vmatprep.subr.mxu0 %v10985_v11  ;;  %5708 = vmatpush3.msra.mxu1 %v10945_v35  ;;  %v10579_v35 = vand.u32 4294901760, %v7497_v63  ;;  %11004 = vst [vmem:[#allocation26_spill] sm:$0xff] %v7596_v50  ;;  %v7600_v6 = vsub.f32 %v108_v42, %v7544_v2  ;;  %v11005_v36 = vld [vmem:[#allocation39_spill] sm:$0xff]  ;;  %v11007_v11 = vld [vmem:[#allocation38_spill] sm:$0xff]  ;;  %v11009_v42 = vld [vmem:[#allocation37_spill] sm:$0xff] }
  0x83   :  { %5681 = vmatpush3.msra.mxu0 %v10987_v57  ;;  %5709 = vmatprep.subr.mxu1 %v10946_v61  ;;  %10989 = vst [vmem:[#allocation18_spill] sm:$0xff] %v7525_v43  ;;  %v10992_v61 = vand.u32 4294901760, %v7279_v26  ;;  %10994 = vst [vmem:[#allocation22_spill] sm:$0xff] %v7546_v7  ;;  %v7554_v26 = vsub.f32 %v7491_v28, %v10582_v29  ;;  %v7576_v53 = vsub.f32 %v109_v39, %v7525_v43  ;;  %v11022_v29 = vld [vmem:[#allocation14_spill] sm:$0xff] }
  0x84   :  { %5682 = vmatprep.subr.mxu0 %v10988_v25  ;;  %5710 = vmatpush3.msra.mxu1 %v10947_v62  ;;  %v7559_v62 = vsub.f32 %v7488_v23, %v10581_v31  ;;  %v7594_v5 = vsub.f32 %v92_v20, %v7546_v7  ;;  %v11006_v39 = vand.u32 4294901760, %v11005_v36  ;;  %v7608_v20 = vsub.f32 %v91_v37, %v7563_v18  ;;  %v88_v25 = vld [vmem:[#allocation5 + $0x138] sm:$0xff] }
  0x85   :  { %5683 = vmatpush3.msra.mxu0 %v10991_v46  ;;  %5711 = vmatprep.subr.mxu1 %v10948_v0  ;;  %v7561_v0 = vand.u32 4294901760, %v107_v19  ;;  %v7624_v37 = vsub.f32 %v7523_v48, %v10578_v10  ;;  %v10584_v14 = vand.u32 4294901760, %v7576_v53  ;;  %v7631_v36 = vsub.f32 %v90_v54, %v7588_v1  ;;  %v11016_v31 = vld [vmem:[#allocation32_spill] sm:$0xff] }
  0x86   :  { %5684 = vmatprep.subr.mxu0 %v10992_v61  ;;  %5712 = vmatpush3.msra.mxu1 %v10949_v47  ;;  %v7571_v47 = vsub.f32 %v7497_v63, %v10579_v35  ;;  %v11008_v61 = vld [vmem:[#allocation28_spill] sm:$0xff]  ;;  %v7645_v35 = vand.u32 4294901760, %v88_v25  ;;  %v7682_v54 = vrot.slane %v251_v49, %v11022_v29  ;;  %v11028_v29 = vand.u32 4294901760, %v7554_v26 }
  0x87   :  { %5685 = vmatpush3.msra.mxu0 %v10995_v8  ;;  %10996 = vst [vmem:[#allocation23_spill] sm:$0xff] %v7561_v0  ;;  %5713 = vmatprep.subr.mxu1 %v10950_v24  ;;  %v7586_v24 = vsub.f32 %v7507_v34, %v10580_v27  ;;  %v7611_v46 = vsub.f32 %v107_v19, %v7561_v0  ;;  %v104_v19 = vld [vmem:[#allocation5 + $0x1b8] sm:$0xff]  ;;  %11011 = vst [vmem:[#allocation15_spill] sm:$0xff] %v7631_v36  ;;  %v7648_v27 = vld [vmem:[#allocation5 + $0x1b0] sm:$0xff] }
  0x88   :  { %5686 = vmatprep.subr.mxu0 %v10998_v55  ;;  %5714 = vmatpush3.msra.mxu1 %v10951_v4  ;;  %v10583_v4 = vand.u32 4294901760, %v7542_v51  ;;  %v7619_v55 = vsub.f32 %v7529_v56, %v10577_v9  ;;  %v11014_v9 = vld [vmem:[#allocation30_spill] sm:$0xff]  ;;  %11015 = vst [vmem:[#allocation36_spill] sm:$0xff] %v7645_v35  ;;  %v85_v49 = vld [vmem:[#allocation5 + $0x120] sm:$0xff] }
  0x89   :  { %5687 = vmatpush3.msra.mxu0 %v11000_v40  ;;  %5715 = vmatprep.subr.mxu1 %v11003_v22  ;;  %v87_v40 = vld [vmem:[#allocation5 + $0x130] sm:$0xff]  ;;  %v86_v22 = vld [vmem:[#allocation5 + $0x128] sm:$0xff] }
  0x8a   :  { %5688 = vmatprep.subr.mxu0 %v11002_v17  ;;  %1065 = vmatprep.mubr.f32.mxu0 %v11007_v11  ;;  %v11010_v17 = vld [vmem:[#allocation29_spill] sm:$0xff]  ;;  %v7642_v10 = vsub.f32 %v7542_v51, %v10583_v4  ;;  %v7655_v8 = vand.u32 4294901760, %v87_v40  ;;  %v7658_v4 = vsub.f32 %v106_v12, %v7596_v50 }
  0x8b   :  { %5689 = vmatpush3.msra.mxu0 %v11006_v39  ;;  %5716 = vmatpush3.msra.mxu1 %v11008_v61  ;;  %v7633_v39 = vand.u32 4294901760, %v105_v45  ;;  %v7635_v61 = vand.u32 4294901760, %v89_v60 }
  0x8c   :  { %1067 = vmatmul.mubr.f32.vlgmr.msra.gmra.mxu0 %v11009_v42  ;;  %5717 = vmatprep.subr.mxu1 %v11010_v17  ;;  %v10585_v17 = vand.u32 4294901760, %v7600_v6  ;;  %11018 = vst [vmem:[#allocation27_spill] sm:$0xff] %v7655_v8 }
  0x8d   :  { %5728 = vmatprep.subr.mxu0 %v7467_v15  ;;  %11012 = vst [vmem:[#allocation34_spill] sm:$0xff] %v7633_v39  ;;  %11013 = vst [vmem:[#allocation35_spill] sm:$0xff] %v7635_v61  ;;  %5718 = vmatpush3.msra.mxu1 %v11014_v9  ;;  %v7652_v9 = vand.u32 4294901760, %v104_v19  ;;  %v7673_v12 = vsub.f32 %v89_v60, %v7635_v61  ;;  %v7679_v57 = vsub.f32 %v105_v45, %v7633_v39 }
  0x8e   :  { %5729 = vmatpush3.msra.mxu0 %v7469_v59  ;;  %5719 = vmatprep.subr.mxu1 %v11016_v31  ;;  %v7667_v31 = vsub.f32 %v7576_v53, %v10584_v14  ;;  %v7690_v60 = vsub.f32 %v7600_v6, %v10585_v17  ;;  %v7693_v14 = vsub.f32 %v88_v25, %v7645_v35  ;;  %v11023_v45 = vand.u32 4294901760, %v7594_v5  ;;  %v102_v25 = vld [vmem:[#allocation5 + $0x1a8] sm:$0xff] }
  0x8f   :  { %5730 = vmatprep.subr.mxu0 %v7479_v21  ;;  %11017 = vst [vmem:[#allocation20_spill] sm:$0xff] %v7652_v9  ;;  %5720 = vmatpush3.msra.mxu1 %v10957_v13  ;;  %11019 = vst [vmem:[#allocation39_spill] sm:$0xff] %v7673_v12  ;;  %v7676_v13 = vand.u32 4294901760, %v7648_v27  ;;  %v7708_v17 = vsub.f32 %v87_v40, %v7655_v8  ;;  %v7723_v40 = vsub.f32 %v104_v19, %v7652_v9 }
  0x90   :  { %5731 = vmatpush3.msra.mxu0 %v7474_v16  ;;  %5721 = vmatprep.subr.mxu1 %v7201_v32  ;;  %11021 = vst [vmem:[#allocation28_spill] sm:$0xff] %v7679_v57  ;;  %v7698_v52 = vsub.f32 %v7594_v5, %v11023_v45  ;;  %v101_v45 = vld [vmem:[#allocation5 + $0x1a0] sm:$0xff]  ;;  %v1433_v19 = vand.u32 4294901760, %v7690_v60  ;;  %v100_v60 = vld [vmem:[#allocation5 + $0x198] sm:$0xff]  ;;  %v7756_v16 = vand.u32 4294901760, %v84_v41 }
  0x91   :  { %5732 = vmatprep.subr.mxu0 %v7499_v30  ;;  %11020 = vst [vmem:[#allocation38_spill] sm:$0xff] %v7676_v13  ;;  %5722 = vmatpush3.msra.mxu1 %v10960_v58  ;;  %v11024_v58 = vand.u32 4294901760, %v7611_v46  ;;  %v7738_v30 = vand.u32 4294901760, %v102_v25 }
  0x92   :  { %5733 = vmatpush3.msra.mxu0 %v7501_v33  ;;  %5723 = vmatprep.subr.mxu1 %v10962_v44  ;;  %v1426_v44 = vand.u32 4294901760, %v7667_v31  ;;  %v7720_v33 = vand.u32 4294901760, %v86_v22  ;;  %v11030_v31 = vand.u32 4294901760, %v7559_v62  ;;  %v11033_v62 = vand.u32 4294901760, %v7586_v24 }
  0x93   :  { %5734 = vmatprep.subr.mxu0 %v7525_v43  ;;  %v7705_v32 = vsub.f32 %v7611_v46, %v11024_v58  ;;  %5724 = vmatpush3.msra.mxu1 %v7250_v3  ;;  %v11025_v43 = vand.u32 4294901760, %v7608_v20  ;;  %11029 = vst [vmem:[#allocation30_spill] sm:$0xff] %v7738_v30  ;;  %v11035_v24 = vand.u32 4294901760, %v7679_v57 }
  0x94   :  { %1169 = vmatprep.mubr.f32.mxu1 %v11007_v11  ;;  %11026 = vst [vmem:[#allocation37_spill] sm:$0xff] %v7720_v33  ;;  %5735 = vmatpush3.msra.mxu0 %v7512_v38  ;;  %v7728_v11 = vand.u32 4294901760, %v85_v49  ;;  %v1321_v38 = vand.u32 4294901760, %v7698_v52 }
  0x95   :  { %v7718_v58 = vsub.f32 %v7608_v20, %v11025_v43  ;;  %1171 = vmatmul.mubr.f32.vlgmr.msra.gmra.mxu1 %v11009_v42  ;;  %v267_v43 = vcombine.high %v7682_v54, %v7682_v54  ;;  %5736 = vmatprep.subr.mxu0 %v7544_v2  ;;  %v7740_v42 = vand.u32 4294901760, %v101_v45  ;;  %v1440_v3 = vand.u32 4294901760, %v7705_v32 }
  0x96   :  { %11027 = vst [vmem:[#allocation29_spill] sm:$0xff] %v7728_v11  ;;  %5763 = vmatprep.subr.mxu1 %v11028_v29  ;;  %5737 = vmatpush3.msra.mxu0 %v7546_v7  ;;  %v11031_v2 = vand.u32 4294901760, %v7658_v4  ;;  %v11032_v29 = vand.u32 4294901760, %v7631_v36  ;;  %v7768_v7 = vsub.f32 %v7648_v27, %v7676_v13 }
  0x97   :  { %5764 = vmatpush3.msra.mxu1 %v11030_v31  ;;  %5738 = vmatprep.subr.mxu0 %v7561_v0  ;;  %v1328_v32 = vand.u32 4294901760, %v7718_v58  ;;  %v7763_v31 = vsub.f32 %v86_v22, %v7720_v33  ;;  %v7779_v22 = vsub.f32 %v85_v49, %v7728_v11  ;;  %v11036_v58 = vand.u32 4294901760, %v7673_v12 }
  0x98   :  { %v7749_v26 = vsub.f32 %v7658_v4, %v11031_v2  ;;  %v7754_v52 = vsub.f32 %v7631_v36, %v11032_v29  ;;  %5765 = vmatprep.subr.mxu1 %v11033_v62  ;;  %v83_v29 = vld [vmem:[#allocation5 + $0x110] sm:$0xff]  ;;  %5739 = vmatpush3.msra.mxu0 %v7563_v18  ;;  %v11034_v36 = vand.u32 4294901760, %v7571_v47  ;;  %v7776_v62 = vsub.f32 %v7679_v57, %v11035_v24 }
  0x99   :  { %v7784_v2 = vsub.f32 %v7673_v12, %v11036_v58  ;;  %v7786_v27 = vand.u32 4294901760, %v267_v43  ;;  %5740 = vmatprep.subr.mxu0 %v7596_v50  ;;  %v11038_v47 = vand.u32 4294901760, %v7619_v55  ;;  %v99_v18 = vld [vmem:[#allocation5 + $0x190] sm:$0xff]  ;;  %v7795_v49 = vsub.f32 %v102_v25, %v7738_v30  ;;  %v98_v12 = vld [vmem:[#allocation5 + $0x188] sm:$0xff] }
  0x9a   :  { %5766 = vmatpush3.msra.mxu1 %v11034_v36  ;;  %v7791_v36 = vand.u32 4294901760, %v100_v60  ;;  %v7798_v0 = vand.u32 4294901760, %v7682_v54  ;;  %5741 = vmatpush3.msra.mxu0 %v7588_v1  ;;  %v11040_v58 = vand.u32 4294901760, %v7624_v37  ;;  %v1447_v50 = vand.u32 4294901760, %v7749_v26  ;;  %v82_v26 = vld [vmem:[#allocation5 + $0x108] sm:$0xff] }
  0x9b   :  { %11037 = vst [vmem:[#allocation32_spill] sm:$0xff] %v7786_v27  ;;  %5767 = vmatprep.subr.mxu1 %v11038_v47  ;;  %v1335_v55 = vand.u32 4294901760, %v7754_v52  ;;  %v7806_v47 = vsub.f32 %v84_v41, %v7756_v16  ;;  %v7808_v24 = vand.u32 4294901760, %v83_v29  ;;  %5742 = vmatprep.subr.mxu0 %v7633_v39  ;;  %v11041_v25 = vand.u32 4294901760, %v7723_v40 }
  0x9c   :  { %11039 = vst [vmem:[#allocation40_spill] sm:$0xff] %v7798_v0  ;;  %5768 = vmatpush3.msra.mxu1 %v11040_v58  ;;  %v7817_v52 = vsub.f32 %v101_v45, %v7740_v42  ;;  %5743 = vmatpush3.msra.mxu0 %v7635_v61  ;;  %v11042_v41 = vand.u32 4294901760, %v7642_v10  ;;  %v1454_v39 = vand.u32 4294901760, %v7776_v62  ;;  %v7824_v57 = vand.u32 4294901760, %v99_v18  ;;  %v81_v62 = vld [vmem:[#allocation5 + $0x100] sm:$0xff] }
  0x9d   :  { %5769 = vmatprep.subr.mxu1 %v1426_v44  ;;  %v1460_v1 = vsub.f32 %v7723_v40, %v11041_v25  ;;  %v1342_v44 = vand.u32 4294901760, %v7784_v2  ;;  %v7827_v25 = vsub.f32 %v267_v43, %v7786_v27  ;;  %5744 = vmatprep.subr.mxu0 %v7652_v9  ;;  %v11044_v45 = vand.u32 4294901760, %v7693_v14 }
  0x9e   :  { %5770 = vmatpush3.msra.mxu1 %v11042_v41  ;;  %11043 = vst [vmem:[#allocation41_spill] sm:$0xff] %v7824_v57  ;;  %v7833_v37 = vand.u32 4294901760, %v98_v12  ;;  %v97_v41 = vld [vmem:[#allocation5 + $0x180] sm:$0xff]  ;;  %v7838_v2 = vsub.f32 %v7682_v54, %v7798_v0  ;;  %5745 = vmatpush3.msra.mxu0 %v7645_v35  ;;  %v7842_v43 = vsub.f32 %v83_v29, %v7808_v24  ;;  %v11045_v54 = vand.u32 4294901760, %v7768_v7 }
  0x9f   :  { %5771 = vmatprep.subr.mxu1 %v1433_v19  ;;  %v1348_v58 = vsub.f32 %v7693_v14, %v11044_v45  ;;  %v7844_v19 = vand.u32 4294901760, %v82_v26  ;;  %v7848_v9 = vsub.f32 %v100_v60, %v7791_v36  ;;  %5746 = vmatprep.subr.mxu0 %v7676_v13  ;;  %v1461_v10 = vand.u32 4294901760, %v1460_v1 }
  0xa0   :  { %5772 = vmatpush3.msra.mxu1 %v1321_v38  ;;  %v1467_v61 = vsub.f32 %v7768_v7, %v11045_v54  ;;  %v11046_v38 = vand.u32 4294901760, %v7708_v17  ;;  %5747 = vmatpush3.msra.mxu0 %v7655_v8  ;;  %v7859_v45 = vand.u32 4294901760, %v97_v41  ;;  %v7861_v60 = vand.u32 4294901760, %v81_v62 }
  0xa1   :  { %5773 = vmatprep.subr.mxu1 %v1440_v3  ;;  %v7865_v1 = vsub.f32 %v99_v18, %v7824_v57  ;;  %5748 = vmatprep.subr.mxu0 %v7738_v30  ;;  %v1349_v54 = vand.u32 4294901760, %v1348_v58  ;;  %v7875_v3 = vsub.f32 %v82_v26, %v7844_v19  ;;  %v11048_v18 = vand.u32 4294901760, %v7763_v31 }
  0xa2   :  { %v1355_v29 = vsub.f32 %v7708_v17, %v11046_v38  ;;  %5774 = vmatpush3.msra.mxu1 %v1328_v32  ;;  %v11047_v38 = vand.u32 4294901760, %v7795_v49  ;;  %5749 = vmatpush3.msra.mxu0 %v7720_v33  ;;  %v7882_v58 = vsub.f32 %v98_v12, %v7833_v37  ;;  %v11049_v8 = vand.u32 4294901760, %v7817_v52 }
  0xa3   :  { %5775 = vmatprep.subr.mxu1 %v1447_v50  ;;  %v1362_v30 = vsub.f32 %v7763_v31, %v11048_v18  ;;  %5750 = vmatprep.subr.mxu0 %v7740_v42  ;;  %v7891_v18 = vsub.f32 %v81_v62, %v7861_v60  ;;  %v11051_v12 = vand.u32 4294901760, %v7827_v25  ;;  %v11054_v62 = vand.u32 4294901760, %v7838_v2 }
  0xa4   :  { %v1474_v35 = vsub.f32 %v7795_v49, %v11047_v38  ;;  %5776 = vmatpush3.msra.mxu1 %v1335_v55  ;;  %v1468_v38 = vand.u32 4294901760, %v1467_v61  ;;  %v1356_v32 = vand.u32 4294901760, %v1355_v29  ;;  %v1481_v55 = vsub.f32 %v7817_v52, %v11049_v8  ;;  %5751 = vmatpush3.msra.mxu0 %v7728_v11 }
  0xa5   :  { %5777 = vmatprep.subr.mxu1 %v1454_v39  ;;  %11050 = vst [vmem:[#allocation42_spill] sm:$0xff] %v7891_v18  ;;  %v1275_v50 = vsub.f32 %v7827_v25, %v11051_v12  ;;  %v7898_v61 = vsub.f32 %v97_v41, %v7859_v45  ;;  %5752 = vmatprep.subr.mxu0 %v7791_v36  ;;  %v11053_v29 = vand.u32 4294901760, %v7779_v22  ;;  %v1363_v12 = vand.u32 4294901760, %v1362_v30 }
  0xa6   :  { %5778 = vmatpush3.msra.mxu1 %v1342_v44  ;;  %v1475_v8 = vand.u32 4294901760, %v1474_v35  ;;  %v1281_v26 = vsub.f32 %v7838_v2, %v11054_v62  ;;  %5753 = vmatpush3.msra.mxu0 %v7756_v16  ;;  %v11055_v41 = vand.u32 4294901760, %v7848_v9  ;;  %v10632_v11 = vand.u32 4294901760, %v7891_v18 }
  0xa7   :  { %11052 = vst [vmem:[#allocation43_spill] sm:$0xff] %v7898_v61  ;;  %5779 = vmatprep.subr.mxu1 %v1461_v10  ;;  %v1369_v44 = vsub.f32 %v7779_v22, %v11053_v29  ;;  %5754 = vmatprep.subr.mxu0 %v7824_v57  ;;  %v1482_v10 = vand.u32 4294901760, %v1481_v55  ;;  %v11056_v29 = vand.u32 4294901760, %v7806_v47  ;;  %v1276_v30 = vand.u32 4294901760, %v1275_v50 }
  0xa8   :  { %5780 = vmatpush3.msra.mxu1 %v1349_v54  ;;  %v1488_v39 = vsub.f32 %v7848_v9, %v11055_v41  ;;  %5755 = vmatpush3.msra.mxu0 %v7808_v24  ;;  %v11057_v54 = vand.u32 4294901760, %v7865_v1  ;;  %v10633_v35 = vand.u32 4294901760, %v7898_v61  ;;  %v1282_v55 = vand.u32 4294901760, %v1281_v26 }
  0xa9   :  { %5781 = vmatprep.subr.mxu1 %v1468_v38  ;;  %v1376_v62 = vsub.f32 %v7806_v47, %v11056_v29  ;;  %5756 = vmatprep.subr.mxu0 %v7833_v37  ;;  %v1370_v38 = vand.u32 4294901760, %v1369_v44  ;;  %v11058_v57 = vand.u32 4294901760, %v7842_v43  ;;  %v11059_v50 = vand.u32 4294901760, %v7882_v58 }
  0xaa   :  { %5782 = vmatpush3.msra.mxu1 %v1356_v32  ;;  %v1495_v41 = vsub.f32 %v7865_v1, %v11057_v54  ;;  %5757 = vmatpush3.msra.mxu0 %v7844_v19  ;;  %v1489_v32 = vand.u32 4294901760, %v1488_v39  ;;  %v11060_v26 = vand.u32 4294901760, %v7875_v3  ;;  %v1509_v39 = vsub.f32 %v7898_v61, %v10633_v35  ;;  %v11078_v35 = vld [vmem:[#allocation36_spill] sm:$0xff] }
  0xab   :  { %5783 = vmatprep.subr.mxu1 %v1475_v8  ;;  %v1383_v29 = vsub.f32 %v7842_v43, %v11058_v57  ;;  %v1502_v54 = vsub.f32 %v7882_v58, %v11059_v50  ;;  %5758 = vmatprep.subr.mxu0 %v7859_v45  ;;  %v1377_v8 = vand.u32 4294901760, %v1376_v62  ;;  %v11064_v50 = vld [vmem:[#allocation17_spill] sm:$0xff] }
  0xac   :  { %5784 = vmatpush3.msra.mxu1 %v1363_v12  ;;  %v1390_v44 = vsub.f32 %v7875_v3, %v11060_v26  ;;  %5759 = vmatpush3.msra.mxu0 %v7861_v60  ;;  %v1496_v57 = vand.u32 4294901760, %v1495_v41  ;;  %v1510_v41 = vand.u32 4294901760, %v1509_v39  ;;  %v11067_v26 = vld [vmem:[#allocation39_spill] sm:$0xff]  ;;  %v11070_v39 = vld [vmem:[#allocation22_spill] sm:$0xff] }
  0xad   :  { %5785 = vmatprep.subr.mxu1 %v1482_v10  ;;  %1277 = vmatprep.mubr.f32.mxu0 %v1276_v30  ;;  %v1384_v12 = vand.u32 4294901760, %v1383_v29  ;;  %v1397_v10 = vsub.f32 %v7891_v18, %v10632_v11  ;;  %v1503_v62 = vand.u32 4294901760, %v1502_v54  ;;  %v11062_v29 = vld [vmem:[#allocation31_spill] sm:$0xff]  ;;  %v11065_v54 = vld [vmem:[#allocation28_spill] sm:$0xff] }
  0xae   :  { %5786 = vmatpush3.msra.mxu1 %v1370_v38  ;;  %1283 = vmatmul.mubr.f32.vlgmr.msra.gmra.mxu0 %v1282_v55  ;;  %v1391_v30 = vand.u32 4294901760, %v1390_v44  ;;  %v11061_v55 = vld [vmem:[#allocation16_spill] sm:$0xff]  ;;  %v11068_v44 = vld [vmem:[#allocation33_spill] sm:$0xff] }
  0xaf   :  { %5787 = vmatprep.subr.mxu1 %v1489_v32  ;;  %5798 = vmatprep.subr.mxu0 %v7491_v28  ;;  %v1398_v38 = vand.u32 4294901760, %v1397_v10  ;;  %v11063_v32 = vld [vmem:[#allocation15_spill] sm:$0xff]  ;;  %v11072_v10 = vld [vmem:[#allocation24_spill] sm:$0xff] }
  0xb0   :  { %5788 = vmatpush3.msra.mxu1 %v1377_v8  ;;  %5799 = vmatpush3.msra.mxu0 %v7488_v23  ;;  %v11066_v8 = vld [vmem:[#allocation18_spill] sm:$0xff]  ;;  %v11077_v11 = vld [vmem:[#allocation20_spill] sm:$0xff] }
  0xb1   :  { %5789 = vmatprep.subr.mxu1 %v1496_v57  ;;  %5800 = vmatprep.subr.mxu0 %v7507_v34  ;;  %v11069_v57 = vld [vmem:[#allocation21_spill] sm:$0xff] }
  0xb2   :  { %5790 = vmatpush3.msra.mxu1 %v1384_v12  ;;  %5801 = vmatpush3.msra.mxu0 %v7497_v63  ;;  %v11071_v12 = vld [vmem:[#allocation23_spill] sm:$0xff] }
  0xb3   :  { %5791 = vmatprep.subr.mxu1 %v1503_v62  ;;  %5802 = vmatprep.subr.mxu0 %v7529_v56  ;;  %v11073_v62 = vld [vmem:[#allocation26_spill] sm:$0xff] }
  0xb4   :  { %5792 = vmatpush3.msra.mxu1 %v1391_v30  ;;  %5803 = vmatpush3.msra.mxu0 %v7523_v48  ;;  %v11074_v30 = vld [vmem:[#allocation25_spill] sm:$0xff] }
  0xb5   :  { %5793 = vmatprep.subr.mxu1 %v1510_v41  ;;  %5804 = vmatprep.subr.mxu0 %v7576_v53  ;;  %v11075_v41 = vld [vmem:[#allocation34_spill] sm:$0xff] }
  0xb6   :  { %5794 = vmatpush3.msra.mxu1 %v1398_v38  ;;  %1513 = vmatprep.mubr.f32.mxu1 %v7786_v27  ;;  %v11076_v38 = vld [vmem:[#allocation35_spill] sm:$0xff]  ;;  %v11080_v27 = vld [vmem:[#allocation30_spill] sm:$0xff] }
  0xb7   :  { %5805 = vmatpush3.msra.mxu0 %v7542_v51  ;;  %1515 = vmatmul.mubr.f32.vlgmr.msra.gmra.mxu1 %v7798_v0  ;;  %v11079_v0 = vld [vmem:[#allocation27_spill] sm:$0xff] }
  0xb8   :  { %5806 = vmatprep.subr.mxu0 %v7600_v6  ;;  %5833 = vmatprep.subr.mxu1 %v7467_v15 }
  0xb9   :  { %5807 = vmatpush3.msra.mxu0 %v7594_v5  ;;  %5834 = vmatpush3.msra.mxu1 %v7469_v59 }
  0xba   :  { %5808 = vmatprep.subr.mxu0 %v7611_v46  ;;  %5835 = vmatprep.subr.mxu1 %v7479_v21 }
  0xbb   :  { %5809 = vmatpush3.msra.mxu0 %v7608_v20  ;;  %5836 = vmatpush3.msra.mxu1 %v11061_v55 }
  0xbc   :  { %5810 = vmatprep.subr.mxu0 %v7658_v4  ;;  %5837 = vmatprep.subr.mxu1 %v11062_v29 }
  0xbd   :  { %5811 = vmatpush3.msra.mxu0 %v11063_v32  ;;  %5838 = vmatpush3.msra.mxu1 %v11064_v50 }
  0xbe   :  { %5812 = vmatprep.subr.mxu0 %v11065_v54  ;;  %5839 = vmatprep.subr.mxu1 %v11066_v8 }
  0xbf   :  { %5813 = vmatpush3.msra.mxu0 %v11067_v26  ;;  %5840 = vmatpush3.msra.mxu1 %v11068_v44 }
  0xc0   :  { %5814 = vmatprep.subr.mxu0 %v7723_v40  ;;  %5841 = vmatprep.subr.mxu1 %v11069_v57 }
  0xc1   :  { %5815 = vmatpush3.msra.mxu0 %v7693_v14  ;;  %5842 = vmatpush3.msra.mxu1 %v11070_v39 }
  0xc2   :  { %5816 = vmatprep.subr.mxu0 %v7768_v7  ;;  %5843 = vmatprep.subr.mxu1 %v11071_v12 }
  0xc3   :  { %5817 = vmatpush3.msra.mxu0 %v7708_v17  ;;  %5844 = vmatpush3.msra.mxu1 %v11072_v10 }
  0xc4   :  { %5818 = vmatprep.subr.mxu0 %v7795_v49  ;;  %5845 = vmatprep.subr.mxu1 %v11073_v62 }
  0xc5   :  { %5819 = vmatpush3.msra.mxu0 %v7763_v31  ;;  %5846 = vmatpush3.msra.mxu1 %v11074_v30 }
  0xc6   :  { %5820 = vmatprep.subr.mxu0 %v7817_v52  ;;  %5847 = vmatprep.subr.mxu1 %v11075_v41 }
  0xc7   :  { %5821 = vmatpush3.msra.mxu0 %v7779_v22  ;;  %5848 = vmatpush3.msra.mxu1 %v11076_v38 }
  0xc8   :  { %5822 = vmatprep.subr.mxu0 %v7848_v9  ;;  %5849 = vmatprep.subr.mxu1 %v11077_v11 }
  0xc9   :  { %5823 = vmatpush3.msra.mxu0 %v7806_v47  ;;  %5850 = vmatpush3.msra.mxu1 %v11078_v35 }
  0xca   :  { %5824 = vmatprep.subr.mxu0 %v7865_v1  ;;  %5851 = vmatprep.subr.mxu1 %v7676_v13  ;;  %v11081_v13 = vld [vmem:[#allocation29_spill] sm:$0xff] }
  0xcb   :  { %5825 = vmatpush3.msra.mxu0 %v7842_v43  ;;  %5852 = vmatpush3.msra.mxu1 %v11079_v0 }
  0xcc   :  { %5826 = vmatprep.subr.mxu0 %v7882_v58  ;;  %5853 = vmatprep.subr.mxu1 %v11080_v27  ;;  %v11082_v27 = vand.u32 4294901760, %v7491_v28  ;;  %v11087_v28 = vand.u32 4294901760, %v7529_v56  ;;  %v11092_v56 = vand.u32 4294901760, %v7838_v2 }
  0xcd   :  { %5827 = vmatpush3.msra.mxu0 %v7875_v3  ;;  %5854 = vmatpush3.msra.mxu1 %v7720_v33  ;;  %v11083_v33 = vand.u32 4294901760, %v7488_v23  ;;  %v11088_v23 = vand.u32 4294901760, %v7523_v48  ;;  %v11094_v48 = vand.u32 4294901760, %v7594_v5  ;;  %v11099_v5 = vand.u32 4294901760, %v11065_v54 }
  0xce   :  { %5828 = vmatprep.subr.mxu0 %v7898_v61  ;;  %5855 = vmatprep.subr.mxu1 %v7740_v42  ;;  %v11084_v61 = vld [vmem:[#allocation41_spill] sm:$0xff]  ;;  %v11104_v54 = vand.u32 4294901760, %v7708_v17 }
  0xcf   :  { %5829 = vmatpush3.msra.mxu0 %v7891_v18  ;;  %1650 = vmatprep.mubr.f32.mxu0 %v7827_v25  ;;  %v11085_v18 = vand.u32 4294901760, %v7507_v34  ;;  %v11091_v34 = vand.u32 4294901760, %v7542_v51  ;;  %v11096_v51 = vand.u32 4294901760, %v7608_v20  ;;  %v11100_v20 = vand.u32 4294901760, %v11067_v26 }
  0xd0   :  { %5856 = vmatpush3.msra.mxu1 %v11081_v13  ;;  %1653 = vmatmul.mubr.f32.vlgmr.msra.gmra.mxu0 %v7838_v2  ;;  %v11086_v13 = vand.u32 4294901760, %v7497_v63  ;;  %v11090_v63 = vand.u32 4294901760, %v7827_v25  ;;  %v142_v2 = vld [vmem:[#allocation5 + $0x2e8] sm:$0xff]  ;;  %v11106_v26 = vand.u32 4294901760, %v7795_v49  ;;  %v11109_v49 = vand.u32 4294901760, %v7817_v52  ;;  %v123_v52 = vld [vmem:[#allocation5 + $0x250] sm:$0xff] }
  0xd1   :  { %5857 = vmatprep.subr.mxu1 %v7791_v36  ;;  %5868 = vmatprep.subr.mxu0 %v11082_v27  ;;  %v11101_v27 = vand.u32 4294901760, %v7723_v40 }
  0xd2   :  { %5858 = vmatpush3.msra.mxu1 %v7756_v16  ;;  %5869 = vmatpush3.msra.mxu0 %v11083_v33  ;;  %v11089_v33 = vand.u32 4294901760, %v7576_v53  ;;  %v11095_v53 = vand.u32 4294901760, %v7611_v46  ;;  %v127_v46 = vld [vmem:[#allocation5 + $0x270] sm:$0xff] }
  0xd3   :  { %5859 = vmatprep.subr.mxu1 %v11084_v61  ;;  %5870 = vmatprep.subr.mxu0 %v11085_v18  ;;  %v11102_v18 = vand.u32 4294901760, %v7693_v14  ;;  %v8070_v40 = vand.u32 4294901760, %v127_v46  ;;  %v8075_v14 = vand.u32 4294901760, %v142_v2 }
  0xd4   :  { %5860 = vmatpush3.msra.mxu1 %v7808_v24  ;;  %5871 = vmatpush3.msra.mxu0 %v11086_v13  ;;  %v11093_v13 = vand.u32 4294901760, %v7600_v6  ;;  %v11097_v6 = vand.u32 4294901760, %v7658_v4  ;;  %v143_v4 = vld [vmem:[#allocation5 + $0x2f0] sm:$0xff] }
  0xd5   :  { %5861 = vmatprep.subr.mxu1 %v7833_v37  ;;  %5872 = vmatprep.subr.mxu0 %v11087_v28  ;;  %11105 = vst [vmem:[#allocation16_spill] sm:$0xff] %v8075_v14 }
  0xd6   :  { %5862 = vmatpush3.msra.mxu1 %v7844_v19  ;;  %5873 = vmatpush3.msra.mxu0 %v11088_v23 }
  0xd7   :  { %5863 = vmatprep.subr.mxu1 %v7859_v45  ;;  %5874 = vmatprep.subr.mxu0 %v11089_v33  ;;  %v8108_v33 = vsub.f32 %v142_v2, %v8075_v14  ;;  %v11126_v2 = vld [vmem:[#allocation37_spill] sm:$0xff] }
  0xd8   :  { %5864 = vmatpush3.msra.mxu1 %v7861_v60  ;;  %1757 = vmatprep.mubr.f32.mxu1 %v11090_v63 }
  0xd9   :  { %5875 = vmatpush3.msra.mxu0 %v11091_v34  ;;  %1761 = vmatmul.mubr.f32.vlgmr.msra.gmra.mxu1 %v11092_v56  ;;  %v139_v56 = vld [vmem:[#allocation5 + $0x2d0] sm:$0xff] }
  0xda   :  { %5876 = vmatprep.subr.mxu0 %v11093_v13  ;;  %5903 = vmatprep.subr.mxu1 %v7467_v15  ;;  %v11098_v15 = vand.u32 4294901760, %v11063_v32  ;;  %v8068_v32 = vand.u32 4294901760, %v143_v4 }
  0xdb   :  { %5877 = vmatpush3.msra.mxu0 %v11094_v48  ;;  %5904 = vmatpush3.msra.mxu1 %v7469_v59  ;;  %v128_v59 = vld [vmem:[#allocation5 + $0x278] sm:$0xff] }
  0xdc   :  { %5878 = vmatprep.subr.mxu0 %v11095_v53  ;;  %5905 = vmatprep.subr.mxu1 %v7479_v21  ;;  %v144_v21 = vld [vmem:[#allocation5 + $0x2f8] sm:$0xff]  ;;  %v8058_v25 = vand.u32 4294901760, %v128_v59  ;;  %v8100_v28 = vsub.f32 %v143_v4, %v8068_v32  ;;  %v11118_v53 = vld [vmem:[#allocation38_spill] sm:$0xff] }
  0xdd   :  { %5879 = vmatpush3.msra.mxu0 %v11096_v51  ;;  %5906 = vmatpush3.msra.mxu1 %v11061_v55  ;;  %v8063_v55 = vand.u32 4294901760, %v144_v21 }
  0xde   :  { %5880 = vmatprep.subr.mxu0 %v11097_v6  ;;  %5907 = vmatprep.subr.mxu1 %v11062_v29  ;;  %v11103_v29 = vand.u32 4294901760, %v7768_v7  ;;  %v8081_v7 = vsub.f32 %v128_v59, %v8058_v25  ;;  %v10646_v51 = vand.u32 4294901760, %v8100_v28  ;;  %v8129_v6 = vand.u32 4294901760, %v123_v52 }
  0xdf   :  { %5881 = vmatpush3.msra.mxu0 %v11098_v15  ;;  %5908 = vmatpush3.msra.mxu1 %v11064_v50  ;;  %v126_v50 = vld [vmem:[#allocation5 + $0x268] sm:$0xff]  ;;  %v11120_v15 = vand.u32 4294901760, %v7842_v43 }
  0xe0   :  { %5882 = vmatprep.subr.mxu0 %v11099_v5  ;;  %5909 = vmatprep.subr.mxu1 %v11066_v8  ;;  %v141_v8 = vld [vmem:[#allocation5 + $0x2e0] sm:$0xff]  ;;  %v8086_v17 = vand.u32 4294901760, %v126_v50  ;;  %v10648_v34 = vand.u32 4294901760, %v8081_v7  ;;  %11119 = vst [vmem:[#allocation39_spill] sm:$0xff] %v8129_v6  ;;  %v10643_v5 = vand.u32 4294901760, %v8108_v33 }
  0xe1   :  { %5883 = vmatpush3.msra.mxu0 %v11100_v20  ;;  %5910 = vmatpush3.msra.mxu1 %v11068_v44  ;;  %v125_v44 = vld [vmem:[#allocation5 + $0x260] sm:$0xff]  ;;  %v11123_v20 = vld [vmem:[#allocation30_spill] sm:$0xff] }
  0xe2   :  { %5884 = vmatprep.subr.mxu0 %v11101_v27  ;;  %5911 = vmatprep.subr.mxu1 %v11069_v57  ;;  %v11107_v57 = vand.u32 4294901760, %v7763_v31  ;;  %11108 = vst [vmem:[#allocation31_spill] sm:$0xff] %v8086_v17  ;;  %v124_v31 = vld [vmem:[#allocation5 + $0x258] sm:$0xff]  ;;  %v8105_v23 = vand.u32 4294901760, %v125_v44  ;;  %v8150_v4 = vsub.f32 %v8081_v7, %v10648_v34  ;;  %v11125_v27 = vand.u32 4294901760, %v7875_v3  ;;  %v134_v34 = vld [vmem:[#allocation5 + $0x2a8] sm:$0xff] }
  0xe3   :  { %5885 = vmatpush3.msra.mxu0 %v11102_v18  ;;  %5912 = vmatpush3.msra.mxu1 %v11070_v39  ;;  %v140_v39 = vld [vmem:[#allocation5 + $0x2d8] sm:$0xff]  ;;  %v8123_v48 = vand.u32 4294901760, %v124_v31  ;;  %v8175_v3 = vsub.f32 %v8100_v28, %v10646_v51 }
  0xe4   :  { %5886 = vmatprep.subr.mxu0 %v11103_v29  ;;  %5913 = vmatprep.subr.mxu1 %v11071_v12  ;;  %v8089_v12 = vsub.f32 %v144_v21, %v8063_v55  ;;  %11112 = vst [vmem:[#allocation17_spill] sm:$0xff] %v8105_v23  ;;  %v8113_v63 = vand.u32 4294901760, %v140_v39  ;;  %v8139_v59 = vsub.f32 %v125_v44, %v8105_v23  ;;  %v11122_v21 = vand.u32 4294901760, %v7882_v58 }
  0xe5   :  { %5887 = vmatpush3.msra.mxu0 %v11104_v54  ;;  %5914 = vmatpush3.msra.mxu1 %v11072_v10  ;;  %v8095_v10 = vsub.f32 %v127_v46, %v8070_v40  ;;  %11116 = vst [vmem:[#allocation18_spill] sm:$0xff] %v8123_v48  ;;  %v8166_v18 = vsub.f32 %v124_v31, %v8123_v48  ;;  %v11127_v54 = vld [vmem:[#allocation43_spill] sm:$0xff] }
  0xe6   :  { %5888 = vmatprep.subr.mxu0 %v11106_v26  ;;  %5915 = vmatprep.subr.mxu1 %v11073_v62  ;;  %v8097_v62 = vand.u32 4294901760, %v141_v8  ;;  %11114 = vst [vmem:[#allocation28_spill] sm:$0xff] %v8113_v63  ;;  %v10649_v13 = vand.u32 4294901760, %v8089_v12  ;;  %v8155_v46 = vsub.f32 %v140_v39, %v8113_v63  ;;  %v8178_v26 = vsub.f32 %v123_v52, %v8129_v6 }
  0xe7   :  { %5889 = vmatpush3.msra.mxu0 %v11107_v57  ;;  %5916 = vmatpush3.msra.mxu1 %v11074_v30  ;;  %v11111_v30 = vand.u32 4294901760, %v7779_v22  ;;  %v11115_v22 = vand.u32 4294901760, %v7806_v47  ;;  %v10645_v47 = vand.u32 4294901760, %v8095_v10  ;;  %v137_v57 = vld [vmem:[#allocation5 + $0x2c0] sm:$0xff] }
  0xe8   :  { %5890 = vmatprep.subr.mxu0 %v11109_v49  ;;  %5917 = vmatprep.subr.mxu1 %v11075_v41  ;;  %11110 = vst [vmem:[#allocation15_spill] sm:$0xff] %v8097_v62  ;;  %v11113_v41 = vand.u32 4294901760, %v7848_v9  ;;  %v138_v9 = vld [vmem:[#allocation5 + $0x2c8] sm:$0xff]  ;;  %v8163_v58 = vsub.f32 %v8089_v12, %v10649_v13 }
  0xe9   :  { %5891 = vmatpush3.msra.mxu0 %v11111_v30  ;;  %5918 = vmatpush3.msra.mxu1 %v11076_v38  ;;  %v8120_v38 = vsub.f32 %v126_v50, %v8086_v17  ;;  %v8152_v43 = vand.u32 4294901760, %v138_v9  ;;  %v121_v50 = vld [vmem:[#allocation5 + $0x240] sm:$0xff]  ;;  %v8183_v44 = vsub.f32 %v8095_v10, %v10645_v47  ;;  %v11129_v49 = vld [vmem:[#allocation42_spill] sm:$0xff]  ;;  %v8192_v30 = vsub.f32 %v8108_v33, %v10643_v5  ;;  %v136_v5 = vld [vmem:[#allocation5 + $0x2b8] sm:$0xff] }
  0xea   :  { %5892 = vmatprep.subr.mxu0 %v11113_v41  ;;  %5919 = vmatprep.subr.mxu1 %v11077_v11  ;;  %v11117_v11 = vand.u32 4294901760, %v7865_v1  ;;  %v8141_v1 = vand.u32 4294901760, %v139_v56  ;;  %v11130_v31 = vand.u32 4294901760, %v11129_v49  ;;  %v10647_v41 = vand.u32 4294901760, %v8139_v59  ;;  %v119_v47 = vld [vmem:[#allocation5 + $0x230] sm:$0xff]  ;;  %v118_v13 = vld [vmem:[#allocation5 + $0x228] sm:$0xff] }
  0xeb   :  { %5893 = vmatpush3.msra.mxu0 %v11115_v22  ;;  %5920 = vmatpush3.msra.mxu1 %v11078_v35  ;;  %v8133_v35 = vsub.f32 %v141_v8, %v8097_v62  ;;  %11124 = vst [vmem:[#allocation21_spill] sm:$0xff] %v8152_v43  ;;  %v10642_v29 = vand.u32 4294901760, %v8120_v38  ;;  %v11128_v8 = vand.u32 4294901760, %v11127_v54  ;;  %v8217_v54 = vand.u32 4294901760, %v137_v57 }
  0xec   :  { %5894 = vmatprep.subr.mxu0 %v11117_v11  ;;  %5921 = vmatprep.subr.mxu1 %v11118_v53  ;;  %11121 = vst [vmem:[#allocation33_spill] sm:$0xff] %v8141_v1  ;;  %v8198_v22 = vsub.f32 %v139_v56, %v8141_v1  ;;  %v11133_v11 = vld [vmem:[#allocation29_spill] sm:$0xff]  ;;  %v11134_v53 = vld [vmem:[#allocation40_spill] sm:$0xff]  ;;  %v2267_v56 = vand.u32 4294901760, %v8163_v58  ;;  %v10651_v49 = vand.u32 4294901760, %v8166_v18 }
  0xed   :  { %5895 = vmatpush3.msra.mxu0 %v11120_v15  ;;  %5922 = vmatpush3.msra.mxu1 %v11079_v0  ;;  %v122_v0 = vld [vmem:[#allocation5 + $0x248] sm:$0xff]  ;;  %v10644_v39 = vand.u32 4294901760, %v8133_v35  ;;  %11136 = vst [vmem:[#allocation24_spill] sm:$0xff] %v8217_v54  ;;  %v8275_v15 = vand.u32 4294901760, %v119_v47 }
  0xee   :  { %5896 = vmatprep.subr.mxu0 %v11122_v21  ;;  %5923 = vmatprep.subr.mxu1 %v11123_v20  ;;  %v8194_v52 = vand.u32 4294901760, %v122_v0  ;;  %v8203_v21 = vand.u32 4294901760, %v121_v50  ;;  %v10650_v20 = vand.u32 4294901760, %v8155_v46 }
  0xef   :  { %5897 = vmatpush3.msra.mxu0 %v11125_v27  ;;  %5924 = vmatpush3.msra.mxu1 %v11126_v2  ;;  %v8207_v27 = vsub.f32 %v138_v9, %v8152_v43  ;;  %v8215_v2 = vsub.f32 %v8120_v38, %v10642_v29  ;;  %v8227_v58 = vsub.f32 %v8133_v35, %v10644_v39  ;;  %v10655_v39 = vand.u32 4294901760, %v8198_v22  ;;  %v11142_v9 = vld [vmem:[#allocation19_spill] sm:$0xff] }
  0xf0   :  { %5898 = vmatprep.subr.mxu0 %v11128_v8  ;;  %5925 = vmatprep.subr.mxu1 %v7740_v42  ;;  %v11131_v42 = vld [vmem:[#allocation32_spill] sm:$0xff]  ;;  %11132 = vst [vmem:[#allocation22_spill] sm:$0xff] %v8194_v52  ;;  %11135 = vst [vmem:[#allocation23_spill] sm:$0xff] %v8203_v21  ;;  %v8239_v29 = vsub.f32 %v8139_v59, %v10647_v41  ;;  %v135_v41 = vld [vmem:[#allocation5 + $0x2b0] sm:$0xff] }
  0xf1   :  { %5899 = vmatpush3.msra.mxu0 %v11130_v31  ;;  %1927 = vmatprep.mubr.f32.mxu0 %v11131_v42  ;;  %v120_v8 = vld [vmem:[#allocation5 + $0x238] sm:$0xff]  ;;  %v10652_v31 = vand.u32 4294901760, %v8178_v26  ;;  %11144 = vst [vmem:[#allocation36_spill] sm:$0xff] %v8275_v15 }
  0xf2   :  { %5926 = vmatpush3.msra.mxu1 %v11133_v11  ;;  %1929 = vmatmul.mubr.f32.vlgmr.msra.gmra.mxu0 %v11134_v53  ;;  %v8252_v51 = vand.u32 4294901760, %v120_v8  ;;  %v11141_v11 = vld [vmem:[#allocation14_spill] sm:$0xff] }
  0xf3   :  { %5927 = vmatprep.subr.mxu1 %v7791_v36  ;;  %5938 = vmatprep.subr.mxu0 %v8063_v55  ;;  %v8268_v36 = vrot.slane %v11142_v9, %v11141_v11 }
  0xf4   :  { %5928 = vmatpush3.msra.mxu1 %v7756_v16  ;;  %5939 = vmatpush3.msra.mxu0 %v8058_v25  ;;  %v8234_v16 = vsub.f32 %v122_v0, %v8194_v52  ;;  %v8250_v0 = vsub.f32 %v8155_v46, %v10650_v20  ;;  %11139 = vst [vmem:[#allocation34_spill] sm:$0xff] %v8252_v51 }
  0xf5   :  { %5929 = vmatprep.subr.mxu1 %v11084_v61  ;;  %5940 = vmatprep.subr.mxu0 %v8068_v32  ;;  %v8245_v61 = vsub.f32 %v121_v50, %v8203_v21  ;;  %v8261_v50 = vsub.f32 %v8166_v18, %v10651_v49  ;;  %v8264_v20 = vsub.f32 %v137_v57, %v8217_v54  ;;  %v11147_v57 = vand.u32 4294901760, %v8207_v27 }
  0xf6   :  { %11137 = vst [vmem:[#allocation26_spill] sm:$0xff] %v8234_v16  ;;  %5930 = vmatpush3.msra.mxu1 %v7808_v24  ;;  %5941 = vmatpush3.msra.mxu0 %v8070_v40  ;;  %v8273_v24 = vand.u32 4294901760, %v136_v5  ;;  %v8280_v49 = vsub.f32 %v8178_v26, %v10652_v31  ;;  %v8297_v31 = vsub.f32 %v120_v8, %v8252_v51  ;;  %v11150_v8 = vand.u32 4294901760, %v8150_v4 }
  0xf7   :  { %11138 = vst [vmem:[#allocation25_spill] sm:$0xff] %v8245_v61  ;;  %5931 = vmatprep.subr.mxu1 %v7833_v37  ;;  %5942 = vmatprep.subr.mxu0 %v8075_v14  ;;  %11140 = vst [vmem:[#allocation35_spill] sm:$0xff] %v8264_v20  ;;  %v8290_v37 = vsub.f32 %v8198_v22, %v10655_v39  ;;  %v8302_v9 = vsub.f32 %v8207_v27, %v11147_v57  ;;  %v133_v39 = vld [vmem:[#allocation5 + $0x2a0] sm:$0xff]  ;;  %v115_v14 = vld [vmem:[#allocation5 + $0x210] sm:$0xff] }
  0xf8   :  { %5932 = vmatpush3.msra.mxu1 %v7844_v19  ;;  %5943 = vmatpush3.msra.mxu0 %v8086_v17  ;;  %11143 = vst [vmem:[#allocation20_spill] sm:$0xff] %v8273_v24  ;;  %v8285_v19 = vand.u32 4294901760, %v135_v41  ;;  %11146 = vst [vmem:[#allocation41_spill] sm:$0xff] %v8297_v31  ;;  %v117_v17 = vld [vmem:[#allocation5 + $0x220] sm:$0xff]  ;;  %v8315_v57 = vsub.f32 %v119_v47, %v8275_v15 }
  0xf9   :  { %5933 = vmatprep.subr.mxu1 %v7859_v45  ;;  %5944 = vmatprep.subr.mxu0 %v8097_v62  ;;  %v8304_v62 = vand.u32 4294901760, %v118_v13  ;;  %v283_v45 = vcombine.high %v8268_v36, %v8268_v36  ;;  %v8334_v11 = vand.u32 4294901760, %v117_v17 }
  0xfa   :  { %11145 = vst [vmem:[#allocation27_spill] sm:$0xff] %v8285_v19  ;;  %5934 = vmatpush3.msra.mxu1 %v7861_v60  ;;  %2031 = vmatprep.mubr.f32.mxu1 %v11131_v42  ;;  %v116_v60 = vld [vmem:[#allocation5 + $0x218] sm:$0xff]  ;;  %v2302_v42 = vand.u32 4294901760, %v8290_v37 }
  0xfb   :  { %11148 = vst [vmem:[#allocation38_spill] sm:$0xff] %v8304_v62  ;;  %5945 = vmatpush3.msra.mxu0 %v8105_v23  ;;  %2033 = vmatmul.mubr.f32.vlgmr.msra.gmra.mxu1 %v11134_v53  ;;  %v8318_v23 = vand.u32 4294901760, %v134_v34  ;;  %v8321_v53 = vsub.f32 %v136_v5, %v8273_v24  ;;  %11152 = vst [vmem:[#allocation37_spill] sm:$0xff] %v8334_v11  ;;  %v11153_v5 = vand.u32 4294901760, %v8175_v3  ;;  %v132_v37 = vld [vmem:[#allocation5 + $0x298] sm:$0xff]  ;;  %v8360_v4 = vand.u32 4294901760, %v116_v60 }
  0xfc   :  { %5946 = vmatprep.subr.mxu0 %v8113_v63  ;;  %5973 = vmatprep.subr.mxu1 %v2267_v56  ;;  %v11151_v56 = vand.u32 4294901760, %v8234_v16  ;;  %v8332_v63 = vand.u32 4294901760, %v133_v39 }
  0xfd   :  { %11149 = vst [vmem:[#allocation30_spill] sm:$0xff] %v8318_v23  ;;  %5947 = vmatpush3.msra.mxu0 %v8123_v48  ;;  %5974 = vmatpush3.msra.mxu1 %v11150_v8  ;;  %v8341_v8 = vsub.f32 %v118_v13, %v8304_v62  ;;  %v131_v48 = vld [vmem:[#allocation5 + $0x290] sm:$0xff] }
  0xfe   :  { %v8330_v47 = vsub.f32 %v8234_v16, %v11151_v56  ;;  %5948 = vmatprep.subr.mxu0 %v8141_v1  ;;  %5975 = vmatprep.subr.mxu1 %v11153_v5  ;;  %v8345_v56 = vsub.f32 %v135_v41, %v8285_v19  ;;  %v11154_v16 = vand.u32 4294901760, %v8183_v44  ;;  %v11155_v1 = vand.u32 4294901760, %v8264_v20 }
  0xff   :  { %5949 = vmatpush3.msra.mxu0 %v8129_v6  ;;  %v11156_v5 = vand.u32 4294901760, %v8245_v61  ;;  %v8362_v41 = vand.u32 4294901760, %v283_v45  ;;  %v11158_v44 = vand.u32 4294901760, %v8192_v30  ;;  %v8368_v6 = vand.u32 4294901760, %v115_v14 }
 0x100   :  { %5976 = vmatpush3.msra.mxu1 %v11154_v16  ;;  %v8353_v3 = vsub.f32 %v8264_v20, %v11155_v1  ;;  %5950 = vmatprep.subr.mxu0 %v8152_v43  ;;  %v8371_v1 = vsub.f32 %v134_v34, %v8318_v23  ;;  %v2197_v43 = vand.u32 4294901760, %v8330_v47  ;;  %v8381_v30 = vsub.f32 %v117_v17, %v8334_v11  ;;  %v130_v17 = vld [vmem:[#allocation5 + $0x288] sm:$0xff] }
 0x101   :  { %v8358_v13 = vsub.f32 %v8245_v61, %v11156_v5  ;;  %11157 = vst [vmem:[#allocation43_spill] sm:$0xff] %v8362_v41  ;;  %5977 = vmatprep.subr.mxu1 %v11158_v44  ;;  %v8374_v5 = vand.u32 4294901760, %v8268_v36  ;;  %5951 = vmatpush3.msra.mxu0 %v8194_v52  ;;  %v11160_v61 = vand.u32 4294901760, %v8215_v2  ;;  %v8383_v44 = vand.u32 4294901760, %v132_v37 }
 0x102   :  { %11161 = vst [vmem:[#allocation32_spill] sm:$0xff] %v8381_v30  ;;  %5952 = vmatprep.subr.mxu0 %v8217_v54  ;;  %v11162_v34 = vand.u32 4294901760, %v8227_v58  ;;  %v11163_v20 = vand.u32 4294901760, %v8297_v31  ;;  %v8394_v2 = vand.u32 4294901760, %v131_v48  ;;  %v8398_v47 = vsub.f32 %v133_v39, %v8332_v63  ;;  %v114_v54 = vld [vmem:[#allocation5 + $0x208] sm:$0xff]  ;;  %2375 = vmatprep.mubr.f32.mxu1 %v8362_v41 }
 0x103   :  { %11159 = vst [vmem:[#allocation42_spill] sm:$0xff] %v8374_v5  ;;  %5978 = vmatpush3.msra.mxu1 %v11160_v61  ;;  %5953 = vmatpush3.msra.mxu0 %v8203_v21  ;;  %v11165_v16 = vand.u32 4294901760, %v8239_v29  ;;  %v2316_v58 = vand.u32 4294901760, %v8353_v3  ;;  %v11166_v39 = vand.u32 4294901760, %v8250_v0  ;;  %v11167_v61 = vand.u32 4294901760, %v8321_v53 }
 0x104   :  { %5979 = vmatprep.subr.mxu1 %v11162_v34  ;;  %v8392_v52 = vsub.f32 %v8297_v31, %v11163_v20  ;;  %11164 = vst [vmem:[#allocation29_spill] sm:$0xff] %v8394_v2  ;;  %v2204_v34 = vand.u32 4294901760, %v8358_v13  ;;  %v8406_v20 = vsub.f32 %v116_v60, %v8360_v4  ;;  %v8409_v31 = vsub.f32 %v283_v45, %v8362_v41  ;;  %v129_v60 = vld [vmem:[#allocation5 + $0x280] sm:$0xff] }
 0x105   :  { %5980 = vmatpush3.msra.mxu1 %v11165_v16  ;;  %5954 = vmatprep.subr.mxu0 %v8273_v24  ;;  %v2322_v29 = vsub.f32 %v8321_v53, %v11167_v61  ;;  %v8418_v3 = vsub.f32 %v115_v14, %v8368_v6  ;;  %v113_v16 = vld [vmem:[#allocation5 + $0x200] sm:$0xff]  ;;  %v8423_v45 = vsub.f32 %v8268_v36, %v8374_v5  ;;  %v11168_v0 = vand.u32 4294901760, %v8261_v50 }
 0x106   :  { %5981 = vmatprep.subr.mxu1 %v11166_v39  ;;  %5955 = vmatpush3.msra.mxu0 %v8252_v51  ;;  %v11169_v39 = vand.u32 4294901760, %v8315_v57  ;;  %v8431_v24 = vand.u32 4294901760, %v130_v17  ;;  %v8435_v13 = vsub.f32 %v132_v37, %v8383_v44  ;;  %v2211_v36 = vand.u32 4294901760, %v8392_v52  ;;  %v11205_v41 = vld [vmem:[#allocation36_spill] sm:$0xff] }
 0x107   :  { %5982 = vmatpush3.msra.mxu1 %v11168_v0  ;;  %5956 = vmatprep.subr.mxu0 %v8285_v19  ;;  %v11170_v51 = vand.u32 4294901760, %v8345_v56  ;;  %v8442_v0 = vand.u32 4294901760, %v114_v54  ;;  %v11171_v14 = vand.u32 4294901760, %v8280_v49  ;;  %v8448_v37 = vand.u32 4294901760, %v129_v60 }
 0x108   :  { %v2217_v61 = vsub.f32 %v8315_v57, %v11169_v39  ;;  %5983 = vmatprep.subr.mxu1 %v2302_v42  ;;  %5957 = vmatpush3.msra.mxu0 %v8275_v15  ;;  %v8450_v21 = vand.u32 4294901760, %v113_v16  ;;  %v8454_v52 = vsub.f32 %v131_v48, %v8394_v2  ;;  %v2323_v39 = vand.u32 4294901760, %v2322_v29 }
 0x109   :  { %v2329_v50 = vsub.f32 %v8345_v56, %v11170_v51  ;;  %5984 = vmatpush3.msra.mxu1 %v11171_v14  ;;  %5958 = vmatprep.subr.mxu0 %v8318_v23  ;;  %v11172_v51 = vand.u32 4294901760, %v8302_v9  ;;  %v11173_v15 = vand.u32 4294901760, %v8371_v1  ;;  %v10696_v14 = vand.u32 4294901760, %v8381_v30 }
 0x10a   :  { %5959 = vmatpush3.msra.mxu0 %v8304_v62  ;;  %v2218_v42 = vand.u32 4294901760, %v2217_v61  ;;  %v11174_v48 = vand.u32 4294901760, %v8341_v8  ;;  %v8470_v29 = vsub.f32 %v130_v17, %v8431_v24  ;;  %v11175_v19 = vand.u32 4294901760, %v8398_v47 }
 0x10b   :  { %5985 = vmatprep.subr.mxu1 %v11172_v51  ;;  %v2336_v49 = vsub.f32 %v8371_v1, %v11173_v15  ;;  %5960 = vmatprep.subr.mxu0 %v8332_v63  ;;  %v2330_v15 = vand.u32 4294901760, %v2329_v50  ;;  %v8474_v51 = vsub.f32 %v114_v54, %v8442_v0  ;;  %v11177_v17 = vand.u32 4294901760, %v8409_v31 }
 0x10c   :  { %5986 = vmatpush3.msra.mxu1 %v2197_v43  ;;  %v2224_v23 = vsub.f32 %v8341_v8, %v11174_v48  ;;  %v2343_v43 = vsub.f32 %v8398_v47, %v11175_v19  ;;  %5961 = vmatpush3.msra.mxu0 %v8334_v11  ;;  %v8482_v48 = vsub.f32 %v113_v16, %v8450_v21  ;;  %v11179_v16 = vand.u32 4294901760, %v8423_v45 }
 0x10d   :  { %5987 = vmatprep.subr.mxu1 %v2316_v58  ;;  %v2137_v58 = vsub.f32 %v8409_v31, %v11177_v17  ;;  %v8489_v54 = vsub.f32 %v129_v60, %v8448_v37  ;;  %5962 = vmatprep.subr.mxu0 %v8383_v44  ;;  %v2337_v19 = vand.u32 4294901760, %v2336_v49  ;;  %v11180_v60 = vand.u32 4294901760, %v8435_v13 }
 0x10e   :  { %5988 = vmatpush3.msra.mxu1 %v2204_v34  ;;  %11176 = vst [vmem:[#allocation40_spill] sm:$0xff] %v8482_v48  ;;  %v2231_v34 = vsub.f32 %v8381_v30, %v10696_v14  ;;  %v2143_v61 = vsub.f32 %v8423_v45, %v11179_v16  ;;  %5963 = vmatpush3.msra.mxu0 %v8360_v4  ;;  %v2225_v17 = vand.u32 4294901760, %v2224_v23  ;;  %v2344_v49 = vand.u32 4294901760, %v2343_v43 }
 0x10f   :  { %11178 = vst [vmem:[#allocation44_spill] sm:$0xff] %v8489_v54  ;;  %5989 = vmatprep.subr.mxu1 %v2323_v39  ;;  %v2350_v50 = vsub.f32 %v8435_v13, %v11180_v60  ;;  %5964 = vmatprep.subr.mxu0 %v8394_v2  ;;  %v11181_v14 = vand.u32 4294901760, %v8406_v20  ;;  %v2138_v23 = vand.u32 4294901760, %v2137_v58  ;;  %v10700_v39 = vand.u32 4294901760, %v8489_v54 }
 0x110   :  { %5990 = vmatpush3.msra.mxu1 %v2211_v36  ;;  %5965 = vmatpush3.msra.mxu0 %v8368_v6  ;;  %v11182_v36 = vand.u32 4294901760, %v8454_v52  ;;  %v2144_v43 = vand.u32 4294901760, %v2143_v61  ;;  %v11183_v2 = vand.u32 4294901760, %v8418_v3  ;;  %v10699_v9 = vand.u32 4294901760, %v8482_v48 }
 0x111   :  { %5991 = vmatprep.subr.mxu1 %v2330_v15  ;;  %v2238_v16 = vsub.f32 %v8406_v20, %v11181_v14  ;;  %5966 = vmatprep.subr.mxu0 %v8431_v24  ;;  %v2232_v15 = vand.u32 4294901760, %v2231_v34  ;;  %v11184_v58 = vand.u32 4294901760, %v8470_v29  ;;  %v11185_v61 = vand.u32 4294901760, %v8474_v51 }
 0x112   :  { %5992 = vmatpush3.msra.mxu1 %v2218_v42  ;;  %v2357_v60 = vsub.f32 %v8454_v52, %v11182_v36  ;;  %v2245_v14 = vsub.f32 %v8418_v3, %v11183_v2  ;;  %5967 = vmatpush3.msra.mxu0 %v8442_v0  ;;  %v2351_v42 = vand.u32 4294901760, %v2350_v50  ;;  %v2371_v50 = vsub.f32 %v8489_v54, %v10700_v39  ;;  %v11203_v39 = vld [vmem:[#allocation34_spill] sm:$0xff] }
 0x113   :  { %5993 = vmatprep.subr.mxu1 %v2337_v19  ;;  %v2364_v36 = vsub.f32 %v8470_v29, %v11184_v58  ;;  %5968 = vmatprep.subr.mxu0 %v8448_v37  ;;  %v2239_v19 = vand.u32 4294901760, %v2238_v16  ;;  %v2252_v34 = vsub.f32 %v8474_v51, %v11185_v61  ;;  %v11189_v58 = vld [vmem:[#allocation35_spill] sm:$0xff]  ;;  %v11192_v61 = vld [vmem:[#allocation17_spill] sm:$0xff] }
 0x114   :  { %5994 = vmatpush3.msra.mxu1 %v2225_v17  ;;  %5969 = vmatpush3.msra.mxu0 %v8450_v21  ;;  %v2358_v2 = vand.u32 4294901760, %v2357_v60  ;;  %v2246_v17 = vand.u32 4294901760, %v2245_v14  ;;  %v2372_v60 = vand.u32 4294901760, %v2371_v50  ;;  %v11187_v14 = vld [vmem:[#allocation26_spill] sm:$0xff] }
 0x115   :  { %5995 = vmatprep.subr.mxu1 %v2344_v49  ;;  %2139 = vmatprep.mubr.f32.mxu0 %v2138_v23  ;;  %v2259_v49 = vsub.f32 %v8482_v48, %v10699_v9  ;;  %v2365_v16 = vand.u32 4294901760, %v2364_v36  ;;  %v2253_v23 = vand.u32 4294901760, %v2252_v34  ;;  %v11190_v36 = vld [vmem:[#allocation15_spill] sm:$0xff]  ;;  %v11193_v34 = vld [vmem:[#allocation28_spill] sm:$0xff]  ;;  %v11195_v50 = vld [vmem:[#allocation18_spill] sm:$0xff] }
 0x116   :  { %5996 = vmatpush3.msra.mxu1 %v2232_v15  ;;  %2145 = vmatmul.mubr.f32.vlgmr.msra.gmra.mxu0 %v2144_v43  ;;  %v11186_v43 = vld [vmem:[#allocation16_spill] sm:$0xff] }
 0x117   :  { %5997 = vmatprep.subr.mxu1 %v2351_v42  ;;  %6008 = vmatprep.subr.mxu0 %v8089_v12  ;;  %v2260_v15 = vand.u32 4294901760, %v2259_v49  ;;  %v11188_v42 = vld [vmem:[#allocation31_spill] sm:$0xff]  ;;  %v11202_v9 = vld [vmem:[#allocation20_spill] sm:$0xff] }
 0x118   :  { %5998 = vmatpush3.msra.mxu1 %v2239_v19  ;;  %6009 = vmatpush3.msra.mxu0 %v8081_v7  ;;  %v11191_v19 = vld [vmem:[#allocation25_spill] sm:$0xff]  ;;  %v11197_v49 = vld [vmem:[#allocation39_spill] sm:$0xff] }
 0x119   :  { %5999 = vmatprep.subr.mxu1 %v2358_v2  ;;  %6010 = vmatprep.subr.mxu0 %v8100_v28  ;;  %v11194_v2 = vld [vmem:[#allocation41_spill] sm:$0xff] }
 0x11a   :  { %6000 = vmatpush3.msra.mxu1 %v2246_v17  ;;  %6011 = vmatpush3.msra.mxu0 %v8095_v10  ;;  %v11196_v17 = vld [vmem:[#allocation33_spill] sm:$0xff] }
 0x11b   :  { %6001 = vmatprep.subr.mxu1 %v2365_v16  ;;  %6012 = vmatprep.subr.mxu0 %v8108_v33  ;;  %v11198_v16 = vld [vmem:[#allocation21_spill] sm:$0xff] }
 0x11c   :  { %6002 = vmatpush3.msra.mxu1 %v2253_v23  ;;  %6013 = vmatpush3.msra.mxu0 %v8120_v38  ;;  %v11199_v23 = vld [vmem:[#allocation22_spill] sm:$0xff] }
 0x11d   :  { %6003 = vmatprep.subr.mxu1 %v2372_v60  ;;  %6014 = vmatprep.subr.mxu0 %v8133_v35  ;;  %v11200_v60 = vld [vmem:[#allocation24_spill] sm:$0xff] }
 0x11e   :  { %6004 = vmatpush3.msra.mxu1 %v2260_v15  ;;  %6015 = vmatpush3.msra.mxu0 %v8139_v59  ;;  %v11201_v15 = vld [vmem:[#allocation23_spill] sm:$0xff] }
 0x11f   :  { %2377 = vmatmul.mubr.f32.vlgmr.msra.gmra.mxu1 %v8374_v5  ;;  %6016 = vmatprep.subr.mxu0 %v8155_v46  ;;  %v11204_v5 = vld [vmem:[#allocation27_spill] sm:$0xff] }
 0x120   :  { %6043 = vmatprep.subr.mxu1 %v8063_v55  ;;  %6017 = vmatpush3.msra.mxu0 %v8166_v18 }
 0x121   :  { %6044 = vmatpush3.msra.mxu1 %v8058_v25  ;;  %6018 = vmatprep.subr.mxu0 %v8198_v22 }
 0x122   :  { %6045 = vmatprep.subr.mxu1 %v8068_v32  ;;  %6019 = vmatpush3.msra.mxu0 %v8178_v26 }
 0x123   :  { %6046 = vmatpush3.msra.mxu1 %v8070_v40  ;;  %6020 = vmatprep.subr.mxu0 %v8207_v27 }
 0x124   :  { %6047 = vmatprep.subr.mxu1 %v11186_v43  ;;  %6021 = vmatpush3.msra.mxu0 %v11187_v14 }
 0x125   :  { %6048 = vmatpush3.msra.mxu1 %v11188_v42  ;;  %6022 = vmatprep.subr.mxu0 %v11189_v58 }
 0x126   :  { %6049 = vmatprep.subr.mxu1 %v11190_v36  ;;  %6023 = vmatpush3.msra.mxu0 %v11191_v19 }
 0x127   :  { %6050 = vmatpush3.msra.mxu1 %v11192_v61  ;;  %6024 = vmatprep.subr.mxu0 %v8321_v53 }
 0x128   :  { %6051 = vmatprep.subr.mxu1 %v11193_v34  ;;  %6025 = vmatpush3.msra.mxu0 %v11194_v2 }
 0x129   :  { %6052 = vmatpush3.msra.mxu1 %v11195_v50  ;;  %6026 = vmatprep.subr.mxu0 %v8345_v56 }
 0x12a   :  { %6053 = vmatprep.subr.mxu1 %v11196_v17  ;;  %6027 = vmatpush3.msra.mxu0 %v8315_v57 }
 0x12b   :  { %6054 = vmatpush3.msra.mxu1 %v11197_v49  ;;  %6028 = vmatprep.subr.mxu0 %v8371_v1 }
 0x12c   :  { %6055 = vmatprep.subr.mxu1 %v11198_v16  ;;  %6029 = vmatpush3.msra.mxu0 %v8341_v8 }
 0x12d   :  { %6056 = vmatpush3.msra.mxu1 %v11199_v23  ;;  %6030 = vmatprep.subr.mxu0 %v8398_v47 }
 0x12e   :  { %6057 = vmatprep.subr.mxu1 %v11200_v60  ;;  %6031 = vmatpush3.msra.mxu0 %v8381_v30  ;;  %v11206_v30 = vld [vmem:[#allocation30_spill] sm:$0xff] }
 0x12f   :  { %6058 = vmatpush3.msra.mxu1 %v11201_v15  ;;  %6032 = vmatprep.subr.mxu0 %v8435_v13 }
 0x130   :  { %6059 = vmatprep.subr.mxu1 %v11202_v9  ;;  %6033 = vmatpush3.msra.mxu0 %v8406_v20 }
 0x131   :  { %6060 = vmatpush3.msra.mxu1 %v11203_v39  ;;  %6034 = vmatprep.subr.mxu0 %v8454_v52 }
 0x132   :  { %6061 = vmatprep.subr.mxu1 %v11204_v5  ;;  %6035 = vmatpush3.msra.mxu0 %v8418_v3 }
 0x133   :  { %6062 = vmatpush3.msra.mxu1 %v11205_v41  ;;  %6036 = vmatprep.subr.mxu0 %v8470_v29 }
 0x134   :  { %6063 = vmatprep.subr.mxu1 %v11206_v30  ;;  %6037 = vmatpush3.msra.mxu0 %v8474_v51  ;;  %v11207_v30 = vand.u32 4294901760, %v8089_v12  ;;  %v11212_v12 = vand.u32 4294901760, %v8108_v33  ;;  %v11217_v33 = vand.u32 4294901760, %v8423_v45 }
 0x135   :  { %6064 = vmatpush3.msra.mxu1 %v8304_v62  ;;  %6038 = vmatprep.subr.mxu0 %v8489_v54  ;;  %v11208_v62 = vand.u32 4294901760, %v8081_v7  ;;  %v11209_v54 = vld [vmem:[#allocation29_spill] sm:$0xff]  ;;  %v11213_v7 = vand.u32 4294901760, %v8120_v38  ;;  %v11219_v38 = vand.u32 4294901760, %v8166_v18  ;;  %v160_v18 = vld [vmem:[#allocation5 + $0x378] sm:$0xff] }
 0x136   :  { %6065 = vmatprep.subr.mxu1 %v8332_v63  ;;  %6039 = vmatpush3.msra.mxu0 %v8482_v48  ;;  %v11210_v48 = vand.u32 4294901760, %v8100_v28  ;;  %v11216_v28 = vand.u32 4294901760, %v8139_v59  ;;  %v176_v59 = vld [vmem:[#allocation5 + $0x3f8] sm:$0xff] }
 0x137   :  { %2512 = vmatprep.mubr.f32.mxu0 %v8409_v31  ;;  %6066 = vmatpush3.msra.mxu1 %v8334_v11  ;;  %v11211_v11 = vand.u32 4294901760, %v8095_v10  ;;  %v11215_v10 = vand.u32 4294901760, %v8409_v31  ;;  %v11221_v31 = vand.u32 4294901760, %v8178_v26  ;;  %v175_v26 = vld [vmem:[#allocation5 + $0x3f0] sm:$0xff] }
 0x138   :  { %2515 = vmatmul.mubr.f32.vlgmr.msra.gmra.mxu0 %v8423_v45  ;;  %6067 = vmatprep.subr.mxu1 %v8383_v44  ;;  %v174_v45 = vld [vmem:[#allocation5 + $0x3e8] sm:$0xff] }
 0x139   :  { %6078 = vmatprep.subr.mxu0 %v11207_v30  ;;  %6068 = vmatpush3.msra.mxu1 %v8360_v4  ;;  %v8651_v30 = vand.u32 4294901760, %v160_v18 }
 0x13a   :  { %6079 = vmatpush3.msra.mxu0 %v11208_v62  ;;  %6069 = vmatprep.subr.mxu1 %v11209_v54  ;;  %v11214_v62 = vand.u32 4294901760, %v8133_v35  ;;  %v11220_v35 = vand.u32 4294901760, %v8198_v22  ;;  %v159_v22 = vld [vmem:[#allocation5 + $0x370] sm:$0xff] }
 0x13b   :  { %6080 = vmatprep.subr.mxu0 %v11210_v48  ;;  %6070 = vmatpush3.msra.mxu1 %v8368_v6  ;;  %v11227_v48 = vand.u32 4294901760, %v11194_v2 }
 0x13c   :  { %6081 = vmatpush3.msra.mxu0 %v11211_v11  ;;  %6071 = vmatprep.subr.mxu1 %v8431_v24  ;;  %v11218_v11 = vand.u32 4294901760, %v8155_v46  ;;  %v11222_v46 = vand.u32 4294901760, %v8207_v27  ;;  %v11226_v27 = vand.u32 4294901760, %v8321_v53  ;;  %v8664_v53 = vand.u32 4294901760, %v159_v22 }
 0x13d   :  { %6082 = vmatprep.subr.mxu0 %v11212_v12  ;;  %6072 = vmatpush3.msra.mxu1 %v8442_v0 }
 0x13e   :  { %6083 = vmatpush3.msra.mxu0 %v11213_v7  ;;  %6073 = vmatprep.subr.mxu1 %v8448_v37 }
 0x13f   :  { %6084 = vmatprep.subr.mxu0 %v11214_v62  ;;  %6074 = vmatpush3.msra.mxu1 %v8450_v21 }
 0x140   :  { %2619 = vmatprep.mubr.f32.mxu1 %v11215_v10  ;;  %6085 = vmatpush3.msra.mxu0 %v11216_v28  ;;  %v156_v10 = vld [vmem:[#allocation5 + $0x358] sm:$0xff]  ;;  %v155_v28 = vld [vmem:[#allocation5 + $0x350] sm:$0xff] }
 0x141   :  { %2623 = vmatmul.mubr.f32.vlgmr.msra.gmra.mxu1 %v11217_v33  ;;  %6086 = vmatprep.subr.mxu0 %v11218_v11 }
 0x142   :  { %6113 = vmatprep.subr.mxu1 %v8063_v55  ;;  %6087 = vmatpush3.msra.mxu0 %v11219_v38  ;;  %v11223_v55 = vand.u32 4294901760, %v11187_v14  ;;  %v158_v14 = vld [vmem:[#allocation5 + $0x368] sm:$0xff] }
 0x143   :  { %6114 = vmatpush3.msra.mxu1 %v8058_v25  ;;  %6088 = vmatprep.subr.mxu0 %v11220_v35  ;;  %v8640_v25 = vand.u32 4294901760, %v176_v59  ;;  %v8677_v2 = vand.u32 4294901760, %v158_v14  ;;  %v11241_v35 = vand.u32 4294901760, %v8406_v20 }
 0x144   :  { %6115 = vmatprep.subr.mxu1 %v8068_v32  ;;  %6089 = vmatpush3.msra.mxu0 %v11221_v31  ;;  %v11224_v32 = vand.u32 4294901760, %v11189_v58  ;;  %v11228_v58 = vand.u32 4294901760, %v8345_v56  ;;  %v8675_v56 = vsub.f32 %v160_v18, %v8651_v30  ;;  %v11242_v31 = vand.u32 4294901760, %v8454_v52 }
 0x145   :  { %6116 = vmatpush3.msra.mxu1 %v8070_v40  ;;  %6090 = vmatprep.subr.mxu0 %v11222_v46  ;;  %v11225_v40 = vand.u32 4294901760, %v11191_v19  ;;  %v8669_v19 = vand.u32 4294901760, %v174_v45  ;;  %11232 = vst [vmem:[#allocation26_spill] sm:$0xff] %v8677_v2  ;;  %v8723_v46 = vand.u32 4294901760, %v156_v10  ;;  %v11245_v18 = vand.u32 4294901760, %v8418_v3 }
 0x146   :  { %6117 = vmatprep.subr.mxu1 %v11186_v43  ;;  %6091 = vmatpush3.msra.mxu0 %v11223_v55  ;;  %v8656_v43 = vand.u32 4294901760, %v175_v26  ;;  %v10715_v38 = vand.u32 4294901760, %v8675_v56  ;;  %v8725_v55 = vand.u32 4294901760, %v155_v28 }
 0x147   :  { %6118 = vmatpush3.msra.mxu1 %v11188_v42  ;;  %6092 = vmatprep.subr.mxu0 %v11224_v32  ;;  %v8659_v42 = vsub.f32 %v176_v59, %v8640_v25  ;;  %11230 = vst [vmem:[#allocation16_spill] sm:$0xff] %v8669_v19  ;;  %v8700_v33 = vsub.f32 %v174_v45, %v8669_v19  ;;  %v170_v59 = vld [vmem:[#allocation5 + $0x3c8] sm:$0xff]  ;;  %11243 = vst [vmem:[#allocation25_spill] sm:$0xff] %v8723_v46 }
 0x148   :  { %6119 = vmatprep.subr.mxu1 %v11190_v36  ;;  %6093 = vmatpush3.msra.mxu0 %v11225_v40  ;;  %v11229_v36 = vand.u32 4294901760, %v8315_v57  ;;  %v172_v57 = vld [vmem:[#allocation5 + $0x3d8] sm:$0xff]  ;;  %v8684_v12 = vsub.f32 %v175_v26, %v8656_v43  ;;  %11244 = vst [vmem:[#allocation17_spill] sm:$0xff] %v8725_v55  ;;  %v11247_v26 = vand.u32 4294901760, %v8470_v29  ;;  %v11248_v40 = vld [vmem:[#allocation30_spill] sm:$0xff]  ;;  %v8748_v3 = vand.u32 4294901760, %v170_v59 }
 0x149   :  { %6120 = vmatpush3.msra.mxu1 %v11192_v61  ;;  %6094 = vmatprep.subr.mxu0 %v11226_v27  ;;  %v173_v61 = vld [vmem:[#allocation5 + $0x3e0] sm:$0xff]  ;;  %v8708_v11 = vand.u32 4294901760, %v172_v57  ;;  %v11251_v29 = vld [vmem:[#allocation38_spill] sm:$0xff] }
 0x14a   :  { %6121 = vmatprep.subr.mxu1 %v11193_v34  ;;  %6095 = vmatpush3.msra.mxu0 %v11227_v48  ;;  %v11231_v34 = vand.u32 4294901760, %v8371_v1  ;;  %v11234_v1 = vand.u32 4294901760, %v8398_v47  ;;  %v8692_v7 = vand.u32 4294901760, %v173_v61  ;;  %v11239_v47 = vand.u32 4294901760, %v8435_v13  ;;  %11249 = vst [vmem:[#allocation41_spill] sm:$0xff] %v8748_v3 }
 0x14b   :  { %6122 = vmatpush3.msra.mxu1 %v11195_v50  ;;  %6096 = vmatprep.subr.mxu0 %v11228_v58  ;;  %v157_v50 = vld [vmem:[#allocation5 + $0x360] sm:$0xff]  ;;  %11240 = vst [vmem:[#allocation15_spill] sm:$0xff] %v8708_v11  ;;  %v8752_v45 = vsub.f32 %v172_v57, %v8708_v11  ;;  %v11250_v48 = vand.u32 4294901760, %v8474_v51  ;;  %v8770_v51 = vsub.f32 %v155_v28, %v8725_v55 }
 0x14c   :  { %6123 = vmatprep.subr.mxu1 %v11196_v17  ;;  %6097 = vmatpush3.msra.mxu0 %v11229_v36  ;;  %v11233_v17 = vand.u32 4294901760, %v8341_v8  ;;  %11235 = vst [vmem:[#allocation31_spill] sm:$0xff] %v8692_v7  ;;  %v11236_v8 = vld [vmem:[#allocation32_spill] sm:$0xff] }
 0x14d   :  { %6124 = vmatpush3.msra.mxu1 %v11197_v49  ;;  %6098 = vmatprep.subr.mxu0 %v11231_v34  ;;  %v10716_v49 = vand.u32 4294901760, %v8659_v42  ;;  %v11237_v62 = vand.u32 4294901760, %v11236_v8  ;;  %v11252_v36 = vld [vmem:[#allocation44_spill] sm:$0xff]  ;;  %v8767_v34 = vsub.f32 %v156_v10, %v8723_v46 }
 0x14e   :  { %6125 = vmatprep.subr.mxu1 %v11198_v16  ;;  %6099 = vmatpush3.msra.mxu0 %v11233_v17  ;;  %v8690_v16 = vsub.f32 %v159_v22, %v8664_v53  ;;  %v8746_v22 = vsub.f32 %v8675_v56, %v10715_v38  ;;  %v169_v17 = vld [vmem:[#allocation5 + $0x3c0] sm:$0xff]  ;;  %v151_v38 = vld [vmem:[#allocation5 + $0x330] sm:$0xff] }
 0x14f   :  { %6126 = vmatpush3.msra.mxu1 %v11199_v23  ;;  %6100 = vmatprep.subr.mxu0 %v11234_v1  ;;  %v8697_v23 = vand.u32 4294901760, %v157_v50  ;;  %v8717_v13 = vsub.f32 %v8659_v42, %v10716_v49  ;;  %v153_v1 = vld [vmem:[#allocation5 + $0x340] sm:$0xff] }
 0x150   :  { %6127 = vmatprep.subr.mxu1 %v11200_v60  ;;  %6101 = vmatpush3.msra.mxu0 %v11237_v62  ;;  %v8706_v60 = vsub.f32 %v158_v14, %v8677_v2  ;;  %v10712_v20 = vand.u32 4294901760, %v8690_v16  ;;  %v11254_v8 = vld [vmem:[#allocation40_spill] sm:$0xff] }
 0x151   :  { %6128 = vmatpush3.msra.mxu1 %v11201_v15  ;;  %11238 = vst [vmem:[#allocation35_spill] sm:$0xff] %v8697_v23  ;;  %6102 = vmatprep.subr.mxu0 %v11239_v47  ;;  %v171_v15 = vld [vmem:[#allocation5 + $0x3d0] sm:$0xff]  ;;  %v8735_v32 = vsub.f32 %v157_v50, %v8697_v23  ;;  %v11255_v62 = vand.u32 4294901760, %v11254_v8  ;;  %v168_v8 = vld [vmem:[#allocation5 + $0x3b8] sm:$0xff] }
 0x152   :  { %6129 = vmatprep.subr.mxu1 %v11202_v9  ;;  %6103 = vmatpush3.msra.mxu0 %v11241_v35  ;;  %v10713_v9 = vand.u32 4294901760, %v8684_v12  ;;  %v8737_v52 = vand.u32 4294901760, %v171_v15  ;;  %v10710_v27 = vand.u32 4294901760, %v8706_v60  ;;  %v8775_v50 = vsub.f32 %v8690_v16, %v10712_v20  ;;  %v11256_v47 = vld [vmem:[#allocation43_spill] sm:$0xff] }
 0x153   :  { %6130 = vmatpush3.msra.mxu1 %v11203_v39  ;;  %6104 = vmatprep.subr.mxu0 %v11242_v31  ;;  %v8729_v39 = vsub.f32 %v173_v61, %v8692_v7  ;;  %v11253_v61 = vand.u32 4294901760, %v11252_v36  ;;  %v10717_v28 = vand.u32 4294901760, %v8735_v32  ;;  %v11258_v31 = vld [vmem:[#allocation37_spill] sm:$0xff]  ;;  %v8807_v36 = vand.u32 4294901760, %v169_v17 }
 0x154   :  { %6131 = vmatprep.subr.mxu1 %v11204_v5  ;;  %6105 = vmatpush3.msra.mxu0 %v11245_v18  ;;  %11246 = vst [vmem:[#allocation28_spill] sm:$0xff] %v8737_v52  ;;  %v10711_v5 = vand.u32 4294901760, %v8700_v33  ;;  %v8761_v58 = vsub.f32 %v8684_v12, %v10713_v9  ;;  %v8790_v35 = vsub.f32 %v171_v15, %v8737_v52  ;;  %v11259_v18 = vld [vmem:[#allocation42_spill] sm:$0xff]  ;;  %v10720_v20 = vand.u32 4294901760, %v8770_v51 }
 0x155   :  { %6132 = vmatpush3.msra.mxu1 %v11205_v41  ;;  %6106 = vmatprep.subr.mxu0 %v11247_v26  ;;  %v154_v41 = vld [vmem:[#allocation5 + $0x348] sm:$0xff]  ;;  %v10714_v57 = vand.u32 4294901760, %v8729_v39  ;;  %11260 = vst [vmem:[#allocation33_spill] sm:$0xff] %v8807_v36  ;;  %v8832_v9 = vsub.f32 %v8735_v32, %v10717_v28  ;;  %v8838_v49 = vand.u32 4294901760, %v168_v8  ;;  %v8854_v15 = vsub.f32 %v169_v17, %v8807_v36 }
 0x156   :  { %6133 = vmatprep.subr.mxu1 %v11248_v40  ;;  %6107 = vmatpush3.msra.mxu0 %v11250_v48  ;;  %v8786_v10 = vand.u32 4294901760, %v154_v41  ;;  %v8798_v40 = vsub.f32 %v8706_v60, %v10710_v27  ;;  %v10718_v48 = vand.u32 4294901760, %v8752_v45  ;;  %v152_v27 = vld [vmem:[#allocation5 + $0x338] sm:$0xff]  ;;  %v11268_v26 = vld [vmem:[#allocation14_spill] sm:$0xff]  ;;  %v8872_v17 = vsub.f32 %v8770_v51, %v10720_v20 }
 0x157   :  { %6134 = vmatpush3.msra.mxu1 %v11251_v29  ;;  %6108 = vmatprep.subr.mxu0 %v11253_v61  ;;  %v8802_v29 = vsub.f32 %v170_v59, %v8748_v3  ;;  %v8809_v61 = vand.u32 4294901760, %v153_v1  ;;  %11264 = vst [vmem:[#allocation22_spill] sm:$0xff] %v8838_v49  ;;  %v8851_v59 = vand.u32 4294901760, %v152_v27  ;;  %11267 = vst [vmem:[#allocation20_spill] sm:$0xff] %v8854_v15  ;;  %v11274_v28 = vand.u32 4294901760, %v8717_v13 }
 0x158   :  { %6135 = vmatprep.subr.mxu1 %v8332_v63  ;;  %6109 = vmatpush3.msra.mxu0 %v11255_v62  ;;  %v8784_v63 = vsub.f32 %v8700_v33, %v10711_v5  ;;  %11257 = vst [vmem:[#allocation18_spill] sm:$0xff] %v8786_v10  ;;  %v11262_v62 = vld [vmem:[#allocation19_spill] sm:$0xff]  ;;  %v10719_v5 = vand.u32 4294901760, %v8767_v34 }
 0x159   :  { %2789 = vmatprep.mubr.f32.mxu0 %v11256_v47  ;;  %6136 = vmatpush3.msra.mxu1 %v11258_v31  ;;  %11261 = vst [vmem:[#allocation39_spill] sm:$0xff] %v8809_v61  ;;  %v268_v31 = vcombine.high %v11262_v62, %v11262_v62  ;;  %v8827_v62 = vsub.f32 %v154_v41, %v8786_v10  ;;  %11266 = vst [vmem:[#allocation23_spill] sm:$0xff] %v8851_v59  ;;  %v11271_v20 = vand.u32 4294901760, %v8802_v29 }
 0x15a   :  { %2791 = vmatmul.mubr.f32.vlgmr.msra.gmra.mxu0 %v11259_v18  ;;  %6137 = vmatprep.subr.mxu1 %v8383_v44  ;;  %v8819_v44 = vsub.f32 %v8729_v39, %v10714_v57  ;;  %v10725_v57 = vand.u32 4294901760, %v8790_v35  ;;  %v8843_v41 = vsub.f32 %v8752_v45, %v10718_v48  ;;  %v8867_v48 = vand.u32 4294901760, %v151_v38 }
 0x15b   :  { %6148 = vmatprep.subr.mxu0 %v8640_v25  ;;  %6138 = vmatpush3.msra.mxu1 %v8360_v4  ;;  %11263 = vst [vmem:[#allocation21_spill] sm:$0xff] %v8827_v62  ;;  %v167_v4 = vld [vmem:[#allocation5 + $0x3b0] sm:$0xff]  ;;  %v8857_v14 = vrot.slane %v268_v31, %v11268_v26  ;;  %v11277_v13 = vand.u32 4294901760, %v8827_v62 }
 0x15c   :  { %6149 = vmatpush3.msra.mxu0 %v8651_v30  ;;  %6139 = vmatprep.subr.mxu1 %v11209_v54  ;;  %v150_v54 = vld [vmem:[#allocation5 + $0x328] sm:$0xff]  ;;  %11269 = vst [vmem:[#allocation34_spill] sm:$0xff] %v8867_v48  ;;  %v8877_v31 = vand.u32 4294901760, %v167_v4 }
 0x15d   :  { %6150 = vmatprep.subr.mxu0 %v8656_v43  ;;  %6140 = vmatpush3.msra.mxu1 %v8368_v6  ;;  %v8849_v6 = vsub.f32 %v153_v1, %v8809_v61  ;;  %v8865_v1 = vsub.f32 %v8767_v34, %v10719_v5  ;;  %v8882_v5 = vsub.f32 %v8790_v35, %v10725_v57  ;;  %v8893_v26 = vand.u32 4294901760, %v150_v54 }
 0x15e   :  { %6151 = vmatpush3.msra.mxu0 %v8664_v53  ;;  %6141 = vmatprep.subr.mxu1 %v8431_v24  ;;  %11270 = vst [vmem:[#allocation27_spill] sm:$0xff] %v8877_v31  ;;  %v166_v24 = vld [vmem:[#allocation5 + $0x3a8] sm:$0xff]  ;;  %v8896_v57 = vsub.f32 %v168_v8, %v8838_v49 }
 0x15f   :  { %6152 = vmatprep.subr.mxu0 %v8669_v19  ;;  %11265 = vst [vmem:[#allocation24_spill] sm:$0xff] %v8849_v6  ;;  %6142 = vmatpush3.msra.mxu1 %v8442_v0  ;;  %v8891_v0 = vsub.f32 %v8802_v29, %v11271_v20  ;;  %11272 = vst [vmem:[#allocation36_spill] sm:$0xff] %v8893_v26  ;;  %v284_v20 = vcombine.high %v8857_v14, %v8857_v14  ;;  %v3045_v8 = vand.u32 4294901760, %v8865_v1 }
 0x160   :  { %6153 = vmatpush3.msra.mxu0 %v8677_v2  ;;  %6143 = vmatprep.subr.mxu1 %v8448_v37  ;;  %v149_v2 = vld [vmem:[#allocation5 + $0x320] sm:$0xff]  ;;  %11273 = vst [vmem:[#allocation29_spill] sm:$0xff] %v8896_v57  ;;  %v11276_v37 = vand.u32 4294901760, %v8746_v22  ;;  %v11279_v19 = vand.u32 4294901760, %v8761_v58  ;;  %v11282_v58 = vand.u32 4294901760, %v8849_v6 }
 0x161   :  { %6154 = vmatprep.subr.mxu0 %v8692_v7  ;;  %6144 = vmatpush3.msra.mxu1 %v8450_v21  ;;  %v165_v7 = vld [vmem:[#allocation5 + $0x3a0] sm:$0xff]  ;;  %v8901_v21 = vsub.f32 %v152_v27, %v8851_v59  ;;  %v147_v27 = vld [vmem:[#allocation5 + $0x310] sm:$0xff] }
 0x162   :  { %2893 = vmatprep.mubr.f32.mxu1 %v11256_v47  ;;  %6155 = vmatpush3.msra.mxu0 %v8697_v23  ;;  %v8912_v23 = vsub.f32 %v151_v38, %v8867_v48  ;;  %v148_v47 = vld [vmem:[#allocation5 + $0x318] sm:$0xff]  ;;  %v8926_v1 = vand.u32 4294901760, %v165_v7  ;;  %v8928_v38 = vand.u32 4294901760, %v149_v2 }
 0x163   :  { %2895 = vmatmul.mubr.f32.vlgmr.msra.gmra.mxu1 %v11259_v18  ;;  %6156 = vmatprep.subr.mxu0 %v8708_v11  ;;  %v8915_v18 = vand.u32 4294901760, %v166_v24  ;;  %v3164_v11 = vand.u32 4294901760, %v8882_v5  ;;  %v164_v5 = vld [vmem:[#allocation5 + $0x398] sm:$0xff]  ;;  %v8954_v22 = vand.u32 4294901760, %v148_v47 }
 0x164   :  { %6183 = vmatprep.subr.mxu1 %v11274_v28  ;;  %6157 = vmatpush3.msra.mxu0 %v8723_v46  ;;  %v8924_v28 = vsub.f32 %v8827_v62, %v11277_v13  ;;  %11278 = vst [vmem:[#allocation30_spill] sm:$0xff] %v8928_v38  ;;  %v8939_v13 = vsub.f32 %v167_v4, %v8877_v31  ;;  %v11280_v62 = vand.u32 4294901760, %v8775_v50  ;;  %v163_v46 = vld [vmem:[#allocation5 + $0x390] sm:$0xff]  ;;  %v8956_v4 = vand.u32 4294901760, %v284_v20 }
 0x165   :  { %11275 = vst [vmem:[#allocation32_spill] sm:$0xff] %v8915_v18  ;;  %6184 = vmatpush3.msra.mxu1 %v11276_v37  ;;  %6158 = vmatprep.subr.mxu0 %v8737_v52  ;;  %v8935_v37 = vsub.f32 %v150_v54, %v8893_v26  ;;  %v11281_v52 = vand.u32 4294901760, %v8854_v15  ;;  %v8952_v54 = vsub.f32 %v8849_v6, %v11282_v58  ;;  %v11284_v50 = vand.u32 4294901760, %v8784_v63 }
 0x166   :  { %6185 = vmatprep.subr.mxu1 %v11279_v19  ;;  %6159 = vmatpush3.msra.mxu0 %v8725_v55  ;;  %11283 = vst [vmem:[#allocation38_spill] sm:$0xff] %v8956_v4  ;;  %v8962_v55 = vand.u32 4294901760, %v147_v27  ;;  %v8968_v58 = vand.u32 4294901760, %v8857_v14  ;;  %v11286_v6 = vand.u32 4294901760, %v8798_v40  ;;  %v8975_v63 = vsub.f32 %v149_v2, %v8928_v38  ;;  %v162_v2 = vld [vmem:[#allocation5 + $0x388] sm:$0xff] }
 0x167   :  { %6186 = vmatpush3.msra.mxu1 %v11280_v62  ;;  %v8947_v19 = vsub.f32 %v8854_v15, %v11281_v52  ;;  %6160 = vmatprep.subr.mxu0 %v8748_v3  ;;  %v8965_v52 = vsub.f32 %v166_v24, %v8915_v18  ;;  %v3059_v3 = vand.u32 4294901760, %v8924_v28  ;;  %v11288_v24 = vand.u32 4294901760, %v8819_v44 }
 0x168   :  { %6187 = vmatprep.subr.mxu1 %v11284_v50  ;;  %11285 = vst [vmem:[#allocation44_spill] sm:$0xff] %v8968_v58  ;;  %6161 = vmatpush3.msra.mxu0 %v8786_v10  ;;  %11287 = vst [vmem:[#allocation40_spill] sm:$0xff] %v8975_v63  ;;  %v8977_v50 = vand.u32 4294901760, %v164_v5  ;;  %v11289_v15 = vand.u32 4294901760, %v8896_v57  ;;  %v8988_v40 = vand.u32 4294901760, %v163_v46  ;;  %v8992_v28 = vsub.f32 %v165_v7, %v8926_v1 }
 0x169   :  { %6188 = vmatpush3.msra.mxu1 %v11286_v6  ;;  %6162 = vmatprep.subr.mxu0 %v8807_v36  ;;  %v11291_v62 = vand.u32 4294901760, %v8832_v9  ;;  %v3178_v44 = vand.u32 4294901760, %v8947_v19  ;;  %v146_v36 = vld [vmem:[#allocation5 + $0x308] sm:$0xff]  ;;  %v11292_v7 = vand.u32 4294901760, %v8843_v41  ;;  %v11293_v6 = vand.u32 4294901760, %v8901_v21 }
 0x16a   :  { %6189 = vmatprep.subr.mxu1 %v11288_v24  ;;  %v8986_v10 = vsub.f32 %v8896_v57, %v11289_v15  ;;  %11290 = vst [vmem:[#allocation43_spill] sm:$0xff] %v8988_v40  ;;  %6163 = vmatpush3.msra.mxu0 %v8809_v61  ;;  %v3066_v24 = vand.u32 4294901760, %v8952_v54  ;;  %v9000_v15 = vsub.f32 %v148_v47, %v8954_v22  ;;  %v161_v47 = vld [vmem:[#allocation5 + $0x380] sm:$0xff]  ;;  %v11294_v41 = vand.u32 4294901760, %v8912_v23 }
 0x16b   :  { %6190 = vmatpush3.msra.mxu1 %v11291_v62  ;;  %v9003_v57 = vsub.f32 %v284_v20, %v8956_v4  ;;  %6164 = vmatprep.subr.mxu0 %v8838_v49  ;;  %v3072_v9 = vsub.f32 %v8901_v21, %v11293_v6  ;;  %v9012_v19 = vsub.f32 %v147_v27, %v8962_v55  ;;  %v145_v62 = vld [vmem:[#allocation5 + $0x300] sm:$0xff]  ;;  %v9023_v49 = vand.u32 4294901760, %v162_v2 }
 0x16c   :  { %6191 = vmatprep.subr.mxu1 %v11292_v7  ;;  %v9017_v20 = vsub.f32 %v8857_v14, %v8968_v58  ;;  %6165 = vmatpush3.msra.mxu0 %v8851_v59  ;;  %v3079_v7 = vsub.f32 %v8912_v23, %v11294_v41  ;;  %v9027_v6 = vsub.f32 %v164_v5, %v8977_v50  ;;  %v3185_v14 = vand.u32 4294901760, %v8986_v10 }
 0x16d   :  { %6192 = vmatpush3.msra.mxu1 %v3045_v8  ;;  %6166 = vmatprep.subr.mxu0 %v8877_v31  ;;  %v11295_v54 = vand.u32 4294901760, %v8939_v13  ;;  %v9034_v59 = vand.u32 4294901760, %v146_v36  ;;  %v11296_v27 = vand.u32 4294901760, %v8872_v17  ;;  %v9040_v5 = vand.u32 4294901760, %v161_v47 }
 0x16e   :  { %6193 = vmatprep.subr.mxu1 %v3164_v11  ;;  %6167 = vmatpush3.msra.mxu0 %v8867_v48  ;;  %v9042_v61 = vand.u32 4294901760, %v145_v62  ;;  %v9046_v10 = vsub.f32 %v163_v46, %v8988_v40  ;;  %v3073_v41 = vand.u32 4294901760, %v3072_v9  ;;  %v11298_v48 = vand.u32 4294901760, %v8965_v52 }
 0x16f   :  { %v3191_v8 = vsub.f32 %v8939_v13, %v11295_v54  ;;  %6194 = vmatpush3.msra.mxu1 %v11296_v27  ;;  %6168 = vmatprep.subr.mxu0 %v8915_v18  ;;  %v11297_v54 = vand.u32 4294901760, %v8891_v0  ;;  %v10764_v27 = vand.u32 4294901760, %v8975_v63  ;;  %v3080_v11 = vand.u32 4294901760, %v3079_v7 }
 0x170   :  { %v3198_v17 = vsub.f32 %v8965_v52, %v11298_v48  ;;  %6169 = vmatpush3.msra.mxu0 %v8893_v26  ;;  %v11299_v46 = vand.u32 4294901760, %v8935_v37  ;;  %v9062_v9 = vsub.f32 %v162_v2, %v9023_v49  ;;  %v11300_v31 = vand.u32 4294901760, %v8992_v28  ;;  %3237 = vmatprep.mubr.f32.mxu1 %v8956_v4  ;;  %v11330_v4 = vld [vmem:[#allocation34_spill] sm:$0xff] }
 0x171   :  { %6195 = vmatprep.subr.mxu1 %v11297_v54  ;;  %6170 = vmatprep.subr.mxu0 %v8926_v1  ;;  %v3192_v48 = vand.u32 4294901760, %v3191_v8  ;;  %v9066_v54 = vsub.f32 %v146_v36, %v9034_v59  ;;  %v11302_v2 = vand.u32 4294901760, %v9003_v57  ;;  %v9081_v36 = vsub.f32 %v161_v47, %v9040_v5 }
 0x172   :  { %6196 = vmatpush3.msra.mxu1 %v3059_v3  ;;  %v3086_v18 = vsub.f32 %v8935_v37, %v11299_v46  ;;  %v3205_v3 = vsub.f32 %v8992_v28, %v11300_v31  ;;  %6171 = vmatpush3.msra.mxu0 %v8928_v38  ;;  %v9074_v46 = vsub.f32 %v145_v62, %v9042_v61  ;;  %v3199_v31 = vand.u32 4294901760, %v3198_v17 }
 0x173   :  { %6197 = vmatprep.subr.mxu1 %v3178_v44  ;;  %v2999_v44 = vsub.f32 %v9003_v57, %v11302_v2  ;;  %11303 = vst [vmem:[#allocation42_spill] sm:$0xff] %v9081_v36  ;;  %6172 = vmatprep.subr.mxu0 %v8977_v50  ;;  %v11304_v62 = vand.u32 4294901760, %v9017_v20  ;;  %v11305_v47 = vand.u32 4294901760, %v9027_v6 }
 0x174   :  { %6198 = vmatpush3.msra.mxu1 %v3066_v24  ;;  %11301 = vst [vmem:[#allocation37_spill] sm:$0xff] %v9074_v46  ;;  %v3093_v24 = vsub.f32 %v8975_v63, %v10764_v27  ;;  %6173 = vmatpush3.msra.mxu0 %v8954_v22  ;;  %v3087_v2 = vand.u32 4294901760, %v3086_v18  ;;  %v3206_v17 = vand.u32 4294901760, %v3205_v3  ;;  %v11306_v27 = vand.u32 4294901760, %v9000_v15 }
 0x175   :  { %6199 = vmatprep.subr.mxu1 %v3185_v14  ;;  %v3005_v7 = vsub.f32 %v9017_v20, %v11304_v62  ;;  %v3212_v8 = vsub.f32 %v9027_v6, %v11305_v47  ;;  %6174 = vmatprep.subr.mxu0 %v8988_v40  ;;  %v3000_v18 = vand.u32 4294901760, %v2999_v44  ;;  %v10768_v14 = vand.u32 4294901760, %v9081_v36 }
 0x176   :  { %6200 = vmatpush3.msra.mxu1 %v3073_v41  ;;  %v3100_v62 = vsub.f32 %v9000_v15, %v11306_v27  ;;  %6175 = vmatpush3.msra.mxu0 %v8962_v55  ;;  %v11307_v41 = vand.u32 4294901760, %v9046_v10  ;;  %v11308_v40 = vand.u32 4294901760, %v9012_v19  ;;  %v10767_v0 = vand.u32 4294901760, %v9074_v46 }
 0x177   :  { %6201 = vmatprep.subr.mxu1 %v3192_v48  ;;  %6176 = vmatprep.subr.mxu0 %v9023_v49  ;;  %v3094_v48 = vand.u32 4294901760, %v3093_v24  ;;  %v3006_v3 = vand.u32 4294901760, %v3005_v7  ;;  %v11309_v44 = vand.u32 4294901760, %v9062_v9  ;;  %v11310_v7 = vand.u32 4294901760, %v9066_v54 }
 0x178   :  { %6202 = vmatpush3.msra.mxu1 %v3080_v11  ;;  %v3219_v47 = vsub.f32 %v9046_v10, %v11307_v41  ;;  %v3107_v27 = vsub.f32 %v9012_v19, %v11308_v40  ;;  %6177 = vmatpush3.msra.mxu0 %v9034_v59  ;;  %v3213_v11 = vand.u32 4294901760, %v3212_v8  ;;  %v3233_v8 = vsub.f32 %v9081_v36, %v10768_v14  ;;  %v11328_v14 = vld [vmem:[#allocation23_spill] sm:$0xff] }
 0x179   :  { %6203 = vmatprep.subr.mxu1 %v3199_v31  ;;  %v3226_v41 = vsub.f32 %v9062_v9, %v11309_v44  ;;  %6178 = vmatprep.subr.mxu0 %v9040_v5  ;;  %v3101_v31 = vand.u32 4294901760, %v3100_v62  ;;  %v3114_v24 = vsub.f32 %v9066_v54, %v11310_v7  ;;  %v11314_v44 = vld [vmem:[#allocation20_spill] sm:$0xff]  ;;  %v11317_v7 = vld [vmem:[#allocation35_spill] sm:$0xff] }
 0x17a   :  { %6204 = vmatpush3.msra.mxu1 %v3087_v2  ;;  %6179 = vmatpush3.msra.mxu0 %v9042_v61  ;;  %v3220_v40 = vand.u32 4294901760, %v3219_v47  ;;  %v3108_v2 = vand.u32 4294901760, %v3107_v27  ;;  %v3234_v47 = vand.u32 4294901760, %v3233_v8  ;;  %v11312_v27 = vld [vmem:[#allocation21_spill] sm:$0xff] }
 0x17b   :  { %6205 = vmatprep.subr.mxu1 %v3206_v17  ;;  %3001 = vmatprep.mubr.f32.mxu0 %v3000_v18  ;;  %v3121_v17 = vsub.f32 %v9074_v46, %v10767_v0  ;;  %v3227_v62 = vand.u32 4294901760, %v3226_v41  ;;  %v3115_v18 = vand.u32 4294901760, %v3114_v24  ;;  %v11315_v41 = vld [vmem:[#allocation31_spill] sm:$0xff]  ;;  %v11318_v24 = vld [vmem:[#allocation29_spill] sm:$0xff]  ;;  %v11327_v0 = vld [vmem:[#allocation22_spill] sm:$0xff] }
 0x17c   :  { %6206 = vmatpush3.msra.mxu1 %v3094_v48  ;;  %3007 = vmatmul.mubr.f32.vlgmr.msra.gmra.mxu0 %v3006_v3  ;;  %v11311_v3 = vld [vmem:[#allocation16_spill] sm:$0xff]  ;;  %v11320_v8 = vld [vmem:[#allocation25_spill] sm:$0xff] }
 0x17d   :  { %6207 = vmatprep.subr.mxu1 %v3213_v11  ;;  %6218 = vmatprep.subr.mxu0 %v8659_v42  ;;  %v3122_v48 = vand.u32 4294901760, %v3121_v17  ;;  %v11313_v11 = vld [vmem:[#allocation26_spill] sm:$0xff]  ;;  %v11322_v17 = vld [vmem:[#allocation17_spill] sm:$0xff] }
 0x17e   :  { %6208 = vmatpush3.msra.mxu1 %v3101_v31  ;;  %6219 = vmatpush3.msra.mxu0 %v8675_v56  ;;  %v11316_v31 = vld [vmem:[#allocation24_spill] sm:$0xff] }
 0x17f   :  { %6209 = vmatprep.subr.mxu1 %v3220_v40  ;;  %6220 = vmatprep.subr.mxu0 %v8684_v12  ;;  %v11319_v40 = vld [vmem:[#allocation15_spill] sm:$0xff] }
 0x180   :  { %6210 = vmatpush3.msra.mxu1 %v3108_v2  ;;  %6221 = vmatpush3.msra.mxu0 %v8690_v16  ;;  %v11321_v2 = vld [vmem:[#allocation28_spill] sm:$0xff] }
 0x181   :  { %6211 = vmatprep.subr.mxu1 %v3227_v62  ;;  %6222 = vmatprep.subr.mxu0 %v8700_v33  ;;  %v11323_v62 = vld [vmem:[#allocation41_spill] sm:$0xff] }
 0x182   :  { %6212 = vmatpush3.msra.mxu1 %v3115_v18  ;;  %6223 = vmatpush3.msra.mxu0 %v8706_v60  ;;  %v11324_v18 = vld [vmem:[#allocation18_spill] sm:$0xff] }
 0x183   :  { %6213 = vmatprep.subr.mxu1 %v3234_v47  ;;  %6224 = vmatprep.subr.mxu0 %v8729_v39  ;;  %v11325_v47 = vld [vmem:[#allocation33_spill] sm:$0xff] }
 0x184   :  { %6214 = vmatpush3.msra.mxu1 %v3122_v48  ;;  %6225 = vmatpush3.msra.mxu0 %v8735_v32  ;;  %v11326_v48 = vld [vmem:[#allocation39_spill] sm:$0xff] }
 0x185   :  { %3239 = vmatmul.mubr.f32.vlgmr.msra.gmra.mxu1 %v8968_v58  ;;  %6226 = vmatprep.subr.mxu0 %v8752_v45  ;;  %v11329_v58 = vld [vmem:[#allocation27_spill] sm:$0xff] }
 0x186   :  { %6253 = vmatprep.subr.mxu1 %v8640_v25  ;;  %6227 = vmatpush3.msra.mxu0 %v8767_v34 }
 0x187   :  { %6254 = vmatpush3.msra.mxu1 %v8651_v30  ;;  %6228 = vmatprep.subr.mxu0 %v8790_v35 }
 0x188   :  { %6255 = vmatprep.subr.mxu1 %v8656_v43  ;;  %6229 = vmatpush3.msra.mxu0 %v8770_v51 }
 0x189   :  { %6256 = vmatpush3.msra.mxu1 %v8664_v53  ;;  %6230 = vmatprep.subr.mxu0 %v8802_v29 }
 0x18a   :  { %6257 = vmatprep.subr.mxu1 %v11311_v3  ;;  %6231 = vmatpush3.msra.mxu0 %v11312_v27 }
 0x18b   :  { %6258 = vmatpush3.msra.mxu1 %v11313_v11  ;;  %6232 = vmatprep.subr.mxu0 %v11314_v44 }
 0x18c   :  { %6259 = vmatprep.subr.mxu1 %v11315_v41  ;;  %6233 = vmatpush3.msra.mxu0 %v11316_v31 }
 0x18d   :  { %6260 = vmatpush3.msra.mxu1 %v11317_v7  ;;  %6234 = vmatprep.subr.mxu0 %v11318_v24 }
 0x18e   :  { %6261 = vmatprep.subr.mxu1 %v11319_v40  ;;  %6235 = vmatpush3.msra.mxu0 %v8901_v21 }
 0x18f   :  { %6262 = vmatpush3.msra.mxu1 %v11320_v8  ;;  %6236 = vmatprep.subr.mxu0 %v8939_v13 }
 0x190   :  { %6263 = vmatprep.subr.mxu1 %v11321_v2  ;;  %6237 = vmatpush3.msra.mxu0 %v8912_v23 }
 0x191   :  { %6264 = vmatpush3.msra.mxu1 %v11322_v17  ;;  %6238 = vmatprep.subr.mxu0 %v8965_v52 }
 0x192   :  { %6265 = vmatprep.subr.mxu1 %v11323_v62  ;;  %6239 = vmatpush3.msra.mxu0 %v8935_v37 }
 0x193   :  { %6266 = vmatpush3.msra.mxu1 %v11324_v18  ;;  %6240 = vmatprep.subr.mxu0 %v8992_v28 }
 0x194   :  { %6267 = vmatprep.subr.mxu1 %v11325_v47  ;;  %6241 = vmatpush3.msra.mxu0 %v8975_v63  ;;  %v11331_v63 = vld [vmem:[#allocation32_spill] sm:$0xff] }
 0x195   :  { %6268 = vmatpush3.msra.mxu1 %v11326_v48  ;;  %6242 = vmatprep.subr.mxu0 %v9027_v6 }
 0x196   :  { %6269 = vmatprep.subr.mxu1 %v11327_v0  ;;  %6243 = vmatpush3.msra.mxu0 %v9000_v15 }
 0x197   :  { %6270 = vmatpush3.msra.mxu1 %v11328_v14  ;;  %6244 = vmatprep.subr.mxu0 %v9046_v10 }
 0x198   :  { %6271 = vmatprep.subr.mxu1 %v11329_v58  ;;  %6245 = vmatpush3.msra.mxu0 %v9012_v19 }
 0x199   :  { %6272 = vmatpush3.msra.mxu1 %v11330_v4  ;;  %6246 = vmatprep.subr.mxu0 %v9062_v9 }
 0x19a   :  { %6273 = vmatprep.subr.mxu1 %v11331_v63  ;;  %6247 = vmatpush3.msra.mxu0 %v9066_v54  ;;  %v11332_v63 = vand.u32 4294901760, %v8659_v42  ;;  %v11337_v42 = vand.u32 4294901760, %v8700_v33  ;;  %v11342_v33 = vand.u32 4294901760, %v9017_v20 }
 0x19b   :  { %6274 = vmatpush3.msra.mxu1 %v8893_v26  ;;  %6248 = vmatprep.subr.mxu0 %v9081_v36  ;;  %v11333_v26 = vand.u32 4294901760, %v8675_v56  ;;  %v11334_v36 = vld [vmem:[#allocation43_spill] sm:$0xff]  ;;  %v11338_v56 = vand.u32 4294901760, %v8706_v60  ;;  %v11344_v60 = vand.u32 4294901760, %v8767_v34  ;;  %v11349_v34 = vand.u32 4294901760, %v11314_v44  ;;  %v190_v44 = vld [vmem:[#allocation5 + $0x468] sm:$0xff] }
 0x19c   :  { %6275 = vmatprep.subr.mxu1 %v8926_v1  ;;  %6249 = vmatpush3.msra.mxu0 %v9074_v46  ;;  %v11335_v46 = vand.u32 4294901760, %v8684_v12  ;;  %v11339_v12 = vand.u32 4294901760, %v8729_v39  ;;  %v11345_v39 = vand.u32 4294901760, %v8790_v35  ;;  %v191_v35 = vld [vmem:[#allocation5 + $0x470] sm:$0xff] }
 0x19d   :  { %3374 = vmatprep.mubr.f32.mxu0 %v9003_v57  ;;  %6276 = vmatpush3.msra.mxu1 %v8928_v38  ;;  %v11336_v38 = vand.u32 4294901760, %v8690_v16  ;;  %v11340_v16 = vand.u32 4294901760, %v9003_v57  ;;  %v208_v57 = vld [vmem:[#allocation5 + $0x4f8] sm:$0xff] }
 0x19e   :  { %3377 = vmatmul.mubr.f32.vlgmr.msra.gmra.mxu0 %v9017_v20  ;;  %6277 = vmatprep.subr.mxu1 %v8977_v50  ;;  %v206_v20 = vld [vmem:[#allocation5 + $0x4e8] sm:$0xff] }
 0x19f   :  { %6288 = vmatprep.subr.mxu0 %v11332_v63  ;;  %6278 = vmatpush3.msra.mxu1 %v8954_v22 }
 0x1a0   :  { %6289 = vmatpush3.msra.mxu0 %v11333_v26  ;;  %6279 = vmatprep.subr.mxu1 %v11334_v36  ;;  %v11341_v26 = vand.u32 4294901760, %v8735_v32  ;;  %v11346_v32 = vand.u32 4294901760, %v8770_v51  ;;  %v11350_v51 = vand.u32 4294901760, %v11316_v31  ;;  %v11354_v31 = vand.u32 4294901760, %v8912_v23 }
 0x1a1   :  { %6290 = vmatprep.subr.mxu0 %v11335_v46  ;;  %6280 = vmatpush3.msra.mxu1 %v8962_v55  ;;  %v11352_v46 = vand.u32 4294901760, %v8901_v21  ;;  %v9261_v21 = vand.u32 4294901760, %v206_v20  ;;  %v9272_v23 = vand.u32 4294901760, %v190_v44 }
 0x1a2   :  { %6291 = vmatpush3.msra.mxu0 %v11336_v38  ;;  %6281 = vmatprep.subr.mxu1 %v9023_v49  ;;  %v11343_v38 = vand.u32 4294901760, %v8752_v45  ;;  %v11347_v45 = vand.u32 4294901760, %v8802_v29  ;;  %v11351_v29 = vand.u32 4294901760, %v11318_v24  ;;  %v11356_v24 = vand.u32 4294901760, %v8965_v52 }
 0x1a3   :  { %6292 = vmatprep.subr.mxu0 %v11337_v42  ;;  %6282 = vmatpush3.msra.mxu1 %v9034_v59  ;;  %11355 = vst [vmem:[#allocation19_spill] sm:$0xff] %v9261_v21  ;;  %11358 = vst [vmem:[#allocation16_spill] sm:$0xff] %v9272_v23  ;;  %v11359_v52 = vand.u32 4294901760, %v8992_v28  ;;  %v9292_v28 = vsub.f32 %v206_v20, %v9261_v21  ;;  %v11375_v20 = vld [vmem:[#allocation36_spill] sm:$0xff] }
 0x1a4   :  { %6293 = vmatpush3.msra.mxu0 %v11338_v56  ;;  %6283 = vmatprep.subr.mxu1 %v9040_v5 }
 0x1a5   :  { %6294 = vmatprep.subr.mxu0 %v11339_v12  ;;  %6284 = vmatpush3.msra.mxu1 %v9042_v61 }
 0x1a6   :  { %3481 = vmatprep.mubr.f32.mxu1 %v11340_v16  ;;  %6295 = vmatpush3.msra.mxu0 %v11341_v26  ;;  %v203_v26 = vld [vmem:[#allocation5 + $0x4d0] sm:$0xff] }
 0x1a7   :  { %3485 = vmatmul.mubr.f32.vlgmr.msra.gmra.mxu1 %v11342_v33  ;;  %6296 = vmatprep.subr.mxu0 %v11343_v38 }
 0x1a8   :  { %6323 = vmatprep.subr.mxu1 %v8640_v25  ;;  %6297 = vmatpush3.msra.mxu0 %v11344_v60  ;;  %v11348_v25 = vand.u32 4294901760, %v11312_v27  ;;  %v11353_v27 = vand.u32 4294901760, %v8939_v13 }
 0x1a9   :  { %6324 = vmatpush3.msra.mxu1 %v8651_v30  ;;  %6298 = vmatprep.subr.mxu0 %v11345_v39  ;;  %v192_v30 = vld [vmem:[#allocation5 + $0x478] sm:$0xff]  ;;  %v11367_v39 = vand.u32 4294901760, %v9000_v15  ;;  %v9317_v15 = vand.u32 4294901760, %v203_v26 }
 0x1aa   :  { %6325 = vmatprep.subr.mxu1 %v8656_v43  ;;  %6299 = vmatpush3.msra.mxu0 %v11346_v32  ;;  %v9235_v43 = vand.u32 4294901760, %v208_v57  ;;  %v9243_v63 = vand.u32 4294901760, %v192_v30 }
 0x1ab   :  { %6326 = vmatpush3.msra.mxu1 %v8664_v53  ;;  %6300 = vmatprep.subr.mxu0 %v11347_v45  ;;  %v207_v53 = vld [vmem:[#allocation5 + $0x4f0] sm:$0xff]  ;;  %11369 = vst [vmem:[#allocation24_spill] sm:$0xff] %v9317_v15 }
 0x1ac   :  { %6327 = vmatprep.subr.mxu1 %v11311_v3  ;;  %6301 = vmatpush3.msra.mxu0 %v11348_v25  ;;  %v9248_v3 = vand.u32 4294901760, %v207_v53  ;;  %v9267_v13 = vsub.f32 %v192_v30, %v9243_v63  ;;  %v11370_v25 = vand.u32 4294901760, %v9012_v19  ;;  %v11371_v30 = vand.u32 4294901760, %v9062_v9 }
 0x1ad   :  { %6328 = vmatpush3.msra.mxu1 %v11313_v11  ;;  %6302 = vmatprep.subr.mxu0 %v11349_v34  ;;  %v9253_v11 = vand.u32 4294901760, %v191_v35  ;;  %v11372_v34 = vld [vmem:[#allocation32_spill] sm:$0xff]  ;;  %v11374_v9 = vand.u32 4294901760, %v9066_v54 }
 0x1ae   :  { %6329 = vmatprep.subr.mxu1 %v11315_v41  ;;  %6303 = vmatpush3.msra.mxu0 %v11350_v51  ;;  %v9256_v41 = vsub.f32 %v208_v57, %v9235_v43  ;;  %v9275_v42 = vsub.f32 %v207_v53, %v9248_v3  ;;  %v10783_v60 = vand.u32 4294901760, %v9267_v13  ;;  %v11368_v57 = vand.u32 4294901760, %v9046_v10 }
 0x1af   :  { %6330 = vmatpush3.msra.mxu1 %v11317_v7  ;;  %6304 = vmatprep.subr.mxu0 %v11351_v29  ;;  %v205_v7 = vld [vmem:[#allocation5 + $0x4e0] sm:$0xff] }
 0x1b0   :  { %6331 = vmatprep.subr.mxu1 %v11319_v40  ;;  %6305 = vmatpush3.msra.mxu0 %v11352_v46  ;;  %v189_v40 = vld [vmem:[#allocation5 + $0x460] sm:$0xff]  ;;  %v9283_v56 = vand.u32 4294901760, %v205_v7  ;;  %v10781_v32 = vand.u32 4294901760, %v9275_v42  ;;  %v9339_v19 = vsub.f32 %v9267_v13, %v10783_v60  ;;  %v183_v60 = vld [vmem:[#allocation5 + $0x430] sm:$0xff] }
 0x1b1   :  { %6332 = vmatpush3.msra.mxu1 %v11320_v8  ;;  %6306 = vmatprep.subr.mxu0 %v11353_v27  ;;  %v11357_v8 = vand.u32 4294901760, %v8935_v37  ;;  %v10784_v37 = vand.u32 4294901760, %v9256_v41  ;;  %v9289_v16 = vand.u32 4294901760, %v189_v40 }
 0x1b2   :  { %6333 = vmatprep.subr.mxu1 %v11321_v2  ;;  %6307 = vmatpush3.msra.mxu0 %v11354_v31  ;;  %v204_v2 = vld [vmem:[#allocation5 + $0x4d8] sm:$0xff]  ;;  %11360 = vst [vmem:[#allocation21_spill] sm:$0xff] %v9283_v56  ;;  %v9321_v45 = vsub.f32 %v205_v7, %v9283_v56  ;;  %v9352_v46 = vsub.f32 %v9275_v42, %v10781_v32 }
 0x1b3   :  { %6334 = vmatpush3.msra.mxu1 %v11322_v17  ;;  %6308 = vmatprep.subr.mxu0 %v11356_v24  ;;  %v188_v17 = vld [vmem:[#allocation5 + $0x458] sm:$0xff]  ;;  %11363 = vst [vmem:[#allocation26_spill] sm:$0xff] %v9289_v16  ;;  %v9297_v33 = vand.u32 4294901760, %v204_v2  ;;  %v9327_v10 = vsub.f32 %v189_v40, %v9289_v16  ;;  %v201_v24 = vld [vmem:[#allocation5 + $0x4c0] sm:$0xff] }
 0x1b4   :  { %6335 = vmatprep.subr.mxu1 %v11323_v62  ;;  %6309 = vmatpush3.msra.mxu0 %v11357_v8  ;;  %v9281_v62 = vsub.f32 %v191_v35, %v9253_v11  ;;  %v9299_v38 = vand.u32 4294901760, %v188_v17  ;;  %v186_v35 = vld [vmem:[#allocation5 + $0x448] sm:$0xff]  ;;  %v10782_v40 = vand.u32 4294901760, %v9321_v45  ;;  %v185_v8 = vld [vmem:[#allocation5 + $0x440] sm:$0xff] }
 0x1b5   :  { %6336 = vmatpush3.msra.mxu1 %v11324_v18  ;;  %6310 = vmatprep.subr.mxu0 %v11359_v52  ;;  %v11361_v18 = vld [vmem:[#allocation40_spill] sm:$0xff]  ;;  %11365 = vst [vmem:[#allocation20_spill] sm:$0xff] %v9297_v33  ;;  %v9344_v29 = vsub.f32 %v204_v2, %v9297_v33  ;;  %v9366_v2 = vsub.f32 %v203_v26, %v9317_v15 }
 0x1b6   :  { %6337 = vmatprep.subr.mxu1 %v11325_v47  ;;  %v11362_v12 = vand.u32 4294901760, %v11361_v18  ;;  %v11364_v47 = vand.u32 4294901760, %v9027_v6  ;;  %11366 = vst [vmem:[#allocation31_spill] sm:$0xff] %v9299_v38  ;;  %v187_v6 = vld [vmem:[#allocation5 + $0x450] sm:$0xff]  ;;  %v9334_v53 = vsub.f32 %v188_v17, %v9299_v38  ;;  %v11378_v17 = vld [vmem:[#allocation37_spill] sm:$0xff]  ;;  %v11384_v26 = vld [vmem:[#allocation44_spill] sm:$0xff] }
 0x1b7   :  { %6338 = vmatpush3.msra.mxu1 %v11326_v48  ;;  %v9306_v48 = vsub.f32 %v190_v44, %v9272_v23  ;;  %v9341_v51 = vand.u32 4294901760, %v187_v6  ;;  %v11376_v44 = vld [vmem:[#allocation42_spill] sm:$0xff]  ;;  %v11379_v52 = vand.u32 4294901760, %v11378_v17  ;;  %v9397_v17 = vand.u32 4294901760, %v201_v24 }
 0x1b8   :  { %6311 = vmatpush3.msra.mxu0 %v11362_v12  ;;  %6339 = vmatprep.subr.mxu1 %v11327_v0  ;;  %v9315_v0 = vsub.f32 %v9256_v41, %v10784_v37  ;;  %v11377_v31 = vand.u32 4294901760, %v11376_v44  ;;  %v11380_v18 = vld [vmem:[#allocation38_spill] sm:$0xff] }
 0x1b9   :  { %6312 = vmatprep.subr.mxu0 %v11364_v47  ;;  %6340 = vmatpush3.msra.mxu1 %v11328_v14  ;;  %v10780_v14 = vand.u32 4294901760, %v9281_v62  ;;  %11373 = vst [vmem:[#allocation35_spill] sm:$0xff] %v9341_v51  ;;  %v10779_v27 = vand.u32 4294901760, %v9306_v48  ;;  %v9378_v47 = vand.u32 4294901760, %v186_v35  ;;  %11385 = vst [vmem:[#allocation25_spill] sm:$0xff] %v9397_v17  ;;  %v11392_v44 = vld [vmem:[#allocation14_spill] sm:$0xff] }
 0x1ba   :  { %6313 = vmatpush3.msra.mxu0 %v11367_v39  ;;  %6341 = vmatprep.subr.mxu1 %v11329_v58  ;;  %v10778_v58 = vand.u32 4294901760, %v9292_v28  ;;  %v10785_v39 = vand.u32 4294901760, %v9327_v10 }
 0x1bb   :  { %6314 = vmatprep.subr.mxu0 %v11368_v57  ;;  %6342 = vmatpush3.msra.mxu1 %v11330_v4  ;;  %v202_v4 = vld [vmem:[#allocation5 + $0x4c8] sm:$0xff]  ;;  %v9362_v54 = vsub.f32 %v9281_v62, %v10780_v14  ;;  %11382 = vst [vmem:[#allocation15_spill] sm:$0xff] %v9378_v47  ;;  %v200_v57 = vld [vmem:[#allocation5 + $0x4b8] sm:$0xff]  ;;  %v9418_v32 = vsub.f32 %v186_v35, %v9378_v47 }
 0x1bc   :  { %6315 = vmatpush3.msra.mxu0 %v11370_v25  ;;  %6343 = vmatprep.subr.mxu1 %v11372_v34  ;;  %v9376_v12 = vsub.f32 %v9292_v28, %v10778_v58  ;;  %v11383_v25 = vld [vmem:[#allocation30_spill] sm:$0xff]  ;;  %v9385_v34 = vsub.f32 %v187_v6, %v9341_v51  ;;  %v184_v6 = vld [vmem:[#allocation5 + $0x438] sm:$0xff]  ;;  %v9409_v58 = vand.u32 4294901760, %v200_v57 }
 0x1bd   :  { %6316 = vmatprep.subr.mxu0 %v11371_v30  ;;  %6344 = vmatpush3.msra.mxu1 %v11375_v20  ;;  %v10787_v20 = vand.u32 4294901760, %v9334_v53  ;;  %v9412_v14 = vld [vmem:[#allocation2 + $0x10] sm:$0xff]  ;;  %11389 = vst [vmem:[#allocation18_spill] sm:$0xff] %v9418_v32  ;;  %v9435_v35 = vand.u32 4294901760, %v184_v6 }
 0x1be   :  { %6317 = vmatpush3.msra.mxu0 %v11374_v9  ;;  %6345 = vmatprep.subr.mxu1 %v8926_v1  ;;  %v9371_v1 = vand.u32 4294901760, %v202_v4  ;;  %v10786_v9 = vand.u32 4294901760, %v9344_v29  ;;  %11387 = vst [vmem:[#allocation17_spill] sm:$0xff] %v9409_v58  ;;  %11388 = vst [vmem:[#allocation41_spill] sm:$0xff] %v9412_v14  ;;  %v9454_v30 = vrot.slane %v9412_v14, %v11392_v44 }
 0x1bf   :  { %6318 = vmatprep.subr.mxu0 %v11377_v31  ;;  %3651 = vmatprep.mubr.f32.mxu0 %v11380_v18  ;;  %v9395_v31 = vsub.f32 %v9306_v48, %v10779_v27  ;;  %v10788_v27 = vand.u32 4294901760, %v9366_v2  ;;  %11390 = vst [vmem:[#allocation33_spill] sm:$0xff] %v9435_v35  ;;  %v9480_v44 = vsub.f32 %v184_v6, %v9435_v35  ;;  %v11400_v6 = vand.u32 4294901760, %v9339_v19 }
 0x1c0   :  { %6319 = vmatpush3.msra.mxu0 %v11379_v52  ;;  %11381 = vst [vmem:[#allocation29_spill] sm:$0xff] %v9371_v1  ;;  %6346 = vmatpush3.msra.mxu1 %v11383_v25  ;;  %v9399_v52 = vand.u32 4294901760, %v185_v8  ;;  %v9407_v25 = vsub.f32 %v9321_v45, %v10782_v40  ;;  %v9423_v40 = vsub.f32 %v9327_v10, %v10785_v39  ;;  %v11404_v19 = vand.u32 4294901760, %v9352_v46 }
 0x1c1   :  { %3653 = vmatmul.mubr.f32.vlgmr.msra.gmra.mxu0 %v11384_v26  ;;  %6347 = vmatprep.subr.mxu1 %v8977_v50  ;;  %v9426_v37 = vsub.f32 %v202_v4, %v9371_v1  ;;  %v9440_v39 = vsub.f32 %v9334_v53, %v10787_v20  ;;  %v9462_v20 = vsub.f32 %v9366_v2, %v10788_v27  ;;  %v180_v4 = vld [vmem:[#allocation5 + $0x418] sm:$0xff] }
 0x1c2   :  { %6358 = vmatprep.subr.mxu0 %v9235_v43  ;;  %11386 = vst [vmem:[#allocation28_spill] sm:$0xff] %v9399_v52  ;;  %6348 = vmatpush3.msra.mxu1 %v8954_v22  ;;  %v199_v22 = vld [vmem:[#allocation5 + $0x4b0] sm:$0xff]  ;;  %v9447_v50 = vsub.f32 %v185_v8, %v9399_v52  ;;  %v9464_v8 = vand.u32 4294901760, %v183_v60  ;;  %11395 = vst [vmem:[#allocation27_spill] sm:$0xff] %v9480_v44  ;;  %v196_v27 = vld [vmem:[#allocation5 + $0x498] sm:$0xff] }
 0x1c3   :  { %6359 = vmatpush3.msra.mxu0 %v9243_v63  ;;  %6349 = vmatprep.subr.mxu1 %v11334_v36  ;;  %v9433_v36 = vsub.f32 %v9344_v29, %v10786_v9  ;;  %v9450_v9 = vsub.f32 %v201_v24, %v9397_v17  ;;  %v9467_v24 = vsub.f32 %v200_v57, %v9409_v58  ;;  %v9472_v7 = vand.u32 4294901760, %v199_v22 }
 0x1c4   :  { %6360 = vmatprep.subr.mxu0 %v9248_v3  ;;  %6350 = vmatpush3.msra.mxu1 %v8962_v55  ;;  %11391 = vst [vmem:[#allocation39_spill] sm:$0xff] %v9447_v50  ;;  %v182_v55 = vld [vmem:[#allocation5 + $0x428] sm:$0xff]  ;;  %v11401_v57 = vand.u32 4294901760, %v9426_v37 }
 0x1c5   :  { %6361 = vmatpush3.msra.mxu0 %v9253_v11  ;;  %6351 = vmatprep.subr.mxu1 %v9023_v49  ;;  %11393 = vst [vmem:[#allocation22_spill] sm:$0xff] %v9467_v24  ;;  %11394 = vst [vmem:[#allocation23_spill] sm:$0xff] %v9472_v7  ;;  %v198_v49 = vld [vmem:[#allocation5 + $0x4a8] sm:$0xff]  ;;  %v11406_v46 = vand.u32 4294901760, %v9450_v9 }
 0x1c6   :  { %6362 = vmatprep.subr.mxu0 %v9261_v21  ;;  %6352 = vmatpush3.msra.mxu1 %v9034_v59  ;;  %v11396_v59 = vand.u32 4294901760, %v9385_v34  ;;  %v9521_v21 = vand.u32 4294901760, %v180_v4 }
 0x1c7   :  { %6363 = vmatpush3.msra.mxu0 %v9272_v23  ;;  %6353 = vmatprep.subr.mxu1 %v9040_v5  ;;  %v300_v5 = vcombine.high %v9454_v30, %v9454_v30 }
 0x1c8   :  { %6364 = vmatprep.subr.mxu0 %v9283_v56  ;;  %6354 = vmatpush3.msra.mxu1 %v9042_v61  ;;  %v9486_v14 = vsub.f32 %v9385_v34, %v11396_v59  ;;  %v181_v56 = vld [vmem:[#allocation5 + $0x420] sm:$0xff]  ;;  %v9490_v61 = vand.u32 4294901760, %v182_v55  ;;  %v11398_v59 = vand.u32 4294901760, %v9315_v0  ;;  %v11402_v0 = vand.u32 4294901760, %v9418_v32 }
 0x1c9   :  { %3755 = vmatprep.mubr.f32.mxu1 %v11380_v18  ;;  %6365 = vmatpush3.msra.mxu0 %v9289_v16  ;;  %v197_v18 = vld [vmem:[#allocation5 + $0x4a0] sm:$0xff]  ;;  %v9501_v16 = vsub.f32 %v183_v60, %v9464_v8  ;;  %v9519_v60 = vand.u32 4294901760, %v181_v56 }
 0x1ca   :  { %3757 = vmatmul.mubr.f32.vlgmr.msra.gmra.mxu1 %v11384_v26  ;;  %11397 = vst [vmem:[#allocation34_spill] sm:$0xff] %v9490_v61  ;;  %6366 = vmatprep.subr.mxu0 %v9297_v33  ;;  %v9503_v26 = vand.u32 4294901760, %v198_v49  ;;  %v9512_v33 = vsub.f32 %v9426_v37, %v11401_v57  ;;  %v9527_v23 = vand.u32 4294901760, %v197_v18 }
 0x1cb   :  { %6393 = vmatprep.subr.mxu1 %v11398_v59  ;;  %6367 = vmatpush3.msra.mxu0 %v9299_v38  ;;  %v9517_v59 = vsub.f32 %v9418_v32, %v11402_v0  ;;  %11403 = vst [vmem:[#allocation40_spill] sm:$0xff] %v9519_v60  ;;  %v9531_v38 = vsub.f32 %v199_v22, %v9472_v7  ;;  %v11405_v0 = vand.u32 4294901760, %v9362_v54  ;;  %v9549_v22 = vand.u32 4294901760, %v300_v5 }
 0x1cc   :  { %11399 = vst [vmem:[#allocation43_spill] sm:$0xff] %v9503_v26  ;;  %6394 = vmatpush3.msra.mxu1 %v11400_v6  ;;  %6368 = vmatprep.subr.mxu0 %v9317_v15  ;;  %v3914_v6 = vand.u32 4294901760, %v9486_v14  ;;  %v9537_v32 = vsub.f32 %v182_v55, %v9490_v61  ;;  %v11407_v14 = vand.u32 4294901760, %v9447_v50  ;;  %v11409_v54 = vand.u32 4294901760, %v9376_v12 }
 0x1cd   :  { %6395 = vmatprep.subr.mxu1 %v11404_v19  ;;  %6369 = vmatpush3.msra.mxu0 %v9341_v51  ;;  %v9542_v19 = vsub.f32 %v9450_v9, %v11406_v46  ;;  %11408 = vst [vmem:[#allocation32_spill] sm:$0xff] %v9549_v22  ;;  %v11410_v55 = vand.u32 4294901760, %v9467_v24  ;;  %v195_v46 = vld [vmem:[#allocation5 + $0x490] sm:$0xff]  ;;  %v9562_v15 = vsub.f32 %v198_v49, %v9503_v26  ;;  %v4033_v12 = vand.u32 4294901760, %v9512_v33 }
 0x1ce   :  { %6396 = vmatpush3.msra.mxu1 %v11405_v0  ;;  %v9547_v57 = vsub.f32 %v9447_v50, %v11407_v14  ;;  %6370 = vmatprep.subr.mxu0 %v9371_v1  ;;  %v9554_v0 = vand.u32 4294901760, %v196_v27  ;;  %v9565_v14 = vand.u32 4294901760, %v9454_v30  ;;  %v11412_v1 = vand.u32 4294901760, %v9395_v31  ;;  %v179_v49 = vld [vmem:[#allocation5 + $0x410] sm:$0xff] }
 0x1cf   :  { %6397 = vmatprep.subr.mxu1 %v11409_v54  ;;  %v9559_v51 = vsub.f32 %v9467_v24, %v11410_v55  ;;  %6371 = vmatpush3.msra.mxu0 %v9378_v47  ;;  %v3921_v54 = vand.u32 4294901760, %v9517_v59  ;;  %v9573_v50 = vsub.f32 %v181_v56, %v9519_v60  ;;  %v9576_v55 = vsub.f32 %v180_v4, %v9521_v21  ;;  %v194_v56 = vld [vmem:[#allocation5 + $0x488] sm:$0xff] }
 0x1d0   :  { %11411 = vst [vmem:[#allocation36_spill] sm:$0xff] %v9565_v14  ;;  %6398 = vmatpush3.msra.mxu1 %v11412_v1  ;;  %6372 = vmatprep.subr.mxu0 %v9397_v17  ;;  %v11413_v24 = vand.u32 4294901760, %v9407_v25  ;;  %v11414_v47 = vand.u32 4294901760, %v9480_v44  ;;  %v178_v59 = vld [vmem:[#allocation5 + $0x408] sm:$0xff]  ;;  %v9589_v4 = vsub.f32 %v197_v18, %v9527_v23  ;;  %v11415_v17 = vand.u32 4294901760, %v9423_v40 }
 0x1d1   :  { %6373 = vmatpush3.msra.mxu0 %v9399_v52  ;;  %v4040_v25 = vand.u32 4294901760, %v9542_v19  ;;  %v9599_v33 = vsub.f32 %v300_v5, %v9549_v22  ;;  %v11417_v31 = vand.u32 4294901760, %v9433_v36  ;;  %v4047_v18 = vand.u32 4294901760, %v9559_v51  ;;  %v177_v19 = vld [vmem:[#allocation5 + $0x400] sm:$0xff]  ;;  %4099 = vmatprep.mubr.f32.mxu1 %v9549_v22 }
 0x1d2   :  { %6399 = vmatprep.subr.mxu1 %v11413_v24  ;;  %v9584_v1 = vsub.f32 %v9480_v44, %v11414_v47  ;;  %v3928_v24 = vand.u32 4294901760, %v9547_v57  ;;  %v9596_v47 = vand.u32 4294901760, %v195_v46  ;;  %6374 = vmatprep.subr.mxu0 %v9409_v58  ;;  %v9605_v52 = vand.u32 4294901760, %v179_v49 }
 0x1d3   :  { %6400 = vmatpush3.msra.mxu1 %v11415_v17  ;;  %v193_v17 = vld [vmem:[#allocation5 + $0x480] sm:$0xff]  ;;  %v9610_v57 = vsub.f32 %v9454_v30, %v9565_v14  ;;  %6375 = vmatpush3.msra.mxu0 %v9435_v35  ;;  %v11418_v5 = vand.u32 4294901760, %v9440_v39  ;;  %v9615_v58 = vand.u32 4294901760, %v194_v56  ;;  %v9617_v36 = vand.u32 4294901760, %v178_v59  ;;  %v11455_v22 = vld [vmem:[#allocation43_spill] sm:$0xff] }
 0x1d4   :  { %11416 = vst [vmem:[#allocation42_spill] sm:$0xff] %v9596_v47  ;;  %6401 = vmatprep.subr.mxu1 %v11417_v31  ;;  %v9621_v31 = vsub.f32 %v196_v27, %v9554_v0  ;;  %6376 = vmatprep.subr.mxu0 %v9472_v7  ;;  %v11419_v40 = vand.u32 4294901760, %v9462_v20  ;;  %v3935_v30 = vand.u32 4294901760, %v9584_v1  ;;  %v11420_v35 = vand.u32 4294901760, %v9531_v38 }
 0x1d5   :  { %6402 = vmatpush3.msra.mxu1 %v11418_v5  ;;  %v11421_v5 = vand.u32 4294901760, %v9501_v16  ;;  %6377 = vmatpush3.msra.mxu0 %v9464_v8  ;;  %v9635_v27 = vand.u32 4294901760, %v193_v17  ;;  %v9637_v7 = vand.u32 4294901760, %v177_v19  ;;  %v9641_v1 = vsub.f32 %v195_v46, %v9596_v47 }
 0x1d6   :  { %6403 = vmatprep.subr.mxu1 %v11419_v40  ;;  %v4053_v39 = vsub.f32 %v9531_v38, %v11420_v35  ;;  %6378 = vmatprep.subr.mxu0 %v9503_v26  ;;  %v9645_v35 = vsub.f32 %v179_v49, %v9605_v52  ;;  %v11422_v40 = vand.u32 4294901760, %v9562_v15  ;;  %v9654_v46 = vsub.f32 %v178_v59, %v9617_v36 }
 0x1d7   :  { %v3941_v44 = vsub.f32 %v9501_v16, %v11421_v5  ;;  %6404 = vmatpush3.msra.mxu1 %v3914_v6  ;;  %6379 = vmatpush3.msra.mxu0 %v9490_v61  ;;  %v11423_v20 = vand.u32 4294901760, %v9537_v32  ;;  %v9661_v26 = vsub.f32 %v194_v56, %v9615_v58  ;;  %v11424_v6 = vand.u32 4294901760, %v9589_v4 }
 0x1d8   :  { %6405 = vmatprep.subr.mxu1 %v4033_v12  ;;  %v4060_v5 = vsub.f32 %v9562_v15, %v11422_v40  ;;  %6380 = vmatprep.subr.mxu0 %v9527_v23  ;;  %v4054_v40 = vand.u32 4294901760, %v4053_v39  ;;  %v11426_v56 = vand.u32 4294901760, %v9599_v33 }
 0x1d9   :  { %6406 = vmatpush3.msra.mxu1 %v3921_v54  ;;  %v3948_v12 = vsub.f32 %v9537_v32, %v11423_v20  ;;  %v3942_v51 = vand.u32 4294901760, %v3941_v44  ;;  %v4067_v54 = vsub.f32 %v9589_v4, %v11424_v6  ;;  %6381 = vmatpush3.msra.mxu0 %v9519_v60  ;;  %v9670_v20 = vsub.f32 %v177_v19, %v9637_v7 }
 0x1da   :  { %6407 = vmatprep.subr.mxu1 %v4040_v25  ;;  %v3861_v49 = vsub.f32 %v9599_v33, %v11426_v56  ;;  %v9677_v44 = vsub.f32 %v193_v17, %v9635_v27  ;;  %6382 = vmatprep.subr.mxu0 %v9554_v0  ;;  %v4061_v39 = vand.u32 4294901760, %v4060_v5  ;;  %v11428_v6 = vand.u32 4294901760, %v9573_v50 }
 0x1db   :  { %6408 = vmatpush3.msra.mxu1 %v3928_v24  ;;  %11425 = vst [vmem:[#allocation37_spill] sm:$0xff] %v9670_v20  ;;  %v11429_v19 = vand.u32 4294901760, %v9610_v57  ;;  %6383 = vmatpush3.msra.mxu0 %v9521_v21  ;;  %v3949_v56 = vand.u32 4294901760, %v3948_v12  ;;  %v11430_v17 = vand.u32 4294901760, %v9621_v31  ;;  %v4068_v5 = vand.u32 4294901760, %v4067_v54 }
 0x1dc   :  { %11427 = vst [vmem:[#allocation38_spill] sm:$0xff] %v9677_v44  ;;  %6409 = vmatprep.subr.mxu1 %v4047_v18  ;;  %v3955_v24 = vsub.f32 %v9573_v50, %v11428_v6  ;;  %6384 = vmatprep.subr.mxu0 %v9596_v47  ;;  %v11431_v6 = vand.u32 4294901760, %v9576_v55  ;;  %v11432_v12 = vand.u32 4294901760, %v9641_v1  ;;  %v10835_v18 = vand.u32 4294901760, %v9677_v44 }
 0x1dd   :  { %v3867_v59 = vsub.f32 %v9610_v57, %v11429_v19  ;;  %6410 = vmatpush3.msra.mxu1 %v3935_v30  ;;  %v4074_v25 = vsub.f32 %v9621_v31, %v11430_v17  ;;  %6385 = vmatpush3.msra.mxu0 %v9605_v52  ;;  %v3862_v30 = vand.u32 4294901760, %v3861_v49  ;;  %v11433_v47 = vand.u32 4294901760, %v9645_v35 }
 0x1de   :  { %6411 = vmatprep.subr.mxu1 %v4054_v40  ;;  %v3962_v19 = vsub.f32 %v9576_v55, %v11431_v6  ;;  %v4081_v17 = vsub.f32 %v9641_v1, %v11432_v12  ;;  %6386 = vmatprep.subr.mxu0 %v9615_v58  ;;  %v3956_v40 = vand.u32 4294901760, %v3955_v24  ;;  %v10834_v60 = vand.u32 4294901760, %v9670_v20 }
 0x1df   :  { %6412 = vmatpush3.msra.mxu1 %v3942_v51  ;;  %v3868_v54 = vand.u32 4294901760, %v3867_v59  ;;  %v3969_v6 = vsub.f32 %v9645_v35, %v11433_v47  ;;  %6387 = vmatpush3.msra.mxu0 %v9617_v36  ;;  %v4075_v51 = vand.u32 4294901760, %v4074_v25  ;;  %v11434_v49 = vand.u32 4294901760, %v9661_v26 }
 0x1e0   :  { %6413 = vmatprep.subr.mxu1 %v4061_v39  ;;  %6388 = vmatprep.subr.mxu0 %v9635_v27  ;;  %v3963_v39 = vand.u32 4294901760, %v3962_v19  ;;  %v11435_v59 = vand.u32 4294901760, %v9654_v46  ;;  %v4082_v47 = vand.u32 4294901760, %v4081_v17  ;;  %v4095_v25 = vsub.f32 %v9677_v44, %v10835_v18  ;;  %v11453_v18 = vld [vmem:[#allocation33_spill] sm:$0xff] }
 0x1e1   :  { %6414 = vmatpush3.msra.mxu1 %v3949_v56  ;;  %v4088_v12 = vsub.f32 %v9661_v26, %v11434_v49  ;;  %6389 = vmatpush3.msra.mxu0 %v9637_v7  ;;  %v3970_v56 = vand.u32 4294901760, %v3969_v6  ;;  %v11437_v6 = vld [vmem:[#allocation18_spill] sm:$0xff]  ;;  %v11439_v49 = vld [vmem:[#allocation21_spill] sm:$0xff] }
 0x1e2   :  { %6415 = vmatprep.subr.mxu1 %v4068_v5  ;;  %v3976_v24 = vsub.f32 %v9654_v46, %v11435_v59  ;;  %3863 = vmatprep.mubr.f32.mxu0 %v3862_v30  ;;  %v3983_v5 = vsub.f32 %v9670_v20, %v10834_v60  ;;  %v4096_v17 = vand.u32 4294901760, %v4095_v25  ;;  %v11442_v59 = vld [vmem:[#allocation22_spill] sm:$0xff]  ;;  %v11445_v25 = vld [vmem:[#allocation31_spill] sm:$0xff]  ;;  %v11452_v60 = vld [vmem:[#allocation17_spill] sm:$0xff] }
 0x1e3   :  { %6416 = vmatpush3.msra.mxu1 %v3956_v40  ;;  %3869 = vmatmul.mubr.f32.vlgmr.msra.gmra.mxu0 %v3868_v54  ;;  %v4089_v19 = vand.u32 4294901760, %v4088_v12  ;;  %v11436_v54 = vld [vmem:[#allocation19_spill] sm:$0xff] }
 0x1e4   :  { %6417 = vmatprep.subr.mxu1 %v4075_v51  ;;  %6428 = vmatprep.subr.mxu0 %v9256_v41  ;;  %v3977_v30 = vand.u32 4294901760, %v3976_v24  ;;  %v3984_v40 = vand.u32 4294901760, %v3983_v5  ;;  %v11438_v51 = vld [vmem:[#allocation16_spill] sm:$0xff]  ;;  %v11440_v12 = vld [vmem:[#allocation39_spill] sm:$0xff] }
 0x1e5   :  { %6418 = vmatpush3.msra.mxu1 %v3963_v39  ;;  %6429 = vmatpush3.msra.mxu0 %v9267_v13  ;;  %v11441_v39 = vld [vmem:[#allocation26_spill] sm:$0xff]  ;;  %v11443_v24 = vld [vmem:[#allocation20_spill] sm:$0xff]  ;;  %v11447_v5 = vld [vmem:[#allocation35_spill] sm:$0xff] }
 0x1e6   :  { %6419 = vmatprep.subr.mxu1 %v4082_v47  ;;  %6430 = vmatprep.subr.mxu0 %v9275_v42  ;;  %v11444_v47 = vld [vmem:[#allocation27_spill] sm:$0xff] }
 0x1e7   :  { %6420 = vmatpush3.msra.mxu1 %v3970_v56  ;;  %6431 = vmatpush3.msra.mxu0 %v9281_v62  ;;  %v11446_v56 = vld [vmem:[#allocation24_spill] sm:$0xff] }
 0x1e8   :  { %6421 = vmatprep.subr.mxu1 %v4089_v19  ;;  %6432 = vmatprep.subr.mxu0 %v9292_v28  ;;  %v11448_v19 = vld [vmem:[#allocation29_spill] sm:$0xff] }
 0x1e9   :  { %6422 = vmatpush3.msra.mxu1 %v3977_v30  ;;  %6433 = vmatpush3.msra.mxu0 %v9306_v48  ;;  %v11449_v30 = vld [vmem:[#allocation15_spill] sm:$0xff] }
 0x1ea   :  { %6423 = vmatprep.subr.mxu1 %v4096_v17  ;;  %6434 = vmatprep.subr.mxu0 %v9321_v45  ;;  %v11450_v17 = vld [vmem:[#allocation25_spill] sm:$0xff] }
 0x1eb   :  { %6424 = vmatpush3.msra.mxu1 %v3984_v40  ;;  %6435 = vmatpush3.msra.mxu0 %v9327_v10  ;;  %v11451_v40 = vld [vmem:[#allocation28_spill] sm:$0xff] }
 0x1ec   :  { %4101 = vmatmul.mubr.f32.vlgmr.msra.gmra.mxu1 %v9565_v14  ;;  %6436 = vmatprep.subr.mxu0 %v9344_v29  ;;  %v11454_v14 = vld [vmem:[#allocation23_spill] sm:$0xff] }
 0x1ed   :  { %6463 = vmatprep.subr.mxu1 %v9235_v43  ;;  %6437 = vmatpush3.msra.mxu0 %v9334_v53 }
 0x1ee   :  { %6464 = vmatpush3.msra.mxu1 %v9243_v63  ;;  %6438 = vmatprep.subr.mxu0 %v9366_v2 }
 0x1ef   :  { %6465 = vmatprep.subr.mxu1 %v9248_v3  ;;  %6439 = vmatpush3.msra.mxu0 %v9385_v34 }
 0x1f0   :  { %6466 = vmatpush3.msra.mxu1 %v9253_v11  ;;  %6440 = vmatprep.subr.mxu0 %v9426_v37 }
 0x1f1   :  { %6467 = vmatprep.subr.mxu1 %v11436_v54  ;;  %6441 = vmatpush3.msra.mxu0 %v11437_v6 }
 0x1f2   :  { %6468 = vmatpush3.msra.mxu1 %v11438_v51  ;;  %6442 = vmatprep.subr.mxu0 %v9450_v9 }
 0x1f3   :  { %6469 = vmatprep.subr.mxu1 %v11439_v49  ;;  %6443 = vmatpush3.msra.mxu0 %v11440_v12 }
 0x1f4   :  { %6470 = vmatpush3.msra.mxu1 %v11441_v39  ;;  %6444 = vmatprep.subr.mxu0 %v11442_v59 }
 0x1f5   :  { %6471 = vmatprep.subr.mxu1 %v11443_v24  ;;  %6445 = vmatpush3.msra.mxu0 %v11444_v47 }
 0x1f6   :  { %6472 = vmatpush3.msra.mxu1 %v11445_v25  ;;  %6446 = vmatprep.subr.mxu0 %v9531_v38 }
 0x1f7   :  { %6473 = vmatprep.subr.mxu1 %v11446_v56  ;;  %6447 = vmatpush3.msra.mxu0 %v9501_v16 }
 0x1f8   :  { %6474 = vmatpush3.msra.mxu1 %v11447_v5  ;;  %6448 = vmatprep.subr.mxu0 %v9562_v15 }
 0x1f9   :  { %6475 = vmatprep.subr.mxu1 %v11448_v19  ;;  %6449 = vmatpush3.msra.mxu0 %v9537_v32 }
 0x1fa   :  { %6476 = vmatpush3.msra.mxu1 %v11449_v30  ;;  %6450 = vmatprep.subr.mxu0 %v9589_v4 }
 0x1fb   :  { %6477 = vmatprep.subr.mxu1 %v11450_v17  ;;  %6451 = vmatpush3.msra.mxu0 %v9573_v50 }
 0x1fc   :  { %6478 = vmatpush3.msra.mxu1 %v11451_v40  ;;  %6452 = vmatprep.subr.mxu0 %v9621_v31 }
 0x1fd   :  { %6479 = vmatprep.subr.mxu1 %v11452_v60  ;;  %6453 = vmatpush3.msra.mxu0 %v9576_v55 }
 0x1fe   :  { %6480 = vmatpush3.msra.mxu1 %v11453_v18  ;;  %6454 = vmatprep.subr.mxu0 %v9641_v1 }
 0x1ff   :  { %6481 = vmatprep.subr.mxu1 %v11454_v14  ;;  %6455 = vmatpush3.msra.mxu0 %v9645_v35  ;;  %v11456_v14 = vld [vmem:[#allocation40_spill] sm:$0xff] }
 0x200   :  { %6482 = vmatpush3.msra.mxu1 %v9464_v8  ;;  %6456 = vmatprep.subr.mxu0 %v9661_v26 }
 0x201   :  { %6483 = vmatprep.subr.mxu1 %v11455_v22  ;;  %6457 = vmatpush3.msra.mxu0 %v9654_v46  ;;  %v11457_v22 = vand.u32 4294901760, %v9256_v41  ;;  %v11462_v41 = vand.u32 4294901760, %v9292_v28  ;;  %v11467_v28 = vand.u32 4294901760, %v9610_v57 }
 0x202   :  { %6484 = vmatpush3.msra.mxu1 %v9490_v61  ;;  %6458 = vmatprep.subr.mxu0 %v9677_v44  ;;  %v11458_v61 = vand.u32 4294901760, %v9267_v13  ;;  %v11459_v44 = vld [vmem:[#allocation42_spill] sm:$0xff]  ;;  %v11463_v13 = vand.u32 4294901760, %v9306_v48  ;;  %v11469_v48 = vand.u32 4294901760, %v9334_v53  ;;  %v11474_v53 = vand.u32 4294901760, %v9450_v9 }
 0x203   :  { %6485 = vmatprep.subr.mxu1 %v9527_v23  ;;  %6459 = vmatpush3.msra.mxu0 %v9670_v20  ;;  %v11460_v20 = vand.u32 4294901760, %v9275_v42  ;;  %v11464_v42 = vand.u32 4294901760, %v9321_v45  ;;  %v11470_v45 = vand.u32 4294901760, %v9366_v2  ;;  %v223_v2 = vld [vmem:[#allocation5 + $0x570] sm:$0xff]  ;;  %v11477_v9 = vand.u32 4294901760, %v11444_v47 }
 0x204   :  { %4236 = vmatprep.mubr.f32.mxu0 %v9599_v33  ;;  %6486 = vmatpush3.msra.mxu1 %v11456_v14  ;;  %v11461_v14 = vand.u32 4294901760, %v9281_v62  ;;  %v11465_v62 = vand.u32 4294901760, %v9599_v33  ;;  %v11472_v33 = vand.u32 4294901760, %v9426_v37  ;;  %v11475_v37 = vand.u32 4294901760, %v11440_v12  ;;  %v222_v12 = vld [vmem:[#allocation5 + $0x568] sm:$0xff] }
 0x205   :  { %4239 = vmatmul.mubr.f32.vlgmr.msra.gmra.mxu0 %v9610_v57  ;;  %6487 = vmatprep.subr.mxu1 %v9554_v0  ;;  %v11481_v47 = vand.u32 4294901760, %v9562_v15  ;;  %v11484_v15 = vand.u32 4294901760, %v9589_v4 }
 0x206   :  { %6498 = vmatprep.subr.mxu0 %v11457_v22  ;;  %6488 = vmatpush3.msra.mxu1 %v9521_v21  ;;  %v11468_v22 = vand.u32 4294901760, %v9344_v29  ;;  %v224_v29 = vld [vmem:[#allocation5 + $0x578] sm:$0xff] }
 0x207   :  { %6499 = vmatpush3.msra.mxu0 %v11458_v61  ;;  %6489 = vmatprep.subr.mxu1 %v11459_v44  ;;  %v11466_v61 = vand.u32 4294901760, %v9327_v10  ;;  %v240_v10 = vld [vmem:[#allocation5 + $0x5f8] sm:$0xff] }
 0x208   :  { %6500 = vmatprep.subr.mxu0 %v11460_v20  ;;  %6490 = vmatpush3.msra.mxu1 %v9605_v52  ;;  %v238_v20 = vld [vmem:[#allocation5 + $0x5e8] sm:$0xff] }
 0x209   :  { %6501 = vmatpush3.msra.mxu0 %v11461_v14  ;;  %6491 = vmatprep.subr.mxu1 %v9615_v58  ;;  %v11471_v14 = vand.u32 4294901760, %v9385_v34  ;;  %v11476_v34 = vand.u32 4294901760, %v11442_v59  ;;  %v9860_v59 = vand.u32 4294901760, %v238_v20 }
 0x20a   :  { %6502 = vmatprep.subr.mxu0 %v11462_v41  ;;  %6492 = vmatpush3.msra.mxu1 %v9617_v36 }
 0x20b   :  { %6503 = vmatpush3.msra.mxu0 %v11463_v13  ;;  %6493 = vmatprep.subr.mxu1 %v9635_v27  ;;  %11480 = vst [vmem:[#allocation30_spill] sm:$0xff] %v9860_v59  ;;  %v220_v13 = vld [vmem:[#allocation5 + $0x558] sm:$0xff]  ;;  %v9889_v4 = vsub.f32 %v238_v20, %v9860_v59 }
 0x20c   :  { %6504 = vmatprep.subr.mxu0 %v11464_v42  ;;  %6494 = vmatpush3.msra.mxu1 %v9637_v7 }
 0x20d   :  { %4343 = vmatprep.mubr.f32.mxu1 %v11465_v62  ;;  %6505 = vmatpush3.msra.mxu0 %v11466_v61  ;;  %v235_v61 = vld [vmem:[#allocation5 + $0x5d0] sm:$0xff] }
 0x20e   :  { %4347 = vmatmul.mubr.f32.vlgmr.msra.gmra.mxu1 %v11467_v28  ;;  %6506 = vmatprep.subr.mxu0 %v11468_v22  ;;  %v9896_v22 = vand.u32 4294901760, %v220_v13 }
 0x20f   :  { %6533 = vmatprep.subr.mxu1 %v9235_v43  ;;  %6507 = vmatpush3.msra.mxu0 %v11469_v48  ;;  %v11473_v43 = vand.u32 4294901760, %v11437_v6  ;;  %v11478_v6 = vand.u32 4294901760, %v9531_v38  ;;  %v221_v38 = vld [vmem:[#allocation5 + $0x560] sm:$0xff]  ;;  %v11491_v48 = vand.u32 4294901760, %v9576_v55 }
 0x210   :  { %6534 = vmatpush3.msra.mxu1 %v9243_v63  ;;  %6508 = vmatprep.subr.mxu0 %v11470_v45  ;;  %v9828_v63 = vand.u32 4294901760, %v240_v10  ;;  %v9886_v62 = vand.u32 4294901760, %v221_v38  ;;  %11490 = vst [vmem:[#allocation21_spill] sm:$0xff] %v9896_v22  ;;  %v11492_v45 = vand.u32 4294901760, %v9641_v1 }
 0x211   :  { %6535 = vmatprep.subr.mxu1 %v9248_v3  ;;  %6509 = vmatpush3.msra.mxu0 %v11471_v14  ;;  %v239_v3 = vld [vmem:[#allocation5 + $0x5f0] sm:$0xff] }
 0x212   :  { %6536 = vmatpush3.msra.mxu1 %v9253_v11  ;;  %6510 = vmatprep.subr.mxu0 %v11472_v33  ;;  %v9833_v11 = vand.u32 4294901760, %v224_v29  ;;  %v9841_v57 = vand.u32 4294901760, %v239_v3  ;;  %11487 = vst [vmem:[#allocation18_spill] sm:$0xff] %v9886_v62  ;;  %v11495_v33 = vand.u32 4294901760, %v9645_v35  ;;  %v9928_v1 = vsub.f32 %v221_v38, %v9886_v62 }
 0x213   :  { %6537 = vmatprep.subr.mxu1 %v11436_v54  ;;  %6511 = vmatpush3.msra.mxu0 %v11473_v43  ;;  %v9847_v54 = vsub.f32 %v240_v10, %v9828_v63  ;;  %v11493_v10 = vld [vmem:[#allocation23_spill] sm:$0xff]  ;;  %v10843_v43 = vand.u32 4294901760, %v9889_v4 }
 0x214   :  { %6538 = vmatpush3.msra.mxu1 %v11438_v51  ;;  %6512 = vmatprep.subr.mxu0 %v11474_v53  ;;  %v9853_v51 = vsub.f32 %v224_v29, %v9833_v11  ;;  %v11497_v53 = vld [vmem:[#allocation43_spill] sm:$0xff] }
 0x215   :  { %6539 = vmatprep.subr.mxu1 %v11439_v49  ;;  %6513 = vmatpush3.msra.mxu0 %v11475_v37  ;;  %v9855_v49 = vand.u32 4294901760, %v223_v2  ;;  %v10849_v41 = vand.u32 4294901760, %v9847_v54  ;;  %v9935_v37 = vsub.f32 %v220_v13, %v9896_v22 }
 0x216   :  { %6540 = vmatpush3.msra.mxu1 %v11441_v39  ;;  %6514 = vmatprep.subr.mxu0 %v11476_v34  ;;  %v11479_v39 = vand.u32 4294901760, %v9501_v16  ;;  %v9871_v16 = vand.u32 4294901760, %v222_v12  ;;  %v218_v34 = vld [vmem:[#allocation5 + $0x548] sm:$0xff] }
 0x217   :  { %6541 = vmatprep.subr.mxu1 %v11443_v24  ;;  %6515 = vmatpush3.msra.mxu0 %v11477_v9  ;;  %v237_v24 = vld [vmem:[#allocation5 + $0x5e0] sm:$0xff]  ;;  %v11500_v9 = vld [vmem:[#allocation34_spill] sm:$0xff] }
 0x218   :  { %6542 = vmatpush3.msra.mxu1 %v11445_v25  ;;  %6516 = vmatprep.subr.mxu0 %v11478_v6  ;;  %v9866_v25 = vsub.f32 %v239_v3, %v9841_v57  ;;  %11483 = vst [vmem:[#allocation44_spill] sm:$0xff] %v9871_v16  ;;  %v9880_v42 = vand.u32 4294901760, %v237_v24  ;;  %v11496_v3 = vand.u32 4294901760, %v9661_v26  ;;  %v11499_v26 = vand.u32 4294901760, %v9654_v46  ;;  %v233_v46 = vld [vmem:[#allocation5 + $0x5c0] sm:$0xff] }
 0x219   :  { %6543 = vmatprep.subr.mxu1 %v11446_v56  ;;  %6517 = vmatpush3.msra.mxu0 %v11479_v39  ;;  %v11482_v56 = vand.u32 4294901760, %v9537_v32  ;;  %v10847_v32 = vand.u32 4294901760, %v9853_v51  ;;  %v11501_v39 = vld [vmem:[#allocation38_spill] sm:$0xff] }
 0x21a   :  { %6544 = vmatpush3.msra.mxu1 %v11447_v5  ;;  %6518 = vmatprep.subr.mxu0 %v11481_v47  ;;  %v236_v5 = vld [vmem:[#allocation5 + $0x5d8] sm:$0xff]  ;;  %11485 = vst [vmem:[#allocation19_spill] sm:$0xff] %v9880_v42  ;;  %v9922_v29 = vsub.f32 %v237_v24, %v9880_v42  ;;  %v11502_v24 = vand.u32 4294901760, %v11501_v39  ;;  %v10852_v39 = vand.u32 4294901760, %v9935_v37 }
 0x21b   :  { %6545 = vmatprep.subr.mxu1 %v11448_v19  ;;  %6519 = vmatpush3.msra.mxu0 %v11482_v56  ;;  %v9878_v19 = vsub.f32 %v223_v2, %v9855_v49  ;;  %v9894_v28 = vand.u32 4294901760, %v236_v5  ;;  %v9916_v55 = vsub.f32 %v9853_v51, %v10847_v32 }
 0x21c   :  { %6546 = vmatpush3.msra.mxu1 %v11449_v30  ;;  %6520 = vmatprep.subr.mxu0 %v11484_v15  ;;  %v11486_v30 = vand.u32 4294901760, %v9573_v50  ;;  %v10846_v50 = vand.u32 4294901760, %v9866_v25  ;;  %v10848_v56 = vand.u32 4294901760, %v9922_v29  ;;  %v11503_v15 = vld [vmem:[#allocation37_spill] sm:$0xff] }
 0x21d   :  { %6547 = vmatprep.subr.mxu1 %v11450_v17  ;;  %v11488_v17 = vand.u32 4294901760, %v9621_v31  ;;  %11489 = vst [vmem:[#allocation16_spill] sm:$0xff] %v9894_v28  ;;  %v9908_v31 = vsub.f32 %v9847_v54, %v10849_v41  ;;  %v10844_v14 = vand.u32 4294901760, %v9878_v19  ;;  %v9945_v20 = vsub.f32 %v236_v5, %v9894_v28  ;;  %v217_v5 = vld [vmem:[#allocation5 + $0x540] sm:$0xff] }
 0x21e   :  { %6521 = vmatpush3.msra.mxu0 %v11486_v30  ;;  %6548 = vmatpush3.msra.mxu1 %v11451_v40  ;;  %v9903_v40 = vsub.f32 %v222_v12, %v9871_v16  ;;  %v9940_v35 = vsub.f32 %v9866_v25, %v10846_v50  ;;  %v11504_v30 = vand.u32 4294901760, %v11503_v15  ;;  %v9993_v15 = vand.u32 4294901760, %v233_v46 }
 0x21f   :  { %6522 = vmatprep.subr.mxu0 %v11488_v17  ;;  %6549 = vmatprep.subr.mxu1 %v11452_v60  ;;  %v219_v60 = vld [vmem:[#allocation5 + $0x550] sm:$0xff]  ;;  %v9959_v38 = vsub.f32 %v9878_v19, %v10844_v14  ;;  %v11505_v17 = vld [vmem:[#allocation32_spill] sm:$0xff]  ;;  %v10005_v14 = vsub.f32 %v9922_v29, %v10848_v56 }
 0x220   :  { %6523 = vmatpush3.msra.mxu0 %v11491_v48  ;;  %6550 = vmatpush3.msra.mxu1 %v11453_v18  ;;  %v9918_v18 = vand.u32 4294901760, %v235_v61  ;;  %v9942_v2 = vand.u32 4294901760, %v219_v60  ;;  %v10845_v12 = vand.u32 4294901760, %v9903_v40  ;;  %v9973_v48 = vsub.f32 %v9889_v4, %v10843_v43  ;;  %11510 = vst [vmem:[#allocation27_spill] sm:$0xff] %v9993_v15  ;;  %v215_v56 = vld [vmem:[#allocation5 + $0x530] sm:$0xff] }
 0x221   :  { %6524 = vmatprep.subr.mxu0 %v11492_v45  ;;  %6551 = vmatprep.subr.mxu1 %v11493_v10  ;;  %v9975_v45 = vand.u32 4294901760, %v218_v34  ;;  %v10850_v10 = vand.u32 4294901760, %v9928_v1 }
 0x222   :  { %11494 = vst [vmem:[#allocation39_spill] sm:$0xff] %v9918_v18  ;;  %6525 = vmatpush3.msra.mxu0 %v11495_v33  ;;  %6552 = vmatpush3.msra.mxu1 %v9464_v8  ;;  %11498 = vst [vmem:[#allocation26_spill] sm:$0xff] %v9942_v2  ;;  %v234_v8 = vld [vmem:[#allocation5 + $0x5c8] sm:$0xff]  ;;  %v9963_v13 = vsub.f32 %v235_v61, %v9918_v18  ;;  %v232_v33 = vld [vmem:[#allocation5 + $0x5b8] sm:$0xff] }
 0x223   :  { %6526 = vmatprep.subr.mxu0 %v11496_v3  ;;  %6553 = vmatprep.subr.mxu1 %v11497_v53  ;;  %11507 = vst [vmem:[#allocation20_spill] sm:$0xff] %v9975_v45  ;;  %v11508_v3 = vld [vmem:[#allocation40_spill] sm:$0xff]  ;;  %v10019_v32 = vsub.f32 %v9928_v1, %v10850_v10  ;;  %v10036_v10 = vsub.f32 %v9935_v37, %v10852_v39  ;;  %v11517_v53 = vld [vmem:[#allocation14_spill] sm:$0xff] }
 0x224   :  { %6527 = vmatpush3.msra.mxu0 %v11499_v26  ;;  %6554 = vmatpush3.msra.mxu1 %v11500_v9  ;;  %v11509_v61 = vld [vmem:[#allocation36_spill] sm:$0xff]  ;;  %v9982_v26 = vsub.f32 %v219_v60, %v9942_v2  ;;  %v10851_v9 = vand.u32 4294901760, %v9945_v20  ;;  %v11512_v60 = vld [vmem:[#allocation41_spill] sm:$0xff]  ;;  %v10853_v50 = vand.u32 4294901760, %v9963_v13 }
 0x225   :  { %6528 = vmatprep.subr.mxu0 %v11502_v24  ;;  %6555 = vmatprep.subr.mxu1 %v9527_v23  ;;  %v9968_v23 = vand.u32 4294901760, %v234_v8  ;;  %v9991_v24 = vsub.f32 %v9903_v40, %v10845_v12  ;;  %v285_v43 = vcombine.high %v11512_v60, %v11512_v60  ;;  %v10007_v12 = vand.u32 4294901760, %v232_v33  ;;  %v231_v60 = vld [vmem:[#allocation5 + $0x5b0] sm:$0xff]  ;;  %v212_v39 = vld [vmem:[#allocation5 + $0x518] sm:$0xff] }
 0x226   :  { %6529 = vmatpush3.msra.mxu0 %v11504_v30  ;;  %4513 = vmatprep.mubr.f32.mxu0 %v11505_v17  ;;  %v9995_v30 = vand.u32 4294901760, %v217_v5 }
 0x227   :  { %11506 = vst [vmem:[#allocation22_spill] sm:$0xff] %v9968_v23  ;;  %6556 = vmatpush3.msra.mxu1 %v11508_v3  ;;  %4515 = vmatmul.mubr.f32.vlgmr.msra.gmra.mxu0 %v11509_v61  ;;  %v216_v3 = vld [vmem:[#allocation5 + $0x538] sm:$0xff]  ;;  %11513 = vst [vmem:[#allocation24_spill] sm:$0xff] %v10007_v12  ;;  %v10022_v41 = vsub.f32 %v234_v8, %v9968_v23  ;;  %v10856_v8 = vand.u32 4294901760, %v9982_v26  ;;  %v10049_v47 = vrot.slane %v285_v43, %v11517_v53  ;;  %v230_v53 = vld [vmem:[#allocation5 + $0x5a8] sm:$0xff] }
 0x228   :  { %6557 = vmatprep.subr.mxu1 %v9554_v0  ;;  %6568 = vmatprep.subr.mxu0 %v9828_v63  ;;  %11511 = vst [vmem:[#allocation31_spill] sm:$0xff] %v9995_v30  ;;  %v10043_v0 = vsub.f32 %v217_v5, %v9995_v30  ;;  %v214_v5 = vld [vmem:[#allocation5 + $0x528] sm:$0xff]  ;;  %v10067_v43 = vand.u32 4294901760, %v231_v60 }
 0x229   :  { %6558 = vmatpush3.msra.mxu1 %v9521_v21  ;;  %6569 = vmatpush3.msra.mxu0 %v9833_v11  ;;  %v10014_v21 = vsub.f32 %v218_v34, %v9975_v45  ;;  %v10031_v34 = vand.u32 4294901760, %v216_v3 }
 0x22a   :  { %6559 = vmatprep.subr.mxu1 %v11459_v44  ;;  %6570 = vmatprep.subr.mxu0 %v9841_v57  ;;  %v10029_v44 = vsub.f32 %v9945_v20, %v10851_v9  ;;  %11516 = vst [vmem:[#allocation15_spill] sm:$0xff] %v10043_v0  ;;  %v10046_v9 = vsub.f32 %v233_v46, %v9993_v15  ;;  %11519 = vst [vmem:[#allocation28_spill] sm:$0xff] %v10067_v43 }
 0x22b   :  { %11514 = vst [vmem:[#allocation35_spill] sm:$0xff] %v10014_v21  ;;  %6560 = vmatpush3.msra.mxu1 %v9605_v52  ;;  %6571 = vmatpush3.msra.mxu0 %v9855_v49  ;;  %11515 = vst [vmem:[#allocation29_spill] sm:$0xff] %v10031_v34  ;;  %v10059_v52 = vand.u32 4294901760, %v215_v56  ;;  %v10062_v46 = vsub.f32 %v232_v33, %v10007_v12  ;;  %v10075_v6 = vsub.f32 %v216_v3, %v10031_v34 }
 0x22c   :  { %6561 = vmatprep.subr.mxu1 %v9615_v58  ;;  %6572 = vmatprep.subr.mxu0 %v9860_v59  ;;  %v10057_v58 = vsub.f32 %v9963_v13, %v10853_v50  ;;  %v11524_v3 = vand.u32 4294901760, %v9916_v55  ;;  %v11525_v33 = vand.u32 4294901760, %v10022_v41  ;;  %v228_v50 = vld [vmem:[#allocation5 + $0x598] sm:$0xff]  ;;  %v10116_v59 = vand.u32 4294901760, %v212_v39 }
 0x22d   :  { %6562 = vmatpush3.msra.mxu1 %v9617_v36  ;;  %6573 = vmatpush3.msra.mxu0 %v9871_v16  ;;  %11518 = vst [vmem:[#allocation25_spill] sm:$0xff] %v10062_v46  ;;  %11520 = vst [vmem:[#allocation17_spill] sm:$0xff] %v10075_v6  ;;  %v10081_v36 = vsub.f32 %v9982_v26, %v10856_v8  ;;  %v11522_v8 = vand.u32 4294901760, %v9908_v31  ;;  %v11526_v31 = vand.u32 4294901760, %v10014_v21  ;;  %v11528_v55 = vand.u32 4294901760, %v9940_v35 }
 0x22e   :  { %6563 = vmatprep.subr.mxu1 %v9635_v27  ;;  %6574 = vmatprep.subr.mxu0 %v9880_v42  ;;  %v213_v42 = vld [vmem:[#allocation5 + $0x520] sm:$0xff]  ;;  %v301_v27 = vcombine.high %v10049_v47, %v10049_v47  ;;  %v11530_v35 = vand.u32 4294901760, %v10046_v9 }
 0x22f   :  { %6564 = vmatpush3.msra.mxu1 %v9637_v7  ;;  %4617 = vmatprep.mubr.f32.mxu1 %v11505_v17  ;;  %v10085_v7 = vand.u32 4294901760, %v214_v5  ;;  %v229_v17 = vld [vmem:[#allocation5 + $0x5a0] sm:$0xff] }
 0x230   :  { %6575 = vmatpush3.msra.mxu0 %v9886_v62  ;;  %4619 = vmatmul.mubr.f32.vlgmr.msra.gmra.mxu1 %v11509_v61  ;;  %v10096_v62 = vsub.f32 %v215_v56, %v10059_v52  ;;  %v10098_v61 = vand.u32 4294901760, %v230_v53  ;;  %v10114_v56 = vand.u32 4294901760, %v213_v42  ;;  %v10122_v16 = vand.u32 4294901760, %v229_v17 }
 0x231   :  { %11521 = vst [vmem:[#allocation33_spill] sm:$0xff] %v10085_v7  ;;  %6576 = vmatprep.subr.mxu0 %v9894_v28  ;;  %6603 = vmatprep.subr.mxu1 %v11522_v8  ;;  %v10107_v28 = vsub.f32 %v10022_v41, %v11525_v33  ;;  %v10112_v8 = vsub.f32 %v10014_v21, %v11526_v31  ;;  %v11529_v31 = vand.u32 4294901760, %v9959_v38  ;;  %v11533_v38 = vand.u32 4294901760, %v9973_v48 }
 0x232   :  { %11523 = vst [vmem:[#allocation42_spill] sm:$0xff] %v10098_v61  ;;  %6577 = vmatpush3.msra.mxu0 %v9896_v22  ;;  %6604 = vmatpush3.msra.mxu1 %v11524_v3  ;;  %11527 = vst [vmem:[#allocation23_spill] sm:$0xff] %v10114_v56  ;;  %v4776_v3 = vand.u32 4294901760, %v10081_v36  ;;  %v10126_v22 = vsub.f32 %v231_v60, %v10067_v43  ;;  %v10132_v21 = vsub.f32 %v214_v5, %v10085_v7 }
 0x233   :  { %6578 = vmatprep.subr.mxu0 %v9918_v18  ;;  %6605 = vmatprep.subr.mxu1 %v11528_v55  ;;  %v10137_v55 = vsub.f32 %v10046_v9, %v11530_v35  ;;  %v11531_v36 = vand.u32 4294901760, %v10043_v0  ;;  %v10144_v60 = vand.u32 4294901760, %v301_v27  ;;  %v11534_v5 = vand.u32 4294901760, %v10062_v46  ;;  %v227_v35 = vld [vmem:[#allocation5 + $0x590] sm:$0xff] }
 0x234   :  { %6579 = vmatpush3.msra.mxu0 %v9942_v2  ;;  %6606 = vmatpush3.msra.mxu1 %v11529_v31  ;;  %v10149_v31 = vand.u32 4294901760, %v228_v50  ;;  %v10157_v18 = vsub.f32 %v230_v53, %v10098_v61  ;;  %v4895_v48 = vand.u32 4294901760, %v10107_v28  ;;  %v211_v53 = vld [vmem:[#allocation5 + $0x510] sm:$0xff] }
 0x235   :  { %v10142_v33 = vsub.f32 %v10043_v0, %v11531_v36  ;;  %11532 = vst [vmem:[#allocation43_spill] sm:$0xff] %v10144_v60  ;;  %6580 = vmatprep.subr.mxu0 %v9968_v23  ;;  %6607 = vmatprep.subr.mxu1 %v11533_v38  ;;  %v10154_v2 = vsub.f32 %v10062_v46, %v11534_v5  ;;  %v10160_v36 = vand.u32 4294901760, %v10049_v47  ;;  %v11536_v23 = vand.u32 4294901760, %v9991_v24 }
 0x236   :  { %6581 = vmatpush3.msra.mxu0 %v9975_v45  ;;  %v4783_v38 = vand.u32 4294901760, %v10112_v8  ;;  %v10168_v0 = vsub.f32 %v213_v42, %v10114_v56  ;;  %v10171_v5 = vsub.f32 %v212_v39, %v10116_v59  ;;  %v11537_v46 = vand.u32 4294901760, %v10005_v14  ;;  %v226_v42 = vld [vmem:[#allocation5 + $0x588] sm:$0xff]  ;;  %4961 = vmatprep.mubr.f32.mxu1 %v10144_v60 }
 0x237   :  { %11535 = vst [vmem:[#allocation34_spill] sm:$0xff] %v10160_v36  ;;  %6608 = vmatpush3.msra.mxu1 %v11536_v23  ;;  %6582 = vmatprep.subr.mxu0 %v9993_v15  ;;  %v11538_v45 = vand.u32 4294901760, %v10075_v6  ;;  %v210_v8 = vld [vmem:[#allocation5 + $0x508] sm:$0xff]  ;;  %v10184_v39 = vsub.f32 %v229_v17, %v10122_v16  ;;  %v11539_v15 = vand.u32 4294901760, %v10019_v32  ;;  %v4902_v14 = vand.u32 4294901760, %v10137_v55  ;;  %v209_v55 = vld [vmem:[#allocation5 + $0x500] sm:$0xff] }
 0x238   :  { %6609 = vmatprep.subr.mxu1 %v11537_v46  ;;  %6583 = vmatpush3.msra.mxu0 %v9995_v30  ;;  %v4790_v46 = vand.u32 4294901760, %v10142_v33  ;;  %v10194_v28 = vsub.f32 %v301_v27, %v10144_v60  ;;  %v11541_v24 = vand.u32 4294901760, %v10029_v44  ;;  %v4909_v17 = vand.u32 4294901760, %v10154_v2 }
 0x239   :  { %v10179_v23 = vsub.f32 %v10075_v6, %v11538_v45  ;;  %6610 = vmatpush3.msra.mxu1 %v11539_v15  ;;  %v10191_v45 = vand.u32 4294901760, %v227_v35  ;;  %6584 = vmatprep.subr.mxu0 %v10007_v12  ;;  %v10200_v30 = vand.u32 4294901760, %v211_v53  ;;  %v225_v15 = vld [vmem:[#allocation5 + $0x580] sm:$0xff]  ;;  %v10205_v33 = vsub.f32 %v10049_v47, %v10160_v36  ;;  %v11579_v60 = vld [vmem:[#allocation42_spill] sm:$0xff] }
 0x23a   :  { %6611 = vmatprep.subr.mxu1 %v11541_v24  ;;  %6585 = vmatpush3.msra.mxu0 %v10031_v34  ;;  %v11542_v27 = vand.u32 4294901760, %v10036_v10  ;;  %v10210_v12 = vand.u32 4294901760, %v226_v42  ;;  %v10212_v44 = vand.u32 4294901760, %v210_v8  ;;  %v10216_v24 = vsub.f32 %v228_v50, %v10149_v31 }
 0x23b   :  { %11540 = vst [vmem:[#allocation38_spill] sm:$0xff] %v10191_v45  ;;  %6586 = vmatprep.subr.mxu0 %v10067_v43  ;;  %v11543_v32 = vand.u32 4294901760, %v10057_v58  ;;  %v4797_v47 = vand.u32 4294901760, %v10179_v23  ;;  %v11544_v34 = vand.u32 4294901760, %v10126_v22  ;;  %v10230_v50 = vand.u32 4294901760, %v225_v15 }
 0x23c   :  { %6612 = vmatpush3.msra.mxu1 %v11542_v27  ;;  %v11545_v27 = vand.u32 4294901760, %v10096_v62  ;;  %6587 = vmatpush3.msra.mxu0 %v10059_v52  ;;  %v10232_v43 = vand.u32 4294901760, %v209_v55  ;;  %v10236_v23 = vsub.f32 %v227_v35, %v10191_v45  ;;  %v10249_v35 = vsub.f32 %v210_v8, %v10212_v44 }
 0x23d   :  { %6613 = vmatprep.subr.mxu1 %v11543_v32  ;;  %v4915_v10 = vsub.f32 %v10126_v22, %v11544_v34  ;;  %6588 = vmatprep.subr.mxu0 %v10098_v61  ;;  %v10240_v34 = vsub.f32 %v211_v53, %v10200_v30  ;;  %v11546_v32 = vand.u32 4294901760, %v10157_v18  ;;  %v11547_v58 = vand.u32 4294901760, %v10132_v21 }
 0x23e   :  { %v4803_v6 = vsub.f32 %v10096_v62, %v11545_v27  ;;  %6614 = vmatpush3.msra.mxu1 %v4776_v3  ;;  %6589 = vmatpush3.msra.mxu0 %v10085_v7  ;;  %v10256_v61 = vsub.f32 %v226_v42, %v10210_v12  ;;  %v11548_v3 = vand.u32 4294901760, %v10184_v39  ;;  %v11550_v42 = vand.u32 4294901760, %v10194_v28 }
 0x23f   :  { %6615 = vmatprep.subr.mxu1 %v4895_v48  ;;  %v4922_v27 = vsub.f32 %v10157_v18, %v11546_v32  ;;  %v4810_v48 = vsub.f32 %v10132_v21, %v11547_v58  ;;  %6590 = vmatprep.subr.mxu0 %v10122_v16  ;;  %v4916_v32 = vand.u32 4294901760, %v4915_v10  ;;  %v10265_v58 = vsub.f32 %v209_v55, %v10232_v43 }
 0x240   :  { %6616 = vmatpush3.msra.mxu1 %v4783_v38  ;;  %v4804_v2 = vand.u32 4294901760, %v4803_v6  ;;  %v4929_v38 = vsub.f32 %v10184_v39, %v11548_v3  ;;  %6591 = vmatpush3.msra.mxu0 %v10114_v56  ;;  %v4723_v53 = vsub.f32 %v10194_v28, %v11550_v42  ;;  %v10272_v6 = vsub.f32 %v225_v15, %v10230_v50 }
 0x241   :  { %6617 = vmatprep.subr.mxu1 %v4902_v14  ;;  %11549 = vst [vmem:[#allocation37_spill] sm:$0xff] %v10265_v58  ;;  %6592 = vmatprep.subr.mxu0 %v10149_v31  ;;  %v4923_v10 = vand.u32 4294901760, %v4922_v27  ;;  %v11552_v3 = vand.u32 4294901760, %v10168_v0  ;;  %v11553_v55 = vand.u32 4294901760, %v10205_v33  ;;  %v4811_v42 = vand.u32 4294901760, %v4810_v48 }
 0x242   :  { %6618 = vmatpush3.msra.mxu1 %v4790_v46  ;;  %11551 = vst [vmem:[#allocation32_spill] sm:$0xff] %v10272_v6  ;;  %6593 = vmatpush3.msra.mxu0 %v10116_v59  ;;  %v11554_v15 = vand.u32 4294901760, %v10216_v24  ;;  %v4930_v27 = vand.u32 4294901760, %v4929_v38  ;;  %v11556_v48 = vand.u32 4294901760, %v10236_v23  ;;  %v10899_v56 = vand.u32 4294901760, %v10265_v58 }
 0x243   :  { %6619 = vmatprep.subr.mxu1 %v4909_v17  ;;  %v4817_v46 = vsub.f32 %v10168_v0, %v11552_v3  ;;  %v4729_v8 = vsub.f32 %v10205_v33, %v11553_v55  ;;  %6594 = vmatprep.subr.mxu0 %v10191_v45  ;;  %v11555_v3 = vand.u32 4294901760, %v10171_v5  ;;  %v10900_v17 = vand.u32 4294901760, %v10272_v6 }
 0x244   :  { %6620 = vmatpush3.msra.mxu1 %v4797_v47  ;;  %v4936_v14 = vsub.f32 %v10216_v24, %v11554_v15  ;;  %6595 = vmatpush3.msra.mxu0 %v10200_v30  ;;  %v4724_v47 = vand.u32 4294901760, %v4723_v53  ;;  %v4943_v15 = vsub.f32 %v10236_v23, %v11556_v48  ;;  %v11557_v45 = vand.u32 4294901760, %v10240_v34 }
 0x245   :  { %6621 = vmatprep.subr.mxu1 %v4916_v32  ;;  %v4824_v55 = vsub.f32 %v10171_v5, %v11555_v3  ;;  %6596 = vmatprep.subr.mxu0 %v10210_v12  ;;  %v4818_v32 = vand.u32 4294901760, %v4817_v46  ;;  %v4730_v38 = vand.u32 4294901760, %v4729_v8  ;;  %v11558_v53 = vand.u32 4294901760, %v10256_v61 }
 0x246   :  { %6622 = vmatpush3.msra.mxu1 %v4804_v2  ;;  %v4831_v3 = vsub.f32 %v10240_v34, %v11557_v45  ;;  %6597 = vmatpush3.msra.mxu0 %v10212_v44  ;;  %v4937_v2 = vand.u32 4294901760, %v4936_v14  ;;  %v11559_v8 = vand.u32 4294901760, %v10249_v35  ;;  %v4944_v45 = vand.u32 4294901760, %v4943_v15 }
 0x247   :  { %6623 = vmatprep.subr.mxu1 %v4923_v10  ;;  %v4950_v48 = vsub.f32 %v10256_v61, %v11558_v53  ;;  %6598 = vmatprep.subr.mxu0 %v10230_v50  ;;  %v4825_v10 = vand.u32 4294901760, %v4824_v55  ;;  %v4957_v14 = vsub.f32 %v10272_v6, %v10900_v17  ;;  %v11563_v53 = vld [vmem:[#allocation19_spill] sm:$0xff]  ;;  %v11577_v17 = vld [vmem:[#allocation29_spill] sm:$0xff] }
 0x248   :  { %6624 = vmatpush3.msra.mxu1 %v4811_v42  ;;  %v4838_v46 = vsub.f32 %v10249_v35, %v11559_v8  ;;  %6599 = vmatpush3.msra.mxu0 %v10232_v43  ;;  %v4832_v42 = vand.u32 4294901760, %v4831_v3  ;;  %v11561_v3 = vld [vmem:[#allocation35_spill] sm:$0xff]  ;;  %v11566_v8 = vld [vmem:[#allocation25_spill] sm:$0xff] }
 0x249   :  { %6625 = vmatprep.subr.mxu1 %v4930_v27  ;;  %4725 = vmatprep.mubr.f32.mxu0 %v4724_v47  ;;  %v4845_v27 = vsub.f32 %v10265_v58, %v10899_v56  ;;  %v4951_v55 = vand.u32 4294901760, %v4950_v48  ;;  %v4958_v15 = vand.u32 4294901760, %v4957_v14  ;;  %v11564_v48 = vld [vmem:[#allocation15_spill] sm:$0xff]  ;;  %v11569_v14 = vld [vmem:[#allocation21_spill] sm:$0xff]  ;;  %v11576_v56 = vld [vmem:[#allocation24_spill] sm:$0xff] }
 0x24a   :  { %6626 = vmatpush3.msra.mxu1 %v4818_v32  ;;  %4731 = vmatmul.mubr.f32.vlgmr.msra.gmra.mxu0 %v4730_v38  ;;  %v4839_v47 = vand.u32 4294901760, %v4838_v46  ;;  %v11560_v38 = vld [vmem:[#allocation30_spill] sm:$0xff]  ;;  %v11567_v46 = vld [vmem:[#allocation16_spill] sm:$0xff] }
 0x24b   :  { %6627 = vmatprep.subr.mxu1 %v4937_v2  ;;  %6638 = vmatprep.subr.mxu0 %v9847_v54  ;;  %v4846_v32 = vand.u32 4294901760, %v4845_v27  ;;  %v11562_v2 = vld [vmem:[#allocation44_spill] sm:$0xff]  ;;  %v11571_v27 = vld [vmem:[#allocation26_spill] sm:$0xff] }
 0x24c   :  { %6628 = vmatpush3.msra.mxu1 %v4825_v10  ;;  %6639 = vmatpush3.msra.mxu0 %v9853_v51  ;;  %v11565_v10 = vld [vmem:[#allocation18_spill] sm:$0xff] }
 0x24d   :  { %6629 = vmatprep.subr.mxu1 %v4944_v45  ;;  %6640 = vmatprep.subr.mxu0 %v9866_v25  ;;  %v11568_v45 = vld [vmem:[#allocation17_spill] sm:$0xff] }
 0x24e   :  { %6630 = vmatpush3.msra.mxu1 %v4832_v42  ;;  %6641 = vmatpush3.msra.mxu0 %v9878_v19  ;;  %v11570_v42 = vld [vmem:[#allocation39_spill] sm:$0xff] }
 0x24f   :  { %6631 = vmatprep.subr.mxu1 %v4951_v55  ;;  %6642 = vmatprep.subr.mxu0 %v9889_v4  ;;  %v11572_v55 = vld [vmem:[#allocation22_spill] sm:$0xff] }
 0x250   :  { %6632 = vmatpush3.msra.mxu1 %v4839_v47  ;;  %6643 = vmatpush3.msra.mxu0 %v9903_v40  ;;  %v11573_v47 = vld [vmem:[#allocation20_spill] sm:$0xff] }
 0x251   :  { %6633 = vmatprep.subr.mxu1 %v4958_v15  ;;  %6644 = vmatprep.subr.mxu0 %v9922_v29  ;;  %v11574_v15 = vld [vmem:[#allocation27_spill] sm:$0xff] }
 0x252   :  { %6634 = vmatpush3.msra.mxu1 %v4846_v32  ;;  %6645 = vmatpush3.msra.mxu0 %v9928_v1  ;;  %v11575_v32 = vld [vmem:[#allocation31_spill] sm:$0xff] }
 0x253   :  { %4963 = vmatmul.mubr.f32.vlgmr.msra.gmra.mxu1 %v10160_v36  ;;  %6646 = vmatprep.subr.mxu0 %v9945_v20  ;;  %v11578_v36 = vld [vmem:[#allocation28_spill] sm:$0xff] }
 0x254   :  { %6673 = vmatprep.subr.mxu1 %v9828_v63  ;;  %6647 = vmatpush3.msra.mxu0 %v9935_v37 }
 0x255   :  { %6674 = vmatpush3.msra.mxu1 %v9833_v11  ;;  %6648 = vmatprep.subr.mxu0 %v9963_v13 }
 0x256   :  { %6675 = vmatprep.subr.mxu1 %v9841_v57  ;;  %6649 = vmatpush3.msra.mxu0 %v9982_v26 }
 0x257   :  { %6676 = vmatpush3.msra.mxu1 %v9855_v49  ;;  %6650 = vmatprep.subr.mxu0 %v10022_v41 }
 0x258   :  { %6677 = vmatprep.subr.mxu1 %v11560_v38  ;;  %6651 = vmatpush3.msra.mxu0 %v11561_v3 }
 0x259   :  { %6678 = vmatpush3.msra.mxu1 %v11562_v2  ;;  %6652 = vmatprep.subr.mxu0 %v10046_v9 }
 0x25a   :  { %6679 = vmatprep.subr.mxu1 %v11563_v53  ;;  %6653 = vmatpush3.msra.mxu0 %v11564_v48 }
 0x25b   :  { %6680 = vmatpush3.msra.mxu1 %v11565_v10  ;;  %6654 = vmatprep.subr.mxu0 %v11566_v8 }
 0x25c   :  { %6681 = vmatprep.subr.mxu1 %v11567_v46  ;;  %6655 = vmatpush3.msra.mxu0 %v11568_v45 }
 0x25d   :  { %6682 = vmatpush3.msra.mxu1 %v11569_v14  ;;  %6656 = vmatprep.subr.mxu0 %v10126_v22 }
 0x25e   :  { %6683 = vmatprep.subr.mxu1 %v11570_v42  ;;  %6657 = vmatpush3.msra.mxu0 %v10096_v62 }
 0x25f   :  { %6684 = vmatpush3.msra.mxu1 %v11571_v27  ;;  %6658 = vmatprep.subr.mxu0 %v10157_v18 }
 0x260   :  { %6685 = vmatprep.subr.mxu1 %v11572_v55  ;;  %6659 = vmatpush3.msra.mxu0 %v10132_v21 }
 0x261   :  { %6686 = vmatpush3.msra.mxu1 %v11573_v47  ;;  %6660 = vmatprep.subr.mxu0 %v10184_v39 }
 0x262   :  { %6687 = vmatprep.subr.mxu1 %v11574_v15  ;;  %6661 = vmatpush3.msra.mxu0 %v10168_v0 }
 0x263   :  { %6688 = vmatpush3.msra.mxu1 %v11575_v32  ;;  %6662 = vmatprep.subr.mxu0 %v10216_v24 }
 0x264   :  { %6689 = vmatprep.subr.mxu1 %v11576_v56  ;;  %6663 = vmatpush3.msra.mxu0 %v10171_v5 }
 0x265   :  { %6690 = vmatpush3.msra.mxu1 %v11577_v17  ;;  %6664 = vmatprep.subr.mxu0 %v10236_v23 }
 0x266   :  { %6691 = vmatprep.subr.mxu1 %v11578_v36  ;;  %6665 = vmatpush3.msra.mxu0 %v10240_v34  ;;  %v11580_v36 = vld [vmem:[#allocation23_spill] sm:$0xff] }
 0x267   :  { %6692 = vmatpush3.msra.mxu1 %v10059_v52  ;;  %6666 = vmatprep.subr.mxu0 %v10256_v61 }
 0x268   :  { %6693 = vmatprep.subr.mxu1 %v11579_v60  ;;  %6667 = vmatpush3.msra.mxu0 %v10249_v35  ;;  %v11581_v60 = vand.u32 4294901760, %v9847_v54  ;;  %v11586_v54 = vand.u32 4294901760, %v9889_v4  ;;  %v11591_v4 = vand.u32 4294901760, %v10205_v33 }
 0x269   :  { %6694 = vmatpush3.msra.mxu1 %v10085_v7  ;;  %6668 = vmatprep.subr.mxu0 %v10272_v6  ;;  %v11582_v7 = vand.u32 4294901760, %v9853_v51  ;;  %v11583_v6 = vld [vmem:[#allocation38_spill] sm:$0xff]  ;;  %v11587_v51 = vand.u32 4294901760, %v9903_v40  ;;  %v11593_v40 = vand.u32 4294901760, %v9935_v37  ;;  %v11602_v37 = vand.u32 4294901760, %v10126_v22 }
 0x26a   :  { %6695 = vmatprep.subr.mxu1 %v10122_v16  ;;  %6669 = vmatpush3.msra.mxu0 %v10265_v58  ;;  %v11584_v58 = vand.u32 4294901760, %v9866_v25  ;;  %v11588_v25 = vand.u32 4294901760, %v9922_v29  ;;  %v11594_v29 = vand.u32 4294901760, %v9963_v13  ;;  %v11603_v13 = vand.u32 4294901760, %v10096_v62 }
 0x26b   :  { %5098 = vmatprep.mubr.f32.mxu0 %v10194_v28  ;;  %6696 = vmatpush3.msra.mxu1 %v11580_v36  ;;  %v11585_v36 = vand.u32 4294901760, %v9878_v19  ;;  %v11589_v19 = vand.u32 4294901760, %v10194_v28  ;;  %v11606_v22 = vand.u32 4294901760, %v10184_v39  ;;  %v11607_v62 = vand.u32 4294901760, %v10168_v0  ;;  %v11611_v28 = vld [vmem:[#allocation28_spill] sm:$0xff] }
 0x26c   :  { %5101 = vmatmul.mubr.f32.vlgmr.msra.gmra.mxu0 %v10205_v33  ;;  %6697 = vmatprep.subr.mxu1 %v10149_v31  ;;  %v11612_v0 = vand.u32 4294901760, %v10240_v34  ;;  %v11613_v39 = vand.u32 4294901760, %v10256_v61  ;;  %v11614_v33 = vld [vmem:[#allocation42_spill] sm:$0xff] }
 0x26d   :  { %6708 = vmatprep.subr.mxu0 %v11581_v60  ;;  %6698 = vmatpush3.msra.mxu1 %v10116_v59  ;;  %v11592_v60 = vand.u32 4294901760, %v9945_v20  ;;  %v11596_v20 = vand.u32 4294901760, %v10022_v41  ;;  %v11601_v41 = vand.u32 4294901760, %v11568_v45  ;;  %v11623_v61 = vld [vmem:[#allocation34_spill] sm:$0xff] }
 0x26e   :  { %6709 = vmatpush3.msra.mxu0 %v11582_v7  ;;  %6699 = vmatprep.subr.mxu1 %v11583_v6  ;;  %v11590_v7 = vand.u32 4294901760, %v9928_v1  ;;  %v11595_v1 = vand.u32 4294901760, %v9982_v26  ;;  %v11604_v26 = vand.u32 4294901760, %v10157_v18  ;;  %v11608_v18 = vand.u32 4294901760, %v10216_v24  ;;  %v11617_v24 = vld [vmem:[#allocation32_spill] sm:$0xff] }
 0x26f   :  { %6710 = vmatprep.subr.mxu0 %v11584_v58  ;;  %6700 = vmatpush3.msra.mxu1 %v10200_v30  ;;  %v11619_v58 = vld [vmem:[#allocation37_spill] sm:$0xff] }
 0x270   :  { %6711 = vmatpush3.msra.mxu0 %v11585_v36  ;;  %6701 = vmatprep.subr.mxu1 %v10210_v12  ;;  %v11610_v36 = vand.u32 4294901760, %v10236_v23  ;;  %v11618_v23 = vand.u32 4294901760, %v11617_v24  ;;  %v11620_v34 = vand.u32 4294901760, %v11619_v58 }
 0x271   :  { %6712 = vmatprep.subr.mxu0 %v11586_v54  ;;  %6702 = vmatpush3.msra.mxu1 %v10212_v44 }
 0x272   :  { %6713 = vmatpush3.msra.mxu0 %v11587_v51  ;;  %6703 = vmatprep.subr.mxu1 %v10230_v50 }
 0x273   :  { %6714 = vmatprep.subr.mxu0 %v11588_v25  ;;  %6704 = vmatpush3.msra.mxu1 %v10232_v43 }
 0x274   :  { %5205 = vmatprep.mubr.f32.mxu1 %v11589_v19  ;;  %6715 = vmatpush3.msra.mxu0 %v11590_v7 }
 0x275   :  { %5209 = vmatmul.mubr.f32.vlgmr.msra.gmra.mxu1 %v11591_v4  ;;  %6716 = vmatprep.subr.mxu0 %v11592_v60 }
 0x276   :  { %6743 = vmatprep.subr.mxu1 %v9828_v63  ;;  %6717 = vmatpush3.msra.mxu0 %v11593_v40  ;;  %v11597_v63 = vand.u32 4294901760, %v11561_v3 }
 0x277   :  { %6744 = vmatpush3.msra.mxu1 %v9833_v11  ;;  %6718 = vmatprep.subr.mxu0 %v11594_v29  ;;  %v11598_v11 = vand.u32 4294901760, %v10046_v9  ;;  %v11605_v9 = vand.u32 4294901760, %v10132_v21  ;;  %v11609_v21 = vand.u32 4294901760, %v10171_v5  ;;  %v11616_v5 = vld [vmem:[#allocation33_spill] sm:$0xff] }
 0x278   :  { %6745 = vmatprep.subr.mxu1 %v9841_v57  ;;  %6719 = vmatpush3.msra.mxu0 %v11595_v1  ;;  %v11599_v57 = vand.u32 4294901760, %v11564_v48 }
 0x279   :  { %6746 = vmatpush3.msra.mxu1 %v9855_v49  ;;  %6720 = vmatprep.subr.mxu0 %v11596_v20  ;;  %v11600_v49 = vand.u32 4294901760, %v11566_v8 }
 0x27a   :  { %6747 = vmatprep.subr.mxu1 %v11560_v38  ;;  %6721 = vmatpush3.msra.mxu0 %v11597_v63 }
 0x27b   :  { %6748 = vmatpush3.msra.mxu1 %v11562_v2  ;;  %6722 = vmatprep.subr.mxu0 %v11598_v11 }
 0x27c   :  { %6749 = vmatprep.subr.mxu1 %v11563_v53  ;;  %6723 = vmatpush3.msra.mxu0 %v11599_v57 }
 0x27d   :  { %6750 = vmatpush3.msra.mxu1 %v11565_v10  ;;  %6724 = vmatprep.subr.mxu0 %v11600_v49 }
 0x27e   :  { %6751 = vmatprep.subr.mxu1 %v11567_v46  ;;  %6725 = vmatpush3.msra.mxu0 %v11601_v41 }
 0x27f   :  { %6752 = vmatpush3.msra.mxu1 %v11569_v14  ;;  %6726 = vmatprep.subr.mxu0 %v11602_v37 }
 0x280   :  { %6753 = vmatprep.subr.mxu1 %v11570_v42  ;;  %6727 = vmatpush3.msra.mxu0 %v11603_v13 }
 0x281   :  { %6754 = vmatpush3.msra.mxu1 %v11571_v27  ;;  %6728 = vmatprep.subr.mxu0 %v11604_v26 }
 0x282   :  { %6755 = vmatprep.subr.mxu1 %v11572_v55  ;;  %6729 = vmatpush3.msra.mxu0 %v11605_v9 }
 0x283   :  { %6756 = vmatpush3.msra.mxu1 %v11573_v47  ;;  %6730 = vmatprep.subr.mxu0 %v11606_v22 }
 0x284   :  { %6757 = vmatprep.subr.mxu1 %v11574_v15  ;;  %6731 = vmatpush3.msra.mxu0 %v11607_v62 }
 0x285   :  { %6758 = vmatpush3.msra.mxu1 %v11575_v32  ;;  %6732 = vmatprep.subr.mxu0 %v11608_v18 }
 0x286   :  { %6759 = vmatprep.subr.mxu1 %v11576_v56  ;;  %6733 = vmatpush3.msra.mxu0 %v11609_v21  ;;  %v11615_v56 = vand.u32 4294901760, %v10249_v35 }
 0x287   :  { %6760 = vmatpush3.msra.mxu1 %v11577_v17  ;;  %6734 = vmatprep.subr.mxu0 %v11610_v36  ;;  %v11621_v17 = vld [vmem:[#allocation43_spill] sm:$0xff] }
 0x288   :  { %6761 = vmatprep.subr.mxu1 %v11611_v28  ;;  %6735 = vmatpush3.msra.mxu0 %v11612_v0 }
 0x289   :  { %6762 = vmatpush3.msra.mxu1 %v10059_v52  ;;  %6736 = vmatprep.subr.mxu0 %v11613_v39  ;;  %v11622_v52 = vld [vmem:[#allocation23_spill] sm:$0xff] }
 0x28a   :  { %6763 = vmatprep.subr.mxu1 %v11614_v33  ;;  %6737 = vmatpush3.msra.mxu0 %v11615_v56 }
 0x28b   :  { %6764 = vmatpush3.msra.mxu1 %v11616_v5  ;;  %6738 = vmatprep.subr.mxu0 %v11618_v23 }
 0x28c   :  { %6765 = vmatprep.subr.mxu1 %v10122_v16  ;;  %6739 = vmatpush3.msra.mxu0 %v11620_v34 }
 0x28d   :  { %5375 = vmatprep.mubr.f32.mxu0 %v11621_v17  ;;  %6766 = vmatpush3.msra.mxu1 %v11622_v52 }
 0x28e   :  { %5377 = vmatmul.mubr.f32.vlgmr.msra.gmra.mxu0 %v11623_v61  ;;  %6767 = vmatprep.subr.mxu1 %v10149_v31 }
 0x28f   :  { %5479 = vmatprep.mubr.f32.mxu1 %v11621_v17  ;;  %6768 = vmatpush3.msra.mxu1 %v10116_v59 }
 0x290   :  { %6769 = vmatprep.subr.mxu1 %v11583_v6 }
 0x291   :  { %6770 = vmatpush3.msra.mxu1 %v10200_v30 }
 0x292   :  { %6771 = vmatprep.subr.mxu1 %v10210_v12 }
 0x293   :  { %6772 = vmatpush3.msra.mxu1 %v10212_v44 }
 0x294   :  { %6773 = vmatprep.subr.mxu1 %v10230_v50 }
 0x295   :  { %6774 = vmatpush3.msra.mxu1 %v10232_v43 }
 0x296   :  { %5481 = vmatmul.mubr.f32.vlgmr.msra.gmra.mxu1 %v11623_v61 }
 0x297   :  { %6839 = shalt.err (!%p6836_p0)
}
 0x298   :  { %5506 = dma.vmem_to_hbm [thread:$0]  %s5504_s1, 192, %s10502_s4, [#allocation9]   ;;  %v5550_v59 = vpop.f32.mrf.mxu0  ;;  %v5585_v12 = vpop.f32.mrf.mxu1  ;;  %v5517_v54 = vld [vmem:[%s10500_s2] ss:$0 sm:$0xff] }
 0x299   :  { %s6882_s2 = smov [#allocation7]  }
 0x29a   :  { %v5551_v16 = vpop.f32.mrf.mxu0  ;;  %v5586_v43 = vpop.f32.mrf.mxu1  ;;  %s5493_s5 = sshll.u32 %s6882_s2, 4  ;;  %s5494_s5 = int_to_ptr.vmem [resolvable:$true] %s5493_s5 }
 0x29b   :  { %v5552_v32 = vadd.f32 %v5551_v16, %v5550_v59  ;;  %v5587_v4 = vadd.f32 %v5586_v43, %v5585_v12  ;;  %s6848_s6 = scalar_lea.vmem %s5494_s5, 32  ;;  %p6853_p2 = scmp.lt.s32.totalorder %s5494_s5, %s5494_s5 }
 0x29c   :  { %v5620_v30 = vpop.f32.mrf.mxu0  ;;  %v5655_v44 = vpop.f32.mrf.mxu1  ;;  %p6849_p1 = scmp.ne.s32.totalorder %s5494_s5, %s6848_s6  ;;  %p6854_p3 = scmp.lt.s32.totalorder %s6848_s6, %s6848_s6 }
 0x29d   :  { %v423_v7 = vadd.f32 %v5552_v32, %v5517_v54 }
 0x29e   :  { %v5621_v31 = vpop.f32.mrf.mxu0  ;;  %v5656_v35 = vpop.f32.mrf.mxu1  ;;  %p6855_p4 = por %p6854_p3, %p6853_p2 }
 0x29f   :  { %v5622_v40 = vadd.f32 %v5621_v31, %v5620_v30  ;;  %v655_v20 = vadd.f32 %v5587_v4, %v423_v7  ;;  %v5657_v63 = vadd.f32 %v5656_v35, %v5655_v44 }
 0x2a0   :  { %v5690_v50 = vpop.f32.mrf.mxu0  ;;  %v5725_v38 = vpop.f32.mrf.mxu1  ;;  %p6856_p5 = pnand %p6855_p4, %p6849_p1 }
 0x2a1   :  { %v793_v57 = vadd.f32 %v5622_v40, %v655_v20 }
 0x2a2   :  { %v5691_v6 = vpop.f32.mrf.mxu0  ;;  %v5726_v2 = vpop.f32.mrf.mxu1 }
 0x2a3   :  { %v5692_v49 = vadd.f32 %v5691_v6, %v5690_v50  ;;  %v901_v37 = vadd.f32 %v5657_v63, %v793_v57  ;;  %v5727_v13 = vadd.f32 %v5726_v2, %v5725_v38 }
 0x2a4   :  { %v5760_v3 = vpop.f32.mrf.mxu0  ;;  %v5795_v48 = vpop.f32.mrf.mxu1 }
 0x2a5   :  { %v1069_v22 = vadd.f32 %v5692_v49, %v901_v37 }
 0x2a6   :  { %v5761_v53 = vpop.f32.mrf.mxu0  ;;  %v5796_v8 = vpop.f32.mrf.mxu1 }
 0x2a7   :  { %v5762_v62 = vadd.f32 %v5761_v53, %v5760_v3  ;;  %v1173_v21 = vadd.f32 %v5727_v13, %v1069_v22  ;;  %v5797_v36 = vadd.f32 %v5796_v8, %v5795_v48 }
 0x2a8   :  { %v5830_v10 = vpop.f32.mrf.mxu0  ;;  %v5865_v45 = vpop.f32.mrf.mxu1 }
 0x2a9   :  { %v1285_v0 = vadd.f32 %v5762_v62, %v1173_v21 }
 0x2aa   :  { %v5831_v46 = vpop.f32.mrf.mxu0  ;;  %v5866_v42 = vpop.f32.mrf.mxu1 }
 0x2ab   :  { %v5832_v39 = vadd.f32 %v5831_v46, %v5830_v10  ;;  %v1517_v5 = vadd.f32 %v5797_v36, %v1285_v0  ;;  %v5867_v24 = vadd.f32 %v5866_v42, %v5865_v45 }
 0x2ac   :  { %v5900_v14 = vpop.f32.mrf.mxu0  ;;  %v5935_v55 = vpop.f32.mrf.mxu1 }
 0x2ad   :  { %v1655_v58 = vadd.f32 %v5832_v39, %v1517_v5 }
 0x2ae   :  { %v5901_v27 = vpop.f32.mrf.mxu0  ;;  %v5936_v15 = vpop.f32.mrf.mxu1 }
 0x2af   :  { %v5902_v34 = vadd.f32 %v5901_v27, %v5900_v14  ;;  %v1763_v52 = vadd.f32 %v5867_v24, %v1655_v58  ;;  %v5937_v61 = vadd.f32 %v5936_v15, %v5935_v55 }
 0x2b0   :  { %v5970_v47 = vpop.f32.mrf.mxu0  ;;  %v6005_v25 = vpop.f32.mrf.mxu1 }
 0x2b1   :  { %v1931_v12 = vadd.f32 %v5902_v34, %v1763_v52 }
 0x2b2   :  { %v5971_v51 = vpop.f32.mrf.mxu0  ;;  %v6006_v60 = vpop.f32.mrf.mxu1 }
 0x2b3   :  { %v5972_v30 = vadd.f32 %v5971_v51, %v5970_v47  ;;  %v2035_v31 = vadd.f32 %v5937_v61, %v1931_v12  ;;  %v6007_v44 = vadd.f32 %v6006_v60, %v6005_v25 }
 0x2b4   :  { %v6040_v19 = vpop.f32.mrf.mxu0  ;;  %v6075_v1 = vpop.f32.mrf.mxu1 }
 0x2b5   :  { %v2147_v35 = vadd.f32 %v5972_v30, %v2035_v31 }
 0x2b6   :  { %v6041_v29 = vpop.f32.mrf.mxu0  ;;  %v6076_v41 = vpop.f32.mrf.mxu1 }
 0x2b7   :  { %v6042_v6 = vadd.f32 %v6041_v29, %v6040_v19  ;;  %v2379_v2 = vadd.f32 %v6007_v44, %v2147_v35  ;;  %v6077_v53 = vadd.f32 %v6076_v41, %v6075_v1 }
 0x2b8   :  { %v6110_v11 = vpop.f32.mrf.mxu0  ;;  %v6145_v9 = vpop.f32.mrf.mxu1 }
 0x2b9   :  { %v2517_v10 = vadd.f32 %v6042_v6, %v2379_v2 }
 0x2ba   :  { %v6111_v26 = vpop.f32.mrf.mxu0  ;;  %v6146_v28 = vpop.f32.mrf.mxu1 }
 0x2bb   :  { %v6112_v8 = vadd.f32 %v6111_v26, %v6110_v11  ;;  %v2625_v45 = vadd.f32 %v6077_v53, %v2517_v10  ;;  %v6147_v14 = vadd.f32 %v6146_v28, %v6145_v9 }
 0x2bc   :  { %v6180_v18 = vpop.f32.mrf.mxu0  ;;  %v6215_v56 = vpop.f32.mrf.mxu1 }
 0x2bd   :  { %v2793_v55 = vadd.f32 %v6112_v8, %v2625_v45 }
 0x2be   :  { %v6181_v33 = vpop.f32.mrf.mxu0  ;;  %v6216_v17 = vpop.f32.mrf.mxu1 }
 0x2bf   :  { %v6182_v47 = vadd.f32 %v6181_v33, %v6180_v18  ;;  %v2897_v32 = vadd.f32 %v6147_v14, %v2793_v55  ;;  %v6217_v54 = vadd.f32 %v6216_v17, %v6215_v56 }
 0x2c0   :  { %v6250_v23 = vpop.f32.mrf.mxu0  ;;  %v6285_v16 = vpop.f32.mrf.mxu1 }
 0x2c1   :  { %v3009_v25 = vadd.f32 %v6182_v47, %v2897_v32 }
 0x2c2   :  { %v6251_v59 = vpop.f32.mrf.mxu0  ;;  %v6286_v50 = vpop.f32.mrf.mxu1 }
 0x2c3   :  { %v6252_v19 = vadd.f32 %v6251_v59, %v6250_v23  ;;  %v3241_v60 = vadd.f32 %v6217_v54, %v3009_v25  ;;  %v6287_v40 = vadd.f32 %v6286_v50, %v6285_v16 }
 0x2c4   :  { %v6320_v43 = vpop.f32.mrf.mxu0  ;;  %v6355_v3 = vpop.f32.mrf.mxu1 }
 0x2c5   :  { %v3379_v1 = vadd.f32 %v6252_v19, %v3241_v60 }
 0x2c6   :  { %v6321_v38 = vpop.f32.mrf.mxu0  ;;  %v6356_v46 = vpop.f32.mrf.mxu1 }
 0x2c7   :  { %v6322_v20 = vadd.f32 %v6321_v38, %v6320_v43  ;;  %v3487_v11 = vadd.f32 %v6287_v40, %v3379_v1  ;;  %v6357_v57 = vadd.f32 %v6356_v46, %v6355_v3 }
 0x2c8   :  { %v6390_v48 = vpop.f32.mrf.mxu0  ;;  %v6425_v27 = vpop.f32.mrf.mxu1 }
 0x2c9   :  { %v3655_v37 = vadd.f32 %v6322_v20, %v3487_v11 }
 0x2ca   :  { %v6391_v42 = vpop.f32.mrf.mxu0  ;;  %v6426_v51 = vpop.f32.mrf.mxu1 }
 0x2cb   :  { %v6392_v13 = vadd.f32 %v6391_v42, %v6390_v48  ;;  %v3759_v9 = vadd.f32 %v6357_v57, %v3655_v37  ;;  %v6427_v22 = vadd.f32 %v6426_v51, %v6425_v27 }
 0x2cc   :  { %v6460_v15 = vpop.f32.mrf.mxu0 }
 0x2cd   :  { %v3871_v18 = vadd.f32 %v6392_v13, %v3759_v9 }
 0x2ce   :  { %v6461_v7 = vpop.f32.mrf.mxu0  ;;  %v6495_v4 = vpop.f32.mrf.mxu1 }
 0x2cf   :  { %v6462_v21 = vadd.f32 %v6461_v7, %v6460_v15  ;;  %v4103_v0 = vadd.f32 %v6427_v22, %v3871_v18 }
 0x2d0   :  { %v6496_v63 = vpop.f32.mrf.mxu1 }
 0x2d1   :  { %v6497_v39 = vadd.f32 %v6496_v63, %v6495_v4  ;;  %v4241_v56 = vadd.f32 %v6462_v21, %v4103_v0 }
 0x2d3   :  { %v4349_v23 = vadd.f32 %v6497_v39, %v4241_v56 }
 0x2e7   :  { %v6530_v29 = vpop.f32.mrf.mxu0 }
 0x2e9   :  { %v6531_v49 = vpop.f32.mrf.mxu0 }
 0x2ea   :  { %v6532_v5 = vadd.f32 %v6531_v49, %v6530_v29 }
 0x2ec   :  { %v4517_v52 = vadd.f32 %v6532_v5, %v4349_v23 }
 0x2f0   :  { %v6565_v41 = vpop.f32.mrf.mxu1 }
 0x2f2   :  { %v6566_v62 = vpop.f32.mrf.mxu1 }
 0x2f3   :  { %v6567_v58 = vadd.f32 %v6566_v62, %v6565_v41 }
 0x2f5   :  { %v4621_v16 = vadd.f32 %v6567_v58, %v4517_v52 }
 0x30a   :  { %v6600_v26 = vpop.f32.mrf.mxu0 }
 0x30c   :  { %v6601_v36 = vpop.f32.mrf.mxu0 }
 0x30d   :  { %v6602_v61 = vadd.f32 %v6601_v36, %v6600_v26 }
 0x30f   :  { %v4733_v43 = vadd.f32 %v6602_v61, %v4621_v16 }
 0x313   :  { %v6635_v28 = vpop.f32.mrf.mxu1 }
 0x315   :  { %v6636_v24 = vpop.f32.mrf.mxu1 }
 0x316   :  { %v6637_v12 = vadd.f32 %v6636_v24, %v6635_v28 }
 0x318   :  { %v4965_v50 = vadd.f32 %v6637_v12, %v4733_v43 }
 0x32c   :  { %v6670_v33 = vpop.f32.mrf.mxu0 }
 0x32e   :  { %v6671_v34 = vpop.f32.mrf.mxu0 }
 0x32f   :  { %v6672_v31 = vadd.f32 %v6671_v34, %v6670_v33 }
 0x331   :  { %v5103_v6 = vadd.f32 %v6672_v31, %v4965_v50 }
 0x335   :  { %v6705_v17 = vpop.f32.mrf.mxu1 }
 0x337   :  { %v6706_v30 = vpop.f32.mrf.mxu1 }
 0x338   :  { %v6707_v35 = vadd.f32 %v6706_v30, %v6705_v17 }
 0x33a   :  { %v5211_v2 = vadd.f32 %v6707_v35, %v5103_v6 }
 0x34e   :  { %v6740_v59 = vpop.f32.mrf.mxu0 }
 0x350   :  { %v6741_v44 = vpop.f32.mrf.mxu0 }
 0x351   :  { %v6742_v38 = vadd.f32 %v6741_v44, %v6740_v59 }
 0x353   :  { %v5379_v48 = vadd.f32 %v6742_v38, %v5211_v2 }
 0x356   :  { %v6775_v3 = vpop.f32.mrf.mxu1 }
 0x358   :  { %v6776_v53 = vpop.f32.mrf.mxu1 }
 0x359   :  { %v6777_v10 = vadd.f32 %v6776_v53, %v6775_v3 }
 0x35b   :  { %v5483_v8 = vadd.f32 %v6777_v10, %v5379_v48 }
 0x35d   :  { %5486 = vst [vmem:[#allocation7] sm:$0x3] %v5483_v8 }
 0x35e   :  { %6859 = shalt.err (!%p6856_p5)
}
 0x35f   :  { %5496 = dma.vmem_to_hbm [thread:$0]  %s5494_s5, 32, %s10501_s3, [#allocation4]  }
 0x360   :  { %6872 = dma.done.wait [#allocation4], 32  }
 0x361   :  { %6873 = vsyncadd [#allocation4], 4294967264 }
 0x362   :  { %6874 = dma.done.wait [#allocation9], 192  }
 0x363   :  { %6875 = vsyncadd [#allocation9], 4294967104 }
 0x364   :  { %5513 = vsyncpa [#allocation3], 1 }
 0x365   :  { %5514 = vsyncpa [#allocation6], 1 }
 0x366   :  { %5515 = vsyncpa [#allocation4], 1 }
 0x367   :  { %5516 = vsyncpa [#allocation9], 1 }

</bundles_post_ra>
